<compile_context>
chip_gen: v5e
topology: v5e:2x2
jax: 0.10.0
libtpu: 0.0.40
codegen_flags: <defaults>
</compile_context>

<pallas_src>
import functools

import jax
import jax.numpy as jnp
from jax.experimental import pallas as pl
from jax.experimental.pallas import tpu as pltpu

MATMUL_DTYPE = jnp.bfloat16        # MXU input dtype (accumulation stays f32)
INTERMEDIATE_DTYPE = jnp.bfloat16  # storage dtype of large intermediates
_LN_EPS = 1e-6                     # matches norm_layer=partial(nn.LayerNorm, eps=1e-6)


# ----------------------------------------------------------------------------
# helpers
# ----------------------------------------------------------------------------
def _round_up(x, m):
    return (x + m - 1) // m * m


def _tpu_tuning():
    """Return (max_row_tile, vmem_limit_bytes) for the current TPU generation."""
    try:
        vmem_cap = int(pltpu.get_tpu_info().vmem_capacity_bytes)
    except Exception:
        vmem_cap = 64 * 1024 * 1024       # unknown -> conservative (v7x-safe)
    if vmem_cap >= 100 * 1024 * 1024:     # v5e / v6e: 128 MiB physical VMEM
        return 512, 64 * 1024 * 1024
    return 256, 32 * 1024 * 1024          # v7x: 64 MiB VMEM per TensorCore


def _pick_row_tile(m, max_tile):
    # >=2 grid steps when possible (keeps both v7x TensorCores busy, enables
    # prefetch/compute overlap); rows rounded to 16 (bf16 sublane packing).
    tile = min(max_tile, _round_up(pl.cdiv(m, 2), 16))
    return max(tile, 16)


def _layer_norm_f32(x, g, b, eps):
    mu = jnp.mean(x, axis=-1, keepdims=True)
    xc = x - mu
    var = jnp.mean(xc * xc, axis=-1, keepdims=True)
    return xc * jax.lax.rsqrt(var + eps) * g + b


# ----------------------------------------------------------------------------
# Kernel 1: fused LayerNorm(query) + sampling_offsets / attention_weights projections.
# Two separate lane-dense f32 outputs (no XLA slicing of a concatenated result).
# ----------------------------------------------------------------------------
def _ln_qproj_kernel(x_ref, g_ref, b_ref, woff_ref, boff_ref, waw_ref, baw_ref,
                     off_ref, aw_ref, *, eps):
    ln = _layer_norm_f32(x_ref[...].astype(jnp.float32),
                         g_ref[...].astype(jnp.float32),
                         b_ref[...].astype(jnp.float32), eps)
    ln_mm = ln.astype(MATMUL_DTYPE)
    off_ref[...] = (
        jnp.dot(ln_mm, woff_ref[...].astype(MATMUL_DTYPE),
                preferred_element_type=jnp.float32)
        + boff_ref[...].astype(jnp.float32)
    ).astype(off_ref.dtype)
    aw_ref[...] = (
        jnp.dot(ln_mm, waw_ref[...].astype(MATMUL_DTYPE),
                preferred_element_type=jnp.float32)
        + baw_ref[...].astype(jnp.float32)
    ).astype(aw_ref.dtype)


def ln_qproj(x, g, b, w_off, b_off, w_aw, b_aw, *, max_tile, vmem_limit):
    m, k = x.shape
    n_off = w_off.shape[1]
    n_aw = w_aw.shape[1]
    tm = _pick_row_tile(m, max_tile)
    grid = (pl.cdiv(m, tm),)
    return pl.pallas_call(
        functools.partial(_ln_qproj_kernel, eps=_LN_EPS),
        out_shape=(jax.ShapeDtypeStruct((m, n_off), jnp.float32),
                   jax.ShapeDtypeStruct((m, n_aw), jnp.float32)),
        grid=grid,
        in_specs=[
            pl.BlockSpec((tm, k), lambda i: (i, 0)),      # query rows
            pl.BlockSpec((1, k), lambda i: (0, 0)),       # query LN gamma
            pl.BlockSpec((1, k), lambda i: (0, 0)),       # query LN beta
            pl.BlockSpec((k, n_off), lambda i: (0, 0)),   # sampling_offsets W (bf16)
            pl.BlockSpec((1, n_off), lambda i: (0, 0)),   # sampling_offsets b
            pl.BlockSpec((k, n_aw), lambda i: (0, 0)),    # attention_weights W (bf16)
            pl.BlockSpec((1, n_aw), lambda i: (0, 0)),    # attention_weights b
        ],
        out_specs=(pl.BlockSpec((tm, n_off), lambda i: (i, 0)),
                   pl.BlockSpec((tm, n_aw), lambda i: (i, 0))),
        compiler_params=pltpu.CompilerParams(dimension_semantics=("parallel",),
                                             vmem_limit_bytes=vmem_limit),
    )(x, g.reshape(1, k), b.reshape(1, k),
      w_off, b_off.reshape(1, n_off), w_aw, b_aw.reshape(1, n_aw))


# ----------------------------------------------------------------------------
# Kernel 2: fused LayerNorm(feat) + value_proj (bf16 output).
# ----------------------------------------------------------------------------
def _ln_proj_kernel(x_ref, g_ref, b_ref, w_ref, wb_ref, out_ref, *, eps):
    ln = _layer_norm_f32(x_ref[...].astype(jnp.float32),
                         g_ref[...].astype(jnp.float32),
                         b_ref[...].astype(jnp.float32), eps)
    out_ref[...] = (
        jnp.dot(ln.astype(MATMUL_DTYPE), w_ref[...].astype(MATMUL_DTYPE),
                preferred_element_type=jnp.float32)
        + wb_ref[...].astype(jnp.float32)
    ).astype(out_ref.dtype)


def ln_linear(x, g, b, w, wb, *, max_tile, vmem_limit, out_dtype=INTERMEDIATE_DTYPE):
    m, k = x.shape
    n = w.shape[1]
    tm = _pick_row_tile(m, max_tile)
    grid = (pl.cdiv(m, tm),)
    return pl.pallas_call(
        functools.partial(_ln_proj_kernel, eps=_LN_EPS),
        out_shape=jax.ShapeDtypeStruct((m, n), out_dtype),
        grid=grid,
        in_specs=[
            pl.BlockSpec((tm, k), lambda i: (i, 0)),   # feat rows
            pl.BlockSpec((1, k), lambda i: (0, 0)),    # feat LN gamma
            pl.BlockSpec((1, k), lambda i: (0, 0)),    # feat LN beta
            pl.BlockSpec((k, n), lambda i: (0, 0)),    # value_proj W (bf16, resident)
            pl.BlockSpec((1, n), lambda i: (0, 0)),    # value_proj b
        ],
        out_specs=pl.BlockSpec((tm, n), lambda i: (i, 0)),
        compiler_params=pltpu.CompilerParams(dimension_semantics=("parallel",),
                                             vmem_limit_bytes=vmem_limit),
    )(x, g.reshape(1, k), b.reshape(1, k), w, wb.reshape(1, n))


# ----------------------------------------------------------------------------
# Kernel 3: fused output_proj + mmcv identity (LN(q), recomputed in f32 in-kernel)
#           + gamma scaling + Injector residual.
#   o = q + gamma * ( agg @ Wo + bo + LN(q) )
# ----------------------------------------------------------------------------
def _out_residual_kernel(agg_ref, w_ref, b_ref, q_ref, qg_ref, qb_ref, gamma_ref,
                         o_ref, *, eps):
    q = q_ref[...].astype(jnp.float32)
    ln_q = _layer_norm_f32(q, qg_ref[...].astype(jnp.float32),
                           qb_ref[...].astype(jnp.float32), eps)
    proj = (jnp.dot(agg_ref[...].astype(MATMUL_DTYPE), w_ref[...].astype(MATMUL_DTYPE),
                    preferred_element_type=jnp.float32)
            + b_ref[...].astype(jnp.float32))
    attn_out = proj + ln_q                      # mmcv: dropout(out) + identity
    o_ref[...] = (q + gamma_ref[...].astype(jnp.float32) * attn_out).astype(o_ref.dtype)


def output_fuse(agg, out_w, out_b, query, q_ln_g, q_ln_b, gamma, *,
                max_tile, vmem_limit):
    m, c = agg.shape
    tm = _pick_row_tile(m, max_tile)
    grid = (pl.cdiv(m, tm),)
    return pl.pallas_call(
        functools.partial(_out_residual_kernel, eps=_LN_EPS),
        out_shape=jax.ShapeDtypeStruct((m, c), query.dtype),
        grid=grid,
        in_specs=[
            pl.BlockSpec((tm, c), lambda i: (i, 0)),   # aggregated attention (bf16)
            pl.BlockSpec((c, c), lambda i: (0, 0)),    # output_proj W (bf16)
            pl.BlockSpec((1, c), lambda i: (0, 0)),    # output_proj b
            pl.BlockSpec((tm, c), lambda i: (i, 0)),   # raw query (residual + LN recompute)
            pl.BlockSpec((1, c), lambda i: (0, 0)),    # query LN gamma
            pl.BlockSpec((1, c), lambda i: (0, 0)),    # query LN beta
            pl.BlockSpec((1, c), lambda i: (0, 0)),    # Injector gamma
        ],
        out_specs=pl.BlockSpec((tm, c), lambda i: (i, 0)),
        compiler_params=pltpu.CompilerParams(dimension_semantics=("parallel",),
                                             vmem_limit_bytes=vmem_limit),
    )(agg, out_w, out_b.reshape(1, c), query, q_ln_g.reshape(1, c),
      q_ln_b.reshape(1, c), gamma.reshape(1, c))


# ----------------------------------------------------------------------------
# Multi-scale deformable bilinear sampling + aggregation (XLA glue).
# Matches F.grid_sample(mode='bilinear', padding_mode='zeros', align_corners=False).
# All 4 bilinear corners are gathered with a single take_along_axis per level.
# TODO(synk): the data-dependent gather stays in XLA; a Pallas version needs a manual
#             DMA gather (memory_space=pl.ANY + pltpu.make_async_copy double-buffer).
# ----------------------------------------------------------------------------
def msda_sample(value, spatial_shapes, level_start, loc, aw):
    B, _, Hh, Dh = value.shape
    Nq = loc.shape[1]
    P = loc.shape[4]
    acc = jnp.zeros((B, Hh, Nq, Dh), jnp.float32)
    for l, (Hl, Wl) in enumerate(spatial_shapes):
        s = level_start[l]
        v_l = value[:, s:s + Hl * Wl]                              # (B, HW, Hh, Dh)
        v_l = jnp.transpose(v_l, (0, 2, 1, 3))                     # (B, Hh, HW, Dh)
        x = loc[:, :, :, l, :, 0] * Wl - 0.5                       # (B, Nq, Hh, P)
        y = loc[:, :, :, l, :, 1] * Hl - 0.5
        x0f = jnp.floor(x)
        y0f = jnp.floor(y)
        lx = x - x0f
        ly = y - y0f
        x0 = x0f.astype(jnp.int32)
        y0 = y0f.astype(jnp.int32)
        w_l = aw[:, :, :, l, :]                                    # (B, Nq, Hh, P)

        # Stack the 4 bilinear corners -> one gather of 4*P samples per query/head.
        xx = jnp.stack([x0, x0 + 1, x0, x0 + 1], axis=3)           # (B, Nq, Hh, 4, P)
        yy = jnp.stack([y0, y0, y0 + 1, y0 + 1], axis=3)
        bw = jnp.stack([(1 - ly) * (1 - lx), (1 - ly) * lx,
                        ly * (1 - lx), ly * lx], axis=3)
        valid = ((xx >= 0) & (xx < Wl) & (yy >= 0) & (yy < Hl)).astype(jnp.float32)
        idx = jnp.clip(yy, 0, Hl - 1) * Wl + jnp.clip(xx, 0, Wl - 1)
        idx = jnp.transpose(idx, (0, 2, 1, 3, 4)).reshape(B, Hh, Nq * 4 * P)
        g = jnp.take_along_axis(v_l, idx[..., None], axis=2)       # (B, Hh, Nq*4*P, Dh)
        g = g.reshape(B, Hh, Nq, 4, P, Dh).astype(jnp.float32)
        cw = jnp.transpose(bw * valid * w_l[:, :, :, None, :],
                           (0, 2, 1, 3, 4))                        # (B, Hh, Nq, 4, P)
        acc = acc + jnp.sum(g * cw[..., None], axis=(3, 4))
    out = jnp.transpose(acc, (0, 2, 1, 3)).reshape(B, Nq, Hh * Dh)
    return out.astype(INTERMEDIATE_DTYPE)                          # half-width read downstream


# ----------------------------------------------------------------------------
# Injector forward
# ----------------------------------------------------------------------------
def injector_forward(query, reference_points, feat, params, *,
                     spatial_shapes, num_heads, num_points):
    B, Nq, C = query.shape
    _, Nv, _ = feat.shape
    L = len(spatial_shapes)
    P = num_points
    Hh = num_heads
    assert C % Hh == 0
    Dh = C // Hh
    level_start = []
    s = 0
    for h, w in spatial_shapes:
        level_start.append(s)
        s += h * w
    assert s == Nv

    max_tile, vmem_limit = _tpu_tuning()

    # 1) Fused LN(query) + sampling_offsets / attention_weights projections
    #    (single HBM read of query; offsets & weight logits stay f32).
    off, aw_logits = ln_qproj(query.reshape(B * Nq, C),
                              params["q_ln_g"], params["q_ln_b"],
                              params["samp_off_w"], params["samp_off_b"],
                              params["attn_w_w"], params["attn_w_b"],
                              max_tile=max_tile, vmem_limit=vmem_limit)
    off = off.reshape(B, Nq, Hh, L, P, 2)
    aw = jax.nn.softmax(aw_logits.reshape(B, Nq, Hh, L * P), axis=-1)
    aw = aw.reshape(B, Nq, Hh, L, P)

    # 2) Fused LN(feat) + value_proj (bf16 intermediate).
    value = ln_linear(feat.reshape(B * Nv, C),
                      params["f_ln_g"], params["f_ln_b"],
                      params["val_w"], params["val_b"],
                      max_tile=max_tile, vmem_limit=vmem_limit)
    value = value.reshape(B, Nv, Hh, Dh)

    # 3) Sampling locations (reference_points normalized to [0,1], 2D form) in f32.
    sp = jnp.asarray(spatial_shapes, jnp.float32)          # (L, 2) = (H, W)
    norm = jnp.stack([sp[:, 1], sp[:, 0]], axis=-1)        # (L, 2) = (W, H)
    loc = (reference_points[:, :, None, :, None, :].astype(jnp.float32)
           + off / norm[None, None, None, :, None, :])

    # 4) Bilinear sampling + per-point weighted aggregation (bf16 out, f32 accum).
    agg = msda_sample(value, spatial_shapes, level_start, loc, aw)   # (B, Nq, C)

    # 5) output_proj + mmcv identity (LN(q) recomputed in f32) + gamma + residual.
    out = output_fuse(agg.reshape(B * Nq, C), params["out_w"], params["out_b"],
                      query.reshape(B * Nq, C), params["q_ln_g"], params["q_ln_b"],
                      params["gamma"], max_tile=max_tile, vmem_limit=vmem_limit)
    return out.reshape(B, Nq, C)


def init_params(key, dim, num_heads, num_levels, num_points, init_values=0.0):
    ks = jax.random.split(key, 8)
    hlp = num_heads * num_levels * num_points
    s = 0.02
    # Projection weights are pre-cast to MATMUL_DTYPE (bf16) once at init so the
    # in-kernel cast is a no-op and weight DMA / resident VMEM is halved.
    return {
        "q_ln_g": jnp.ones((dim,), jnp.float32),
        "q_ln_b": jnp.zeros((dim,), jnp.float32),
        "f_ln_g": jnp.ones((dim,), jnp.float32),
        "f_ln_b": jnp.zeros((dim,), jnp.float32),
        # Linear weights stored (in, out): y = x @ W + b.
        "samp_off_w": (s * jax.random.normal(ks[0], (dim, hlp * 2), jnp.float32)
                       ).astype(MATMUL_DTYPE),
        "samp_off_b": s * jax.random.normal(ks[1], (hlp * 2,), jnp.float32),
        "attn_w_w": (s * jax.random.normal(ks[2], (dim, hlp), jnp.float32)
                     ).astype(MATMUL_DTYPE),
        "attn_w_b": s * jax.random.normal(ks[3], (hlp,), jnp.float32),
        "val_w": (s * jax.random.normal(ks[4], (dim, dim), jnp.float32)
                  ).astype(MATMUL_DTYPE),
        "val_b": s * jax.random.normal(ks[5], (dim,), jnp.float32),
        "out_w": (s * jax.random.normal(ks[6], (dim, dim), jnp.float32)
                  ).astype(MATMUL_DTYPE),
        "out_b": s * jax.random.normal(ks[7], (dim,), jnp.float32),
        "gamma": init_values * jnp.ones((dim,), jnp.float32),
    }


if __name__ == "__main__":
    # Small shapes: ViT 1/16 grid H=W=8 -> Nq = 64; feat levels 1/8, 1/16, 1/32
    # -> Nv = 16*16 + 8*8 + 4*4 = 336.  dim=48, 6 heads (head_dim=8), 3 levels, 4 points.
    B, H, W = 2, 8, 8
    dim, num_heads, num_levels, num_points = 48, 6, 3, 4
    spatial_shapes = ((2 * H, 2 * W), (H, W), (H // 2, W // 2))
    Nq = H * W
    Nv = sum(h * w for h, w in spatial_shapes)

    key = jax.random.PRNGKey(0)
    kq, kf, kr, kp = jax.random.split(key, 4)
    query = jax.random.normal(kq, (B, Nq, dim), jnp.float32)
    feat = jax.random.normal(kf, (B, Nv, dim), jnp.float32)
    reference_points = jax.random.uniform(kr, (B, Nq, num_levels, 2), jnp.float32)
    # init_values=0.1 (module default is 0.0, which would make out == query exactly).
    params = init_params(kp, dim, num_heads, num_levels, num_points, init_values=0.1)

    fwd = jax.jit(functools.partial(injector_forward,
                                    spatial_shapes=spatial_shapes,
                                    num_heads=num_heads,
                                    num_points=num_points))
    out = fwd(query, reference_points, feat, params)
    out = jax.block_until_ready(out)
    assert out.shape == (B, Nq, dim), out.shape
    assert bool(jnp.all(jnp.isfinite(out)))
    print("KERNEL_OK")
</pallas_src>

<mosaic_0001>
module attributes {stable_mosaic.version = 11 : i64} {
  func.func @_ln_qproj_kernel(%arg0: i32, %arg1: memref<64x48xf32, #tpu.memory_space<vmem>>, %arg2: memref<1x48xf32, #tpu.memory_space<vmem>>, %arg3: memref<1x48xf32, #tpu.memory_space<vmem>>, %arg4: memref<48x144xbf16, #tpu.memory_space<vmem>>, %arg5: memref<1x144xf32, #tpu.memory_space<vmem>>, %arg6: memref<48x72xbf16, #tpu.memory_space<vmem>>, %arg7: memref<1x72xf32, #tpu.memory_space<vmem>>, %arg8: memref<64x144xf32, #tpu.memory_space<vmem>>, %arg9: memref<64x72xf32, #tpu.memory_space<vmem>>) attributes {dimension_semantics = [#tpu.dimension_semantics<parallel>], iteration_bounds = array<i64: 2>, scalar_prefetch = 0 : i64, scratch_operands = 0 : i64, tpu.core_type = #tpu.core_type<tc>, window_params = [{transform_indices = @transform_0, window_bounds = array<i64: 64, 48>}, {pipeline_mode = #tpu.pipeline_mode<synchronous>, transform_indices = @transform_1, window_bounds = array<i64: 1, 48>}, {pipeline_mode = #tpu.pipeline_mode<synchronous>, transform_indices = @transform_2, window_bounds = array<i64: 1, 48>}, {pipeline_mode = #tpu.pipeline_mode<synchronous>, transform_indices = @transform_3, window_bounds = array<i64: 48, 144>}, {pipeline_mode = #tpu.pipeline_mode<synchronous>, transform_indices = @transform_4, window_bounds = array<i64: 1, 144>}, {pipeline_mode = #tpu.pipeline_mode<synchronous>, transform_indices = @transform_5, window_bounds = array<i64: 48, 72>}, {pipeline_mode = #tpu.pipeline_mode<synchronous>, transform_indices = @transform_6, window_bounds = array<i64: 1, 72>}, {transform_indices = @transform_7, window_bounds = array<i64: 64, 144>}, {transform_indices = @transform_8, window_bounds = array<i64: 64, 72>}]} {
    %c0 = arith.constant 0 : index
    %c0_0 = arith.constant 0 : index
    %0 = vector.load %arg1[%c0, %c0_0] : memref<64x48xf32, #tpu.memory_space<vmem>>, vector<64x48xf32>
    %c0_1 = arith.constant 0 : index
    %c0_2 = arith.constant 0 : index
    %1 = vector.load %arg2[%c0_1, %c0_2] : memref<1x48xf32, #tpu.memory_space<vmem>>, vector<1x48xf32>
    %c0_3 = arith.constant 0 : index
    %c0_4 = arith.constant 0 : index
    %2 = vector.load %arg3[%c0_3, %c0_4] : memref<1x48xf32, #tpu.memory_space<vmem>>, vector<1x48xf32>
    %cst = arith.constant dense<0.000000e+00> : vector<64xf32>
    %3 = vector.multi_reduction <add>, %0, %cst [1] : vector<64x48xf32> to vector<64xf32>
    %4 = vector.shape_cast %3 : vector<64xf32> to vector<64x1xf32>
    %cst_5 = arith.constant 4.800000e+01 : f32
    %5 = vector.broadcast %cst_5 : f32 to vector<64x1xf32>
    %6 = arith.divf %4, %5 : vector<64x1xf32>
    %7 = vector.broadcast %6 : vector<64x1xf32> to vector<64x48xf32>
    %8 = arith.subf %0, %7 : vector<64x48xf32>
    %9 = arith.mulf %8, %8 : vector<64x48xf32>
    %cst_6 = arith.constant dense<0.000000e+00> : vector<64xf32>
    %10 = vector.multi_reduction <add>, %9, %cst_6 [1] : vector<64x48xf32> to vector<64xf32>
    %11 = vector.shape_cast %10 : vector<64xf32> to vector<64x1xf32>
    %cst_7 = arith.constant 4.800000e+01 : f32
    %12 = vector.broadcast %cst_7 : f32 to vector<64x1xf32>
    %13 = arith.divf %11, %12 : vector<64x1xf32>
    %cst_8 = arith.constant 9.99999997E-7 : f32
    %14 = vector.broadcast %cst_8 : f32 to vector<64x1xf32>
    %15 = arith.addf %13, %14 : vector<64x1xf32>
    %16 = math.rsqrt %15 : vector<64x1xf32>
    %17 = vector.broadcast %16 : vector<64x1xf32> to vector<64x48xf32>
    %18 = arith.mulf %8, %17 : vector<64x48xf32>
    %19 = vector.broadcast %1 : vector<1x48xf32> to vector<64x48xf32>
    %20 = arith.mulf %18, %19 : vector<64x48xf32>
    %21 = vector.broadcast %2 : vector<1x48xf32> to vector<64x48xf32>
    %22 = arith.addf %20, %21 : vector<64x48xf32>
    %23 = arith.truncf %22 : vector<64x48xf32> to vector<64x48xbf16>
    %c0_9 = arith.constant 0 : index
    %c0_10 = arith.constant 0 : index
    %24 = vector.load %arg4[%c0_9, %c0_10] : memref<48x144xbf16, #tpu.memory_space<vmem>>, vector<48x144xbf16>
    %cst_11 = arith.constant dense<0.000000e+00> : vector<64x144xf32>
    %25 = tpu.matmul %23, %24, %cst_11 {dimension_numbers = #tpu.dot_dimension_numbers<[1], [0], [0], [1], [0, 0, 1, 1], [], []>} : vector<64x48xbf16>, vector<48x144xbf16>, vector<64x144xf32> -> vector<64x144xf32>
    %c0_12 = arith.constant 0 : index
    %c0_13 = arith.constant 0 : index
    %26 = vector.load %arg5[%c0_12, %c0_13] : memref<1x144xf32, #tpu.memory_space<vmem>>, vector<1x144xf32>
    %27 = vector.broadcast %26 : vector<1x144xf32> to vector<64x144xf32>
    %28 = arith.addf %25, %27 : vector<64x144xf32>
    %c0_14 = arith.constant 0 : index
    %c0_15 = arith.constant 0 : index
    %29 = vector.load %arg8[%c0_14, %c0_15] : memref<64x144xf32, #tpu.memory_space<vmem>>, vector<64x144xf32>
    tpu.vector_store %arg8[%c0_14, %c0_15], %28 {strides = array<i32>} : memref<64x144xf32, #tpu.memory_space<vmem>>, vector<64x144xf32>,
    %c0_16 = arith.constant 0 : index
    %c0_17 = arith.constant 0 : index
    %30 = vector.load %arg6[%c0_16, %c0_17] : memref<48x72xbf16, #tpu.memory_space<vmem>>, vector<48x72xbf16>
    %cst_18 = arith.constant dense<0.000000e+00> : vector<64x72xf32>
    %31 = tpu.matmul %23, %30, %cst_18 {dimension_numbers = #tpu.dot_dimension_numbers<[1], [0], [0], [1], [0, 0, 1, 1], [], []>} : vector<64x48xbf16>, vector<48x72xbf16>, vector<64x72xf32> -> vector<64x72xf32>
    %c0_19 = arith.constant 0 : index
    %c0_20 = arith.constant 0 : index
    %32 = vector.load %arg7[%c0_19, %c0_20] : memref<1x72xf32, #tpu.memory_space<vmem>>, vector<1x72xf32>
    %33 = vector.broadcast %32 : vector<1x72xf32> to vector<64x72xf32>
    %34 = arith.addf %31, %33 : vector<64x72xf32>
    %c0_21 = arith.constant 0 : index
    %c0_22 = arith.constant 0 : index
    %35 = vector.load %arg9[%c0_21, %c0_22] : memref<64x72xf32, #tpu.memory_space<vmem>>, vector<64x72xf32>
    tpu.vector_store %arg9[%c0_21, %c0_22], %34 {strides = array<i32>} : memref<64x72xf32, #tpu.memory_space<vmem>>, vector<64x72xf32>,
    return
  }
  func.func @transform_0(%arg0: i32) -> (i32, i32) {
    %c0_i32 = arith.constant 0 : i32
    %c0_i32_0 = arith.constant 0 : i32
    return %arg0, %c0_i32 : i32, i32
  }
  func.func @transform_1(%arg0: i32) -> (i32, i32) {
    %c0_i32 = arith.constant 0 : i32
    %c0_i32_0 = arith.constant 0 : i32
    %c0_i32_1 = arith.constant 0 : i32
    return %c0_i32, %c0_i32_0 : i32, i32
  }
  func.func @transform_2(%arg0: i32) -> (i32, i32) {
    %c0_i32 = arith.constant 0 : i32
    %c0_i32_0 = arith.constant 0 : i32
    %c0_i32_1 = arith.constant 0 : i32
    return %c0_i32, %c0_i32_0 : i32, i32
  }
  func.func @transform_3(%arg0: i32) -> (i32, i32) {
    %c0_i32 = arith.constant 0 : i32
    %c0_i32_0 = arith.constant 0 : i32
    %c0_i32_1 = arith.constant 0 : i32
    return %c0_i32, %c0_i32_0 : i32, i32
  }
  func.func @transform_4(%arg0: i32) -> (i32, i32) {
    %c0_i32 = arith.constant 0 : i32
    %c0_i32_0 = arith.constant 0 : i32
    %c0_i32_1 = arith.constant 0 : i32
    return %c0_i32, %c0_i32_0 : i32, i32
  }
  func.func @transform_5(%arg0: i32) -> (i32, i32) {
    %c0_i32 = arith.constant 0 : i32
    %c0_i32_0 = arith.constant 0 : i32
    %c0_i32_1 = arith.constant 0 : i32
    return %c0_i32, %c0_i32_0 : i32, i32
  }
  func.func @transform_6(%arg0: i32) -> (i32, i32) {
    %c0_i32 = arith.constant 0 : i32
    %c0_i32_0 = arith.constant 0 : i32
    %c0_i32_1 = arith.constant 0 : i32
    return %c0_i32, %c0_i32_0 : i32, i32
  }
  func.func @transform_7(%arg0: i32) -> (i32, i32) {
    %c0_i32 = arith.constant 0 : i32
    %c0_i32_0 = arith.constant 0 : i32
    return %arg0, %c0_i32 : i32, i32
  }
  func.func @transform_8(%arg0: i32) -> (i32, i32) {
    %c0_i32 = arith.constant 0 : i32
    %c0_i32_0 = arith.constant 0 : i32
    return %arg0, %c0_i32 : i32, i32
  }
}

module attributes {stable_mosaic.version = 11 : i64} {
  func.func @_ln_proj_kernel(%arg0: i32, %arg1: memref<256x48xf32, #tpu.memory_space<vmem>>, %arg2: memref<1x48xf32, #tpu.memory_space<vmem>>, %arg3: memref<1x48xf32, #tpu.memory_space<vmem>>, %arg4: memref<48x48xbf16, #tpu.memory_space<vmem>>, %arg5: memref<1x48xf32, #tpu.memory_space<vmem>>, %arg6: memref<256x48xbf16, #tpu.memory_space<vmem>>) attributes {dimension_semantics = [#tpu.dimension_semantics<parallel>], iteration_bounds = array<i64: 3>, scalar_prefetch = 0 : i64, scratch_operands = 0 : i64, tpu.core_type = #tpu.core_type<tc>, window_params = [{transform_indices = @transform_0, window_bounds = array<i64: 256, 48>}, {pipeline_mode = #tpu.pipeline_mode<synchronous>, transform_indices = @transform_1, window_bounds = array<i64: 1, 48>}, {pipeline_mode = #tpu.pipeline_mode<synchronous>, transform_indices = @transform_2, window_bounds = array<i64: 1, 48>}, {pipeline_mode = #tpu.pipeline_mode<synchronous>, transform_indices = @transform_3, window_bounds = array<i64: 48, 48>}, {pipeline_mode = #tpu.pipeline_mode<synchronous>, transform_indices = @transform_4, window_bounds = array<i64: 1, 48>}, {transform_indices = @transform_5, window_bounds = array<i64: 256, 48>}]} {
    %c0 = arith.constant 0 : index
    %c0_0 = arith.constant 0 : index
    %0 = vector.load %arg1[%c0, %c0_0] : memref<256x48xf32, #tpu.memory_space<vmem>>, vector<256x48xf32>
    %c0_1 = arith.constant 0 : index
    %c0_2 = arith.constant 0 : index
    %1 = vector.load %arg2[%c0_1, %c0_2] : memref<1x48xf32, #tpu.memory_space<vmem>>, vector<1x48xf32>
    %c0_3 = arith.constant 0 : index
    %c0_4 = arith.constant 0 : index
    %2 = vector.load %arg3[%c0_3, %c0_4] : memref<1x48xf32, #tpu.memory_space<vmem>>, vector<1x48xf32>
    %cst = arith.constant dense<0.000000e+00> : vector<256xf32>
    %3 = vector.multi_reduction <add>, %0, %cst [1] : vector<256x48xf32> to vector<256xf32>
    %4 = vector.shape_cast %3 : vector<256xf32> to vector<256x1xf32>
    %cst_5 = arith.constant 4.800000e+01 : f32
    %5 = vector.broadcast %cst_5 : f32 to vector<256x1xf32>
    %6 = arith.divf %4, %5 : vector<256x1xf32>
    %7 = vector.broadcast %6 : vector<256x1xf32> to vector<256x48xf32>
    %8 = arith.subf %0, %7 : vector<256x48xf32>
    %9 = arith.mulf %8, %8 : vector<256x48xf32>
    %cst_6 = arith.constant dense<0.000000e+00> : vector<256xf32>
    %10 = vector.multi_reduction <add>, %9, %cst_6 [1] : vector<256x48xf32> to vector<256xf32>
    %11 = vector.shape_cast %10 : vector<256xf32> to vector<256x1xf32>
    %cst_7 = arith.constant 4.800000e+01 : f32
    %12 = vector.broadcast %cst_7 : f32 to vector<256x1xf32>
    %13 = arith.divf %11, %12 : vector<256x1xf32>
    %cst_8 = arith.constant 9.99999997E-7 : f32
    %14 = vector.broadcast %cst_8 : f32 to vector<256x1xf32>
    %15 = arith.addf %13, %14 : vector<256x1xf32>
    %16 = math.rsqrt %15 : vector<256x1xf32>
    %17 = vector.broadcast %16 : vector<256x1xf32> to vector<256x48xf32>
    %18 = arith.mulf %8, %17 : vector<256x48xf32>
    %19 = vector.broadcast %1 : vector<1x48xf32> to vector<256x48xf32>
    %20 = arith.mulf %18, %19 : vector<256x48xf32>
    %21 = vector.broadcast %2 : vector<1x48xf32> to vector<256x48xf32>
    %22 = arith.addf %20, %21 : vector<256x48xf32>
    %23 = arith.truncf %22 : vector<256x48xf32> to vector<256x48xbf16>
    %c0_9 = arith.constant 0 : index
    %c0_10 = arith.constant 0 : index
    %24 = vector.load %arg4[%c0_9, %c0_10] : memref<48x48xbf16, #tpu.memory_space<vmem>>, vector<48x48xbf16>
    %cst_11 = arith.constant dense<0.000000e+00> : vector<256x48xf32>
    %25 = tpu.matmul %23, %24, %cst_11 {dimension_numbers = #tpu.dot_dimension_numbers<[1], [0], [0], [1], [0, 0, 1, 1], [], []>} : vector<256x48xbf16>, vector<48x48xbf16>, vector<256x48xf32> -> vector<256x48xf32>
    %c0_12 = arith.constant 0 : index
    %c0_13 = arith.constant 0 : index
    %26 = vector.load %arg5[%c0_12, %c0_13] : memref<1x48xf32, #tpu.memory_space<vmem>>, vector<1x48xf32>
    %27 = vector.broadcast %26 : vector<1x48xf32> to vector<256x48xf32>
    %28 = arith.addf %25, %27 : vector<256x48xf32>
    %29 = arith.truncf %28 : vector<256x48xf32> to vector<256x48xbf16>
    %c0_14 = arith.constant 0 : index
    %c0_15 = arith.constant 0 : index
    %30 = vector.load %arg6[%c0_14, %c0_15] : memref<256x48xbf16, #tpu.memory_space<vmem>>, vector<256x48xbf16>
    tpu.vector_store %arg6[%c0_14, %c0_15], %29 {strides = array<i32>} : memref<256x48xbf16, #tpu.memory_space<vmem>>, vector<256x48xbf16>,
    return
  }
  func.func @transform_0(%arg0: i32) -> (i32, i32) {
    %c0_i32 = arith.constant 0 : i32
    %c0_i32_0 = arith.constant 0 : i32
    return %arg0, %c0_i32 : i32, i32
  }
  func.func @transform_1(%arg0: i32) -> (i32, i32) {
    %c0_i32 = arith.constant 0 : i32
    %c0_i32_0 = arith.constant 0 : i32
    %c0_i32_1 = arith.constant 0 : i32
    return %c0_i32, %c0_i32_0 : i32, i32
  }
  func.func @transform_2(%arg0: i32) -> (i32, i32) {
    %c0_i32 = arith.constant 0 : i32
    %c0_i32_0 = arith.constant 0 : i32
    %c0_i32_1 = arith.constant 0 : i32
    return %c0_i32, %c0_i32_0 : i32, i32
  }
  func.func @transform_3(%arg0: i32) -> (i32, i32) {
    %c0_i32 = arith.constant 0 : i32
    %c0_i32_0 = arith.constant 0 : i32
    %c0_i32_1 = arith.constant 0 : i32
    return %c0_i32, %c0_i32_0 : i32, i32
  }
  func.func @transform_4(%arg0: i32) -> (i32, i32) {
    %c0_i32 = arith.constant 0 : i32
    %c0_i32_0 = arith.constant 0 : i32
    %c0_i32_1 = arith.constant 0 : i32
    return %c0_i32, %c0_i32_0 : i32, i32
  }
  func.func @transform_5(%arg0: i32) -> (i32, i32) {
    %c0_i32 = arith.constant 0 : i32
    %c0_i32_0 = arith.constant 0 : i32
    return %arg0, %c0_i32 : i32, i32
  }
}

module attributes {stable_mosaic.version = 11 : i64} {
  func.func @_out_residual_kernel(%arg0: i32, %arg1: memref<64x48xbf16, #tpu.memory_space<vmem>>, %arg2: memref<48x48xbf16, #tpu.memory_space<vmem>>, %arg3: memref<1x48xf32, #tpu.memory_space<vmem>>, %arg4: memref<64x48xf32, #tpu.memory_space<vmem>>, %arg5: memref<1x48xf32, #tpu.memory_space<vmem>>, %arg6: memref<1x48xf32, #tpu.memory_space<vmem>>, %arg7: memref<1x48xf32, #tpu.memory_space<vmem>>, %arg8: memref<64x48xf32, #tpu.memory_space<vmem>>) attributes {dimension_semantics = [#tpu.dimension_semantics<parallel>], iteration_bounds = array<i64: 2>, scalar_prefetch = 0 : i64, scratch_operands = 0 : i64, tpu.core_type = #tpu.core_type<tc>, window_params = [{transform_indices = @transform_0, window_bounds = array<i64: 64, 48>}, {pipeline_mode = #tpu.pipeline_mode<synchronous>, transform_indices = @transform_1, window_bounds = array<i64: 48, 48>}, {pipeline_mode = #tpu.pipeline_mode<synchronous>, transform_indices = @transform_2, window_bounds = array<i64: 1, 48>}, {transform_indices = @transform_3, window_bounds = array<i64: 64, 48>}, {pipeline_mode = #tpu.pipeline_mode<synchronous>, transform_indices = @transform_4, window_bounds = array<i64: 1, 48>}, {pipeline_mode = #tpu.pipeline_mode<synchronous>, transform_indices = @transform_5, window_bounds = array<i64: 1, 48>}, {pipeline_mode = #tpu.pipeline_mode<synchronous>, transform_indices = @transform_6, window_bounds = array<i64: 1, 48>}, {transform_indices = @transform_7, window_bounds = array<i64: 64, 48>}]} {
    %c0 = arith.constant 0 : index
    %c0_0 = arith.constant 0 : index
    %0 = vector.load %arg4[%c0, %c0_0] : memref<64x48xf32, #tpu.memory_space<vmem>>, vector<64x48xf32>
    %c0_1 = arith.constant 0 : index
    %c0_2 = arith.constant 0 : index
    %1 = vector.load %arg5[%c0_1, %c0_2] : memref<1x48xf32, #tpu.memory_space<vmem>>, vector<1x48xf32>
    %c0_3 = arith.constant 0 : index
    %c0_4 = arith.constant 0 : index
    %2 = vector.load %arg6[%c0_3, %c0_4] : memref<1x48xf32, #tpu.memory_space<vmem>>, vector<1x48xf32>
    %cst = arith.constant dense<0.000000e+00> : vector<64xf32>
    %3 = vector.multi_reduction <add>, %0, %cst [1] : vector<64x48xf32> to vector<64xf32>
    %4 = vector.shape_cast %3 : vector<64xf32> to vector<64x1xf32>
    %cst_5 = arith.constant 4.800000e+01 : f32
    %5 = vector.broadcast %cst_5 : f32 to vector<64x1xf32>
    %6 = arith.divf %4, %5 : vector<64x1xf32>
    %7 = vector.broadcast %6 : vector<64x1xf32> to vector<64x48xf32>
    %8 = arith.subf %0, %7 : vector<64x48xf32>
    %9 = arith.mulf %8, %8 : vector<64x48xf32>
    %cst_6 = arith.constant dense<0.000000e+00> : vector<64xf32>
    %10 = vector.multi_reduction <add>, %9, %cst_6 [1] : vector<64x48xf32> to vector<64xf32>
    %11 = vector.shape_cast %10 : vector<64xf32> to vector<64x1xf32>
    %cst_7 = arith.constant 4.800000e+01 : f32
    %12 = vector.broadcast %cst_7 : f32 to vector<64x1xf32>
    %13 = arith.divf %11, %12 : vector<64x1xf32>
    %cst_8 = arith.constant 9.99999997E-7 : f32
    %14 = vector.broadcast %cst_8 : f32 to vector<64x1xf32>
    %15 = arith.addf %13, %14 : vector<64x1xf32>
    %16 = math.rsqrt %15 : vector<64x1xf32>
    %17 = vector.broadcast %16 : vector<64x1xf32> to vector<64x48xf32>
    %18 = arith.mulf %8, %17 : vector<64x48xf32>
    %19 = vector.broadcast %1 : vector<1x48xf32> to vector<64x48xf32>
    %20 = arith.mulf %18, %19 : vector<64x48xf32>
    %21 = vector.broadcast %2 : vector<1x48xf32> to vector<64x48xf32>
    %22 = arith.addf %20, %21 : vector<64x48xf32>
    %c0_9 = arith.constant 0 : index
    %c0_10 = arith.constant 0 : index
    %23 = vector.load %arg1[%c0_9, %c0_10] : memref<64x48xbf16, #tpu.memory_space<vmem>>, vector<64x48xbf16>
    %c0_11 = arith.constant 0 : index
    %c0_12 = arith.constant 0 : index
    %24 = vector.load %arg2[%c0_11, %c0_12] : memref<48x48xbf16, #tpu.memory_space<vmem>>, vector<48x48xbf16>
    %cst_13 = arith.constant dense<0.000000e+00> : vector<64x48xf32>
    %25 = tpu.matmul %23, %24, %cst_13 {dimension_numbers = #tpu.dot_dimension_numbers<[1], [0], [0], [1], [0, 0, 1, 1], [], []>} : vector<64x48xbf16>, vector<48x48xbf16>, vector<64x48xf32> -> vector<64x48xf32>
    %c0_14 = arith.constant 0 : index
    %c0_15 = arith.constant 0 : index
    %26 = vector.load %arg3[%c0_14, %c0_15] : memref<1x48xf32, #tpu.memory_space<vmem>>, vector<1x48xf32>
    %27 = vector.broadcast %26 : vector<1x48xf32> to vector<64x48xf32>
    %28 = arith.addf %25, %27 : vector<64x48xf32>
    %29 = arith.addf %28, %22 : vector<64x48xf32>
    %c0_16 = arith.constant 0 : index
    %c0_17 = arith.constant 0 : index
    %30 = vector.load %arg7[%c0_16, %c0_17] : memref<1x48xf32, #tpu.memory_space<vmem>>, vector<1x48xf32>
    %31 = vector.broadcast %30 : vector<1x48xf32> to vector<64x48xf32>
    %32 = arith.mulf %31, %29 : vector<64x48xf32>
    %33 = arith.addf %0, %32 : vector<64x48xf32>
    %c0_18 = arith.constant 0 : index
    %c0_19 = arith.constant 0 : index
    %34 = vector.load %arg8[%c0_18, %c0_19] : memref<64x48xf32, #tpu.memory_space<vmem>>, vector<64x48xf32>
    tpu.vector_store %arg8[%c0_18, %c0_19], %33 {strides = array<i32>} : memref<64x48xf32, #tpu.memory_space<vmem>>, vector<64x48xf32>,
    return
  }
  func.func @transform_0(%arg0: i32) -> (i32, i32) {
    %c0_i32 = arith.constant 0 : i32
    %c0_i32_0 = arith.constant 0 : i32
    return %arg0, %c0_i32 : i32, i32
  }
  func.func @transform_1(%arg0: i32) -> (i32, i32) {
    %c0_i32 = arith.constant 0 : i32
    %c0_i32_0 = arith.constant 0 : i32
    %c0_i32_1 = arith.constant 0 : i32
    return %c0_i32, %c0_i32_0 : i32, i32
  }
  func.func @transform_2(%arg0: i32) -> (i32, i32) {
    %c0_i32 = arith.constant 0 : i32
    %c0_i32_0 = arith.constant 0 : i32
    %c0_i32_1 = arith.constant 0 : i32
    return %c0_i32, %c0_i32_0 : i32, i32
  }
  func.func @transform_3(%arg0: i32) -> (i32, i32) {
    %c0_i32 = arith.constant 0 : i32
    %c0_i32_0 = arith.constant 0 : i32
    return %arg0, %c0_i32 : i32, i32
  }
  func.func @transform_4(%arg0: i32) -> (i32, i32) {
    %c0_i32 = arith.constant 0 : i32
    %c0_i32_0 = arith.constant 0 : i32
    %c0_i32_1 = arith.constant 0 : i32
    return %c0_i32, %c0_i32_0 : i32, i32
  }
  func.func @transform_5(%arg0: i32) -> (i32, i32) {
    %c0_i32 = arith.constant 0 : i32
    %c0_i32_0 = arith.constant 0 : i32
    %c0_i32_1 = arith.constant 0 : i32
    return %c0_i32, %c0_i32_0 : i32, i32
  }
  func.func @transform_6(%arg0: i32) -> (i32, i32) {
    %c0_i32 = arith.constant 0 : i32
    %c0_i32_0 = arith.constant 0 : i32
    %c0_i32_1 = arith.constant 0 : i32
    return %c0_i32, %c0_i32_0 : i32, i32
  }
  func.func @transform_7(%arg0: i32) -> (i32, i32) {
    %c0_i32 = arith.constant 0 : i32
    %c0_i32_0 = arith.constant 0 : i32
    return %arg0, %c0_i32 : i32, i32
  }
}

</mosaic_0001>

<bundles_post_ra>
// kernel: injector_forward.3
= control target key start
LH: loop header
LB: loop body
LE: loop exit
PB: predicated region body
PF: predicated region fallthrough
CT: control target
= control target key end

     0   :  { %14 = vsyncpa [#allocation3], 0  ;;  %s1769_s0 = inlined_call_operand.vmem [shape: f32[128,48], index: 0, kind: input, shape index: {}]   ;;  %s1770_s1 = inlined_call_operand.hbm [shape: f32[1,48], index: 1, kind: input, shape index: {}]   ;;  %s1771_s2 = inlined_call_operand.hbm [shape: f32[1,48], index: 2, kind: input, shape index: {}]   ;;  %s1772_s3 = inlined_call_operand.hbm [shape: bf16[48,144], index: 3, kind: input, shape index: {}]   ;;  %s1773_s4 = inlined_call_operand.hbm [shape: f32[1,144], index: 4, kind: input, shape index: {}]   ;;  %s1774_s5 = inlined_call_operand.hbm [shape: bf16[48,72], index: 5, kind: input, shape index: {}]   ;;  %s1775_s6 = inlined_call_operand.hbm [shape: f32[1,72], index: 6, kind: input, shape index: {}]   ;;  %s1776_s7 = inlined_call_operand.vmem [shape: f32[128,144], index: 7, kind: output, shape index: {0}]   ;;  %s1777_s8 = inlined_call_operand.vmem [shape: f32[128,72], index: 8, kind: output, shape index: {1}]  }
   0x1   :  { %15 = vsyncpa [#allocation5], 0 }
   0x2   :  { %16 = vsyncpa [#allocation8], 0 }
   0x3   :  { %17 = vsyncpa [#allocation11], 0  ;;  %s1433_s27 = smov 0  }
   0x4 LB: > { %s256_s30 = sshll.u32 %s1771_s2, 4  ;;  %s985_s9 = sadd.s32 4294967295, %s1375_s27   ;;  %s1375_s27 = sphi %s1433_s27, %s23_s27   ;;  %s257_s30 = int_to_ptr.hbm [resolvable:$true] %s256_s30 }
   0x5   : > { %p987_p0 = scmp.ge.s32.totalorder %s1375_s27, 1  ;;  %p232_p1 = scmp.lt.s32.totalorder %s1375_s27, 3 }
   0x6   : > { %p1446_p2 = scmp.eq.s32.totalorder %s985_s9, 0  ;;  %s1377_s12 = smov [#allocation4]  }
   0x7   : > { %p1450_p3 = pnand %p987_p0, %p232_p1  ;;  %s258_s13 = sshll.u32 %s1377_s12, 4  ;;  %s259_s13 = int_to_ptr.vmem [resolvable:$true] %s258_s13 }
   0x8   : > { %s282_s16 = sshll.u32 %s1773_s4, 4  ;;  %s244_s19 = sshll.u32 %s1770_s1, 4  ;;  %s283_s16 = int_to_ptr.hbm [resolvable:$true] %s282_s16  ;;  %s245_s19 = int_to_ptr.hbm [resolvable:$true] %s244_s19 }
   0x9   : > { %p1102_p4 = pneg %p1450_p3  ;;  %s1378_s21 = smov [#allocation7]  }
   0xa   : > { %s284_s22 = sshll.u32 %s1378_s21, 4  ;;  %s1379_s23 = smov [#allocation2]   ;;  %s285_s22 = int_to_ptr.vmem [resolvable:$true] %s284_s22 }
   0xb   : > { %p1464_p5 = pnand %p1446_p2, %p1102_p4  ;;  %s246_s24 = sshll.u32 %s1379_s23, 4  ;;  %s247_s24 = int_to_ptr.vmem [resolvable:$true] %s246_s24 }
   0xc   : > { %s267_s28 = sshll.u32 %s1772_s3, 4  ;;  %s1380_s29 = smov [#allocation6]   ;;  %s268_s28 = int_to_ptr.hbm [resolvable:$true] %s267_s28 }
   0xd   : > { %1108 = dma.hbm_to_vmem [thread:$0]  (!%p1464_p5), %s257_s30, 16, %s259_s13, [#allocation5]  }
   0xe   : > { %1114 = dma.hbm_to_vmem [thread:$0]  (!%p1464_p5), %s283_s16, 32, %s285_s22, [#allocation8]  }
   0xf   : > { %1105 = dma.hbm_to_vmem [thread:$0]  (!%p1464_p5), %s245_s19, 16, %s247_s24, [#allocation3]  }
  0x10   : > { %s269_s12 = sshll.u32 %s1380_s29, 4  ;;  %s293_s30 = sshll.u32 %s1774_s5, 4  ;;  %s270_s12 = int_to_ptr.vmem [resolvable:$true] %s269_s12  ;;  %s294_s30 = int_to_ptr.hbm [resolvable:$true] %s293_s30 }
  0x11   : > { %s1381_s13 = smov 128   ;;  %s1382_s16 = smov 8  }
  0x12   : > { %1111 = dma.hbm_to_vmem [thread:$0]  (!%p1464_p5), %s268_s28, 768, %s270_s12, [#allocation5], %s1381_s13, %s1381_s13, %s1382_s16  }
  0x13   : > { %s1383_s17 = smov [#allocation9]   ;;  %s1384_s21 = smov 64  }
  0x14   : > { %s295_s18 = sshll.u32 %s1383_s17, 4  ;;  %s1385_s22 = smov 4   ;;  %s296_s18 = int_to_ptr.vmem [resolvable:$true] %s295_s18 }
  0x15   : > { %1117 = dma.hbm_to_vmem [thread:$0]  (!%p1464_p5), %s294_s30, 384, %s296_s18, [#allocation8], %s1384_s21, %s1384_s21, %s1385_s22  }
  0x16   : > { %s308_s24 = sshll.u32 %s1775_s6, 4  ;;  %s1386_s25 = smov [#allocation10]   ;;  %s309_s24 = int_to_ptr.hbm [resolvable:$true] %s308_s24 }
  0x17   : > { %s310_s26 = sshll.u32 %s1386_s25, 4  ;;  %332 = sbr.rel (%p1450_p3) target bundleno = 496 (0x1f0), region = 48  ;;  %s311_s26 = int_to_ptr.vmem [resolvable:$true] %s310_s26 }
  0x18   : > { %1120 = dma.hbm_to_vmem [thread:$0]  (!%p1464_p5), %s309_s24, 16, %s311_s26, [#allocation11]  }
  0x1c   : > { %1358 = dma.done.wait (%p1446_p2), [#allocation3], 16  }
  0x1d   : > { %1360 = vsyncadd (%p1446_p2), [#allocation3], 4294967280 }
  0x1e   : > { %1362 = dma.done.wait (%p1446_p2), [#allocation5], 784  }
  0x1f   : > { %1364 = vsyncadd (%p1446_p2), [#allocation5], 4294966512 }
  0x20   : > { %1366 = dma.done.wait (%p1446_p2), [#allocation8], 416  }
  0x21   : > { %1368 = vsyncadd (%p1446_p2), [#allocation8], 4294966880 }
  0x22   : > { %1370 = dma.done.wait (%p1446_p2), [#allocation11], 16  }
  0x23   : > { %1372 = vsyncadd (%p1446_p2), [#allocation11], 4294967280  ;;  %s1002_s11 = sshll.u32 %s985_s9, 3  ;;  %vm428_vm0 = vcmask 392192   ;;  %v1387_v16 = vmov 48.0  }
  0x24   : > { %p399_p6 = scmp.lt.s32.totalorder %s1002_s11, 15  ;;  %1155 = vrcp.f32 %v1387_v16  ;;  %v1027_v63 = vld [vmem:[#allocation6 + $0x20] sm:$0xf] }
  0x26   : > { %s1786_s11 = smov (!%p399_p6, %s1002_s11), 15 }
  0x27   : > { %s1003_s20 = sshll.u32 %s1786_s11, 3  ;;  %s1059_s9 = sshll.u32 %s1786_s11, 4 }
  0x28   : > { %s402_s12 = scalar_lea.vmem %s1769_s0, %s1003_s20  ;;  %s1691_s15 = scalar_lea.vmem %s1776_s7, %s1059_s9 }
  0x29   : > { %v422_v0 = vld [vmem:[%s402_s12 + $0x20] sm:$0xff]  ;;  %v420_v1 = vld [vmem:[%s402_s12 + $0x10] sm:$0xff]  ;;  %v423_v6 = vld [vmem:[%s402_s12 + $0x28] sm:$0xff]  ;;  %s1705_s16 = scalar_lea.vmem %s1777_s8, %s1003_s20 }
  0x2a   : > { %v418_v2 = vld [vmem:[%s402_s12] sm:$0xff]  ;;  %v441_v3 = vsel %vm428_vm0, %v422_v0, 0.0  ;;  %v435_v4 = vsel %vm428_vm0, %v420_v1, 0.0  ;;  %v421_v7 = vld [vmem:[%s402_s12 + $0x18] sm:$0xff]  ;;  %v419_v8 = vld [vmem:[%s402_s12 + $0x8] sm:$0xff]  ;;  %v444_v9 = vsel %vm428_vm0, %v423_v6, 0.0  ;;  %v1156_v17 = vpop.eup %1155 }
  0x2b   : > { %v429_v5 = vsel %vm428_vm0, %v418_v2, 0.0  ;;  %442 = vadd.xlane.f32.xlu2 %v441_v3  ;;  %436 = vadd.xlane.f32.xlu0 %v435_v4  ;;  %v438_v10 = vsel %vm428_vm0, %v421_v7, 0.0  ;;  %v432_v11 = vsel %vm428_vm0, %v419_v8, 0.0  ;;  %v424_v12 = vld [vmem:[%s402_s12 + $0x30] sm:$0xff]  ;;  %v425_v13 = vld [vmem:[%s402_s12 + $0x38] sm:$0xff]  ;;  %v454_v18 = vmul.f32 48.0, %v1156_v17 }
  0x2c   : > { %430 = vadd.xlane.f32.xlu1 %v429_v5  ;;  %v447_v14 = vsel %vm428_vm0, %v424_v12, 0.0  ;;  %v450_v15 = vsel %vm428_vm0, %v425_v13, 0.0  ;;  %vm458_vm1 = vweird.f32 %v1156_v17  ;;  %v1029_v3 = vld [vmem:[#allocation6 + $0x28] sm:$0xf0]  ;;  %v1575_v4 = vld [vmem:[#allocation9 + $0x10] sm:$0xff] }
  0x2d   : > { %v455_v19 = vsub.f32 1.0, %v454_v18  ;;  %1075 = vmatpush.bf16.msra.mxu2 %v1575_v4 }
  0x2f   : > { %v456_v20 = vmul.f32 %v1156_v17, %v455_v19  ;;  %v1011_v19 = vld [vmem:[#allocation6] sm:$0xf] }
  0x31   : > { %v457_v21 = vadd.f32 %v1156_v17, %v456_v20  ;;  %v1061_v20 = vld [vmem:[#allocation6 + $0x4] sm:$0xf0] }
  0x33   : > { %445 = vadd.xlane.f32.xlu2 %v444_v9  ;;  %439 = vadd.xlane.f32.xlu0 %v438_v10  ;;  %v1525_v22 = vsel %vm458_vm1, %v1156_v17, %v457_v21  ;;  %v1062_v9 = vld [vmem:[#allocation6 + $0x14] sm:$0xf]  ;;  %v1012_v21 = vor.u32 %v1061_v20, %v1011_v19  ;;  %v1619_v19 = vld [vmem:[#allocation2] ss:$0 sm:$0xff] }
  0x34   : > { %433 = vadd.xlane.f32.xlu1 %v432_v11 }
  0x3b   : > { %448 = vadd.xlane.f32.xlu0 %v447_v14  ;;  %v1579_v14 = vld [vmem:[#allocation9 + $0x8] sm:$0xff] }
  0x3c   : > { %451 = vadd.xlane.f32.xlu1 %v450_v15  ;;  %1076 = vmatpush.bf16.msra.mxu2 %v1579_v14 }
  0x9e   : > { %v443_v23 = vpop.xlane.xlu2 %442  ;;  %v437_v24 = vpop.xlane.xlu0 %436 }
  0x9f   : > { %v462_v25 = vmul.f32 %v1525_v22, %v437_v24  ;;  %v431_v26 = vpop.xlane.xlu1 %430  ;;  %v464_v36 = vmul.f32 %v1525_v22, %v443_v23  ;;  %v1060_v23 = vld [vmem:[#allocation6 + $0x4] sm:$0xf]  ;;  %v1013_v24 = vld [vmem:[#allocation6 + $0x8] sm:$0xf0] }
  0xa0   : > { %v460_v27 = vmul.f32 %v1525_v22, %v431_v26  ;;  %v1016_v26 = vor.u32 %v1060_v23, %v1013_v24 }
  0xa1   : > { %v1529_v28 = vsub.f32 %v420_v1, %v462_v25  ;;  %v1549_v44 = vsub.f32 %v422_v0, %v464_v36  ;;  %v1065_v0 = vld [vmem:[#allocation6 + $0x24] sm:$0xf0]  ;;  %v1064_v1 = vld [vmem:[#allocation6 + $0x24] sm:$0xf]  ;;  %v1583_v25 = vld [vmem:[#allocation9] sm:$0xff] }
  0xa2   : > { %v1531_v29 = vsub.f32 %v418_v2, %v460_v27  ;;  %v1028_v2 = vor.u32 %v1065_v0, %v1027_v63  ;;  %v1032_v5 = vor.u32 %v1064_v1, %v1029_v3  ;;  %1077 = vmatpush.bf16.msra.mxu2 %v1583_v25 }
  0xa3   : > { %v478_v30 = vmul.f32 %v1529_v28, %v1529_v28  ;;  %v480_v53 = vmul.f32 %v1549_v44, %v1549_v44 }
  0xa4   : > { %v476_v31 = vmul.f32 %v1531_v29, %v1531_v29  ;;  %697 = vmatpush.bf16.msra.mxu0 %v1028_v2  ;;  %1069 = vmatpush.bf16.msra.mxu3 %v1028_v2 }
  0xa5   : > { %v490_v32 = vsel %vm428_vm0, %v478_v30, 0.0  ;;  %v496_v57 = vsel %vm428_vm0, %v480_v53, 0.0  ;;  %1072 = vmatpush.bf16.msra.mxu1 %v1032_v5 }
  0xa6   : > { %v446_v33 = vpop.xlane.xlu2 %445  ;;  %491 = vadd.xlane.f32.xlu2 %v490_v32  ;;  %v440_v34 = vpop.xlane.xlu0 %439  ;;  %v484_v35 = vsel %vm428_vm0, %v476_v31, 0.0 }
  0xa7   : > { %v465_v37 = vmul.f32 %v1525_v22, %v446_v33  ;;  %v463_v38 = vmul.f32 %v1525_v22, %v440_v34  ;;  %485 = vadd.xlane.f32.xlu1 %v484_v35  ;;  %v434_v39 = vpop.xlane.xlu1 %433 }
  0xa8   : > { %v461_v40 = vmul.f32 %v1525_v22, %v434_v39 }
  0xa9   : > { %v1543_v41 = vsub.f32 %v423_v6, %v465_v37  ;;  %v1545_v42 = vsub.f32 %v421_v7, %v463_v38  ;;  %v1019_v7 = vld [vmem:[#allocation6 + $0x10] sm:$0xf] }
  0xaa   : > { %v1547_v43 = vsub.f32 %v419_v8, %v461_v40  ;;  %v1063_v8 = vld [vmem:[#allocation6 + $0x14] sm:$0xf0] }
  0xab   : > { %v479_v45 = vmul.f32 %v1545_v42, %v1545_v42  ;;  %v481_v46 = vmul.f32 %v1543_v41, %v1543_v41 }
  0xac   : > { %v477_v47 = vmul.f32 %v1547_v43, %v1547_v43 }
  0xad   : > { %v493_v48 = vsel %vm428_vm0, %v479_v45, 0.0  ;;  %v499_v49 = vsel %vm428_vm0, %v481_v46, 0.0 }
  0xae   : > { %494 = vadd.xlane.f32.xlu0 %v493_v48  ;;  %v449_v50 = vpop.xlane.xlu0 %448  ;;  %v487_v51 = vsel %vm428_vm0, %v477_v47, 0.0 }
  0xaf   : > { %v466_v52 = vmul.f32 %v1525_v22, %v449_v50  ;;  %500 = vadd.xlane.f32.xlu1 %v499_v49  ;;  %488 = vadd.xlane.f32.xlu2 %v487_v51  ;;  %v452_v54 = vpop.xlane.xlu1 %451 }
  0xb0   : > { %v467_v55 = vmul.f32 %v1525_v22, %v452_v54 }
  0xb1   : > { %v1564_v56 = vsub.f32 %v424_v12, %v466_v52  ;;  %v1020_v12 = vor.u32 %v1063_v8, %v1019_v7 }
  0xb2   : > { %v1569_v59 = vsub.f32 %v425_v13, %v467_v55  ;;  %v1021_v13 = vld [vmem:[#allocation6 + $0x18] sm:$0xf0] }
  0xb3   : > { %v482_v58 = vmul.f32 %v1564_v56, %v1564_v56  ;;  %v1024_v16 = vor.u32 %v1062_v9, %v1021_v13  ;;  %698 = vmatpush.bf16.msra.mxu0 %v1020_v12  ;;  %1070 = vmatpush.bf16.msra.mxu3 %v1020_v12 }
  0xb4   : > { %v483_v61 = vmul.f32 %v1569_v59, %v1569_v59 }
  0xb5   : > { %v502_v60 = vsel %vm428_vm0, %v482_v58, 0.0  ;;  %1073 = vmatpush.bf16.msra.mxu1 %v1024_v16 }
  0xb6   : > { %497 = vadd.xlane.f32.xlu0 %v496_v57  ;;  %v505_v62 = vsel %vm428_vm0, %v483_v61, 0.0 }
  0xb7   : > { %503 = vadd.xlane.f32.xlu2 %v502_v60  ;;  %699 = vmatpush.bf16.msra.mxu0 %v1012_v21 }
  0xb8   : > { %1071 = vmatpush.bf16.msra.mxu3 %v1012_v21 }
  0xb9   : > { %1074 = vmatpush.bf16.msra.mxu1 %v1016_v26 }
  0xbb   : > { %726 = vmatpush.bf16.msrb.mxu0 %v1032_v5 }
  0xbe   : > { %506 = vadd.xlane.f32.xlu0 %v505_v62 }
  0xbf   : > { %727 = vmatpush.bf16.msrb.mxu0 %v1024_v16 }
  0xc3   : > { %728 = vmatpush.bf16.msrb.mxu0 %v1016_v26 }
 0x119   : > { %v492_v6 = vpop.xlane.xlu2 %491 }
 0x11a   : > { %v510_v10 = vmul.f32 %v492_v6, %v1525_v22  ;;  %v486_v11 = vpop.xlane.xlu1 %485 }
 0x11b   : > { %v508_v15 = vmul.f32 %v486_v11, %v1525_v22 }
 0x11c   : > { %v518_v17 = vadd.f32 1e-06, %v510_v10 }
 0x11d   : > { %v516_v18 = vadd.f32 1e-06, %v508_v15 }
 0x11e   : > { %1157 = vrsqrt.f32 %v518_v17  ;;  %vm550_vm5 = vweird.f32 %v518_v17 }
 0x11f   : > { %1159 = vrsqrt.f32 %v516_v18  ;;  %vm530_vm3 = vweird.f32 %v516_v18 }
 0x121   : > { %v495_v27 = vpop.xlane.xlu0 %494 }
 0x122   : > { %v511_v30 = vmul.f32 %v495_v27, %v1525_v22  ;;  %v489_v31 = vpop.xlane.xlu2 %488  ;;  %v501_v32 = vpop.xlane.xlu1 %500 }
 0x123   : > { %v509_v33 = vmul.f32 %v489_v31, %v1525_v22  ;;  %v513_v34 = vmul.f32 %v501_v32, %v1525_v22 }
 0x124   : > { %v1158_v35 = vpop.eup %1157  ;;  %v519_v36 = vadd.f32 1e-06, %v511_v30 }
 0x125   : > { %v1160_v37 = vpop.eup %1159  ;;  %v545_v38 = vmul.f32 %v1158_v35, %v518_v17  ;;  %v1589_v39 = vadd.f32 1e-06, %v509_v33  ;;  %v1591_v40 = vadd.f32 1e-06, %v513_v34  ;;  %vm551_vm2 = vweird.f32 %v1158_v35 }
 0x126   : > { %v525_v45 = vmul.f32 %v1160_v37, %v516_v18  ;;  %1161 = vrsqrt.f32 %v519_v36  ;;  %vm531_vm4 = vweird.f32 %v1160_v37  ;;  %vm1601_vm6 = vmor %vm550_vm5, %vm551_vm2  ;;  %vm560_vm11 = vweird.f32 %v519_v36 }
 0x127   : > { %v546_v46 = vmul.f32 %v1158_v35, %v545_v38  ;;  %1163 = vrsqrt.f32 %v1589_v39  ;;  %vm532_vm7 = vmor %vm530_vm3, %vm531_vm4  ;;  %vm540_vm9 = vweird.f32 %v1589_v39  ;;  %vm580_vm14 = vweird.f32 %v1591_v40 }
 0x128   : > { %v526_v47 = vmul.f32 %v1160_v37, %v525_v45  ;;  %1165 = vrsqrt.f32 %v1591_v40 }
 0x129   : > { %v547_v48 = vmul.f32 0.5, %v546_v46  ;;  %v498_v49 = vpop.xlane.xlu0 %497 }
 0x12a   : > { %v527_v50 = vmul.f32 0.5, %v526_v47  ;;  %v512_v51 = vmul.f32 %v498_v49, %v1525_v22  ;;  %v504_v52 = vpop.xlane.xlu2 %503 }
 0x12b   : > { %v548_v53 = vsub.f32 1.5, %v547_v48  ;;  %v514_v58 = vmul.f32 %v504_v52, %v1525_v22 }
 0x12c   : > { %v1162_v54 = vpop.eup %1161  ;;  %v528_v55 = vsub.f32 1.5, %v527_v50  ;;  %v1596_v57 = vadd.f32 1e-06, %v512_v51 }
 0x12d   : > { %v1164_v60 = vpop.eup %1163  ;;  %v549_v61 = vmul.f32 %v1158_v35, %v548_v53  ;;  %v555_v62 = vmul.f32 %v1162_v54, %v519_v36  ;;  %v1612_v9 = vadd.f32 1e-06, %v514_v58  ;;  %vm561_vm8 = vweird.f32 %v1162_v54 }
 0x12e   : > { %v1599_v63 = vpop.eup %1165  ;;  %v529_v1 = vmul.f32 %v1160_v37, %v528_v55  ;;  %v535_v2 = vmul.f32 %v1164_v60, %v1589_v39  ;;  %1167 = vrsqrt.f32 %v1596_v57  ;;  %vm541_vm10 = vweird.f32 %v1164_v60  ;;  %vm562_vm12 = vmor %vm560_vm11, %vm561_vm8 }
 0x12f   : > { %v556_v3 = vmul.f32 %v1162_v54, %v555_v62  ;;  %v575_v5 = vmul.f32 %v1599_v63, %v1591_v40  ;;  %v553_v6 = vsel %vm1601_vm6, %v1158_v35, %v549_v61  ;;  %1169 = vrsqrt.f32 %v1612_v9  ;;  %vm542_vm13 = vmor %vm540_vm9, %vm541_vm10  ;;  %v1632_v35 = vld [vmem:[#allocation4] ss:$0 sm:$0xff] }
 0x130   : > { %v533_v7 = vsel %vm532_vm7, %v1160_v37, %v529_v1  ;;  %v536_v8 = vmul.f32 %v1164_v60, %v535_v2  ;;  %v606_v16 = vmul.f32 %v553_v6, %v1529_v28  ;;  %vm581_vm15 = vweird.f32 %v1599_v63 }
 0x131   : > { %v557_v10 = vmul.f32 0.5, %v556_v3  ;;  %v576_v11 = vmul.f32 %v1599_v63, %v575_v5  ;;  %v507_v12 = vpop.xlane.xlu0 %506  ;;  %v604_v17 = vmul.f32 %v533_v7, %v1531_v29  ;;  %vm570_vm1 = vweird.f32 %v1596_v57  ;;  %vm1644_vm3 = vmor %vm580_vm14, %vm581_vm15 }
 0x132   : > { %v537_v13 = vmul.f32 0.5, %v536_v8  ;;  %v515_v15 = vmul.f32 %v507_v12, %v1525_v22  ;;  %v617_v30 = vmul.f32 %v1619_v19, %v606_v16  ;;  %vm590_vm7 = vweird.f32 %v1612_v9 }
 0x133   : > { %v558_v18 = vsub.f32 1.5, %v557_v10  ;;  %v577_v23 = vmul.f32 0.5, %v576_v11  ;;  %v615_v34 = vmul.f32 %v1619_v19, %v604_v17  ;;  %vm751_vm11 = vcmask 130048  }
 0x134   : > { %v1168_v20 = vpop.eup %1167  ;;  %v538_v21 = vsub.f32 1.5, %v537_v13  ;;  %v1622_v24 = vadd.f32 1e-06, %v515_v15 }
 0x135   : > { %v559_v26 = vmul.f32 %v1162_v54, %v558_v18  ;;  %v565_v27 = vmul.f32 %v1168_v20, %v1596_v57  ;;  %v578_v33 = vsub.f32 1.5, %v577_v23  ;;  %v1170_v38 = vpop.eup %1169  ;;  %vm571_vm2 = vweird.f32 %v1168_v20  ;;  %v1698_v23 = vld [vmem:[#allocation10] ss:$0 sm:$0xff] }
 0x136   : > { %v539_v22 = vmul.f32 %v1164_v60, %v538_v21  ;;  %1171 = vrsqrt.f32 %v1622_v24  ;;  %v626_v48 = vadd.f32 %v1632_v35, %v615_v34  ;;  %v585_v51 = vmul.f32 %v1170_v38, %v1612_v9  ;;  %vm572_vm4 = vmor %vm570_vm1, %vm571_vm2 }
 0x137   : > { %v563_v28 = vsel %vm562_vm12, %v1162_v54, %v559_v26  ;;  %v566_v29 = vmul.f32 %v1168_v20, %v565_v27  ;;  %v579_v47 = vmul.f32 %v1599_v63, %v578_v33  ;;  %vm600_vm5 = vweird.f32 %v1622_v24 }
 0x138   : > { %v607_v31 = vmul.f32 %v563_v28, %v1545_v42  ;;  %v543_v32 = vsel %vm542_vm13, %v1164_v60, %v539_v22  ;;  %v586_v61 = vmul.f32 %v1170_v38, %v585_v51  ;;  %vm591_vm8 = vweird.f32 %v1170_v38 }
 0x139   : > { %v605_v36 = vmul.f32 %v543_v32, %v1547_v43  ;;  %v567_v37 = vmul.f32 0.5, %v566_v29  ;;  %v628_v43 = vadd.f32 %v1632_v35, %v617_v30  ;;  %v583_v60 = vsel %vm1644_vm3, %v1599_v63, %v579_v47  ;;  %vm592_vm10 = vmor %vm590_vm7, %vm591_vm8 }
 0x13a   : > { %v618_v39 = vmul.f32 %v1619_v19, %v607_v31  ;;  %v609_v1 = vmul.f32 %v583_v60, %v1543_v41  ;;  %v587_v2 = vmul.f32 0.5, %v586_v61 }
 0x13b   : > { %v568_v45 = vsub.f32 1.5, %v567_v37  ;;  %v616_v42 = vmul.f32 %v1619_v19, %v605_v36 }
 0x13c   : > { %v1172_v46 = vpop.eup %1171  ;;  %v629_v49 = vadd.f32 %v1632_v35, %v618_v39  ;;  %v620_v63 = vmul.f32 %v1619_v19, %v609_v1  ;;  %v588_v6 = vsub.f32 1.5, %v587_v2 }
 0x13d   : > { %v569_v50 = vmul.f32 %v1168_v20, %v568_v45  ;;  %v595_v52 = vmul.f32 %v1172_v46, %v1622_v24  ;;  %v627_v53 = vadd.f32 %v1632_v35, %v616_v42  ;;  %vm601_vm6 = vweird.f32 %v1172_v46 }
 0x13e   : > { %v635_v54 = vpack.c.bf16 %v629_v49, %v628_v43  ;;  %vm602_vm9 = vmor %vm600_vm5, %vm601_vm6 }
 0x13f   : > { %v573_v55 = vsel %vm572_vm4, %v1168_v20, %v569_v50  ;;  %v596_v57 = vmul.f32 %v1172_v46, %v595_v52  ;;  %v634_v58 = vpack.c.bf16 %v627_v53, %v626_v48 }
 0x140   : > { %1034 = vmatmul.msk.bf16.vlgmr.msra.gmra.mxu3 %vm428_vm0, %v635_v54  ;;  %1038 = vmatmul.msk.bf16.vlgmr.msra.gmra.mxu1 %vm428_vm0, %v635_v54  ;;  %v608_v62 = vmul.f32 %v573_v55, %v1549_v44  ;;  %v631_v44 = vadd.f32 %v1632_v35, %v620_v63 }
 0x141   : > { %1033 = vmatmul.msk.bf16.vlgmr.msra.gmra.mxu0 %vm428_vm0, %v634_v58  ;;  %1054 = vmatmul.msk.bf16.vlgmr.msra.gmra.mxu2 %vm428_vm0, %v635_v54  ;;  %v597_v0 = vmul.f32 0.5, %v596_v57 }
 0x142   : > { %800 = vmatpush.bf16.msra.mxu0 %v1575_v4  ;;  %v619_v3 = vmul.f32 %v1619_v19, %v608_v62  ;;  %v589_v4 = vmul.f32 %v1170_v38, %v588_v6 }
 0x143   : > { %v598_v5 = vsub.f32 1.5, %v597_v0 }
 0x144   : > { %v630_v7 = vadd.f32 %v1632_v35, %v619_v3  ;;  %v593_v10 = vsel %vm592_vm10, %v1170_v38, %v589_v4 }
 0x145   : > { %v599_v41 = vmul.f32 %v1172_v46, %v598_v5  ;;  %v610_v9 = vmul.f32 %v593_v10, %v1564_v56 }
 0x146   : > { %801 = vmatpush.bf16.msra.mxu0 %v1579_v14  ;;  %v636_v14 = vpack.c.bf16 %v631_v44, %v630_v7 }
 0x147   : > { %v603_v8 = vsel %vm602_vm9, %v1172_v46, %v599_v41  ;;  %v621_v12 = vmul.f32 %v1619_v19, %v610_v9 }
 0x149   : > { %v632_v15 = vadd.f32 %v1632_v35, %v621_v12 }
 0x14a   : > { %802 = vmatpush.bf16.msra.mxu0 %v1583_v25  ;;  %v611_v25 = vmul.f32 %v603_v8, %v1569_v59  ;;  %v644_v59 = vld [vmem:[#allocation7] sm:$0x3] }
 0x14b   : > { %v1684_v56 = vperm.slane %v644_v59, 1  ;;  %v1686_v17 = vperm.slane %v644_v59, 0 }
 0x14c   : > { %v622_v11 = vmul.f32 %v1619_v19, %v611_v25 }
 0x14e   : > { %v633_v13 = vadd.f32 %v1632_v35, %v622_v11 }
 0x150   : > { %1035 = vmatmul.msk.bf16.gmra.mxu3 %vm428_vm0, %v636_v14  ;;  %1039 = vmatmul.msk.bf16.gmra.mxu1 %vm428_vm0, %v636_v14  ;;  %v637_v16 = vpack.c.bf16 %v633_v13, %v632_v15 }
 0x151   : > { %1037 = vmatmul.msk.bf16.vlgmr.msrb.gmra.mxu0 %vm428_vm0, %v634_v58  ;;  %1055 = vmatmul.msk.bf16.gmra.mxu2 %vm428_vm0, %v636_v14 }
 0x160   : > { %1036 = vmatmul.msk.bf16.gmra.mxu3 %vm428_vm0, %v637_v16  ;;  %1040 = vmatmul.msk.bf16.gmra.mxu1 %vm428_vm0, %v637_v16 }
 0x161   : > { %1053 = vmatmul.msk.bf16.vlgmr.msra.gmra.mxu0 %vm428_vm0, %v634_v58  ;;  %1056 = vmatmul.msk.bf16.gmra.mxu2 %vm428_vm0, %v637_v16  ;;  %vm824_vm0 = vcmask 588800  }
 0x1bd   : > { %v735_v18 = vpop.f32.mrf.mxu1 }
 0x1be   : > { %v701_v19 = vpop.f32.mrf.mxu0  ;;  %v736_v20 = vadd.f32 %v735_v18, %v1684_v56 }
 0x1bf   : > { %v702_v21 = vadd.f32 %v701_v19, %v1686_v17 }
 0x1c0   : > { %756 = vst.msk [vmem:[%s1691_s15 + $0x28] sm:$0xff] %vm751_vm11, %v736_v20 }
 0x1c1   : > { %750 = vst [vmem:[%s1691_s15] sm:$0xff] %v702_v21 }
 0x1c3   : > { %v706_v24 = vpop.f32.mrf.mxu3 }
 0x1c4   : > { %v707_v26 = vadd.f32 %v706_v24, %v1686_v17  ;;  %v809_v27 = vpop.f32.mrf.mxu2 }
 0x1c5   : > { %v810_v22 = vadd.f32 %v1698_v23, %v809_v27  ;;  %v737_v28 = vpop.f32.mrf.mxu1 }
 0x1c6   : > { %755 = vst [vmem:[%s1691_s15 + $0x20] sm:$0xff] %v707_v26  ;;  %v703_v29 = vpop.f32.mrf.mxu0  ;;  %v738_v30 = vadd.f32 %v737_v28, %v1684_v56 }
 0x1c7   : > { %827 = vst.msk [vmem:[%s1705_s16 + $0x10] sm:$0xff] %vm824_vm0, %v810_v22  ;;  %v704_v31 = vadd.f32 %v703_v29, %v1686_v17 }
 0x1c8   : > { %758 = vst.msk [vmem:[%s1691_s15 + $0x38] sm:$0xff] %vm751_vm11, %v738_v30 }
 0x1c9   : > { %753 = vst [vmem:[%s1691_s15 + $0x10] sm:$0xff] %v704_v31 }
 0x1cb   : > { %v708_v32 = vpop.f32.mrf.mxu3 }
 0x1cc   : > { %v709_v33 = vadd.f32 %v708_v32, %v1686_v17  ;;  %v811_v34 = vpop.f32.mrf.mxu2 }
 0x1cd   : > { %v812_v35 = vadd.f32 %v1698_v23, %v811_v34  ;;  %v740_v36 = vpop.f32.mrf.mxu1 }
 0x1ce   : > { %757 = vst [vmem:[%s1691_s15 + $0x30] sm:$0xff] %v709_v33  ;;  %v730_v37 = vpop.f32.mrf.mxu0  ;;  %v741_v38 = vadd.f32 %v740_v36, %v1684_v56 }
 0x1cf   : > { %828 = vst.msk [vmem:[%s1705_s16 + $0x18] sm:$0xff] %vm824_vm0, %v812_v35  ;;  %v731_v39 = vadd.f32 %v730_v37, %v1684_v56 }
 0x1d0   : > { %760 = vst.msk [vmem:[%s1691_s15 + $0x48] sm:$0xff] %vm751_vm11, %v741_v38 }
 0x1d1   : > { %752 = vst.msk [vmem:[%s1691_s15 + $0x8] sm:$0xff] %vm751_vm11, %v731_v39 }
 0x1d3   : > { %v711_v45 = vpop.f32.mrf.mxu3 }
 0x1d4   : > { %v712_v42 = vadd.f32 %v711_v45, %v1686_v17  ;;  %v814_v46 = vpop.f32.mrf.mxu2 }
 0x1d5   : > { %v815_v47 = vadd.f32 %v1698_v23, %v814_v46  ;;  %v742_v48 = vpop.f32.mrf.mxu1 }
 0x1d6   : > { %759 = vst [vmem:[%s1691_s15 + $0x40] sm:$0xff] %v712_v42  ;;  %v732_v43 = vpop.f32.mrf.mxu0  ;;  %v743_v49 = vadd.f32 %v742_v48, %v1684_v56 }
 0x1d7   : > { %829 = vst.msk [vmem:[%s1705_s16 + $0x20] sm:$0xff] %vm824_vm0, %v815_v47  ;;  %v733_v40 = vadd.f32 %v732_v43, %v1684_v56 }
 0x1d8   : > { %762 = vst.msk [vmem:[%s1691_s15 + $0x58] sm:$0xff] %vm751_vm11, %v743_v49 }
 0x1d9   : > { %754 = vst.msk [vmem:[%s1691_s15 + $0x18] sm:$0xff] %vm751_vm11, %v733_v40 }
 0x1db   : > { %v713_v50 = vpop.f32.mrf.mxu3 }
 0x1dc   : > { %v714_v51 = vadd.f32 %v713_v50, %v1686_v17  ;;  %v816_v52 = vpop.f32.mrf.mxu2 }
 0x1dd   : > { %v817_v53 = vadd.f32 %v1698_v23, %v816_v52  ;;  %v745_v54 = vpop.f32.mrf.mxu1 }
 0x1de   : > { %761 = vst [vmem:[%s1691_s15 + $0x50] sm:$0xff] %v714_v51  ;;  %v746_v55 = vadd.f32 %v745_v54, %v1684_v56  ;;  %v804_v57 = vpop.f32.mrf.mxu0 }
 0x1df   : > { %830 = vst.msk [vmem:[%s1705_s16 + $0x28] sm:$0xff] %vm824_vm0, %v817_v53  ;;  %v805_v58 = vadd.f32 %v1698_v23, %v804_v57 }
 0x1e0   : > { %764 = vst.msk [vmem:[%s1691_s15 + $0x68] sm:$0xff] %vm751_vm11, %v746_v55 }
 0x1e1   : > { %825 = vst.msk [vmem:[%s1705_s16] sm:$0xff] %vm824_vm0, %v805_v58 }
 0x1e3   : > { %v716_v60 = vpop.f32.mrf.mxu3 }
 0x1e4   : > { %v717_v61 = vadd.f32 %v716_v60, %v1686_v17  ;;  %v819_v62 = vpop.f32.mrf.mxu2 }
 0x1e5   : > { %v820_v0 = vadd.f32 %v1698_v23, %v819_v62  ;;  %v747_v1 = vpop.f32.mrf.mxu1 }
 0x1e6   : > { %763 = vst [vmem:[%s1691_s15 + $0x60] sm:$0xff] %v717_v61  ;;  %v748_v2 = vadd.f32 %v747_v1, %v1684_v56  ;;  %v806_v3 = vpop.f32.mrf.mxu0 }
 0x1e7   : > { %831 = vst.msk [vmem:[%s1705_s16 + $0x30] sm:$0xff] %vm824_vm0, %v820_v0  ;;  %v807_v5 = vadd.f32 %v1698_v23, %v806_v3 }
 0x1e8   : > { %766 = vst.msk [vmem:[%s1691_s15 + $0x78] sm:$0xff] %vm751_vm11, %v748_v2 }
 0x1e9   : > { %826 = vst.msk [vmem:[%s1705_s16 + $0x8] sm:$0xff] %vm824_vm0, %v807_v5 }
 0x1eb   : > { %v718_v63 = vpop.f32.mrf.mxu3 }
 0x1ec   : > { %v719_v6 = vadd.f32 %v718_v63, %v1686_v17  ;;  %v821_v7 = vpop.f32.mrf.mxu2 }
 0x1ed   : > { %v822_v41 = vadd.f32 %v1698_v23, %v821_v7 }
 0x1ee   : > { %765 = vst [vmem:[%s1691_s15 + $0x70] sm:$0xff] %v719_v6 }
 0x1ef   : > { %832 = vst.msk [vmem:[%s1705_s16 + $0x38] sm:$0xff] %vm824_vm0, %v822_v41 }
 0x1f0 PF: > { %s23_s27 = sadd.s32 1, %s1375_s27  }
 0x1f1   : > { %p20_p7 = scmp.ge.s32.totalorder %s23_s27, 4  }
 0x1f3   :  { %22 = sbr.rel (!%p20_p7) target bundleno = 4 (0x4), region = 115 }
 0x1f8   :  { %874 = vsyncpa [#allocation3], 1 }
 0x1f9   :  { %876 = vsyncpa [#allocation3 + $0x1], 1 }
 0x1fa   :  { %877 = vsyncpa [#allocation5], 1 }
 0x1fb   :  { %878 = vsyncpa [#allocation8], 1 }
 0x1fc   :  { %879 = vsyncpa [#allocation11], 1 }

// kernel: injector_forward.4
= control target key start
LH: loop header
LB: loop body
LE: loop exit
PB: predicated region body
PF: predicated region fallthrough
CT: control target
= control target key end

     0   :  { %s1993_s18 = smov 0   ;;  %s1995_s19 = smov 0   ;;  %s3447_s0 = inlined_call_operand.vmem [shape: f32[672,48], index: 0, kind: input, shape index: {}]   ;;  %s3448_s1 = inlined_call_operand.vmem [shape: f32[1,48], index: 1, kind: input, shape index: {}]   ;;  %s3449_s2 = inlined_call_operand.vmem [shape: f32[1,48], index: 2, kind: input, shape index: {}]   ;;  %s3450_s3 = inlined_call_operand.vmem [shape: bf16[48,48], index: 3, kind: input, shape index: {}]   ;;  %s3451_s4 = inlined_call_operand.vmem [shape: f32[1,48], index: 4, kind: input, shape index: {}]   ;;  %s3452_s5 = inlined_call_operand.vmem [shape: bf16[672,48], index: 5, kind: output, shape index: {}]  }
   0x1   :  { %s1997_s20 = smov 0  }
   0x2 LB: > { %s2006_s21 = sadd.s32 4294967295, %s1928_s20   ;;  %s2008_s22 = sadd.s32 1, %s1928_s20   ;;  %s1928_s20 = sphi %s1997_s20, %s3527_s20   ;;  %s1924_s19 = sphi %s1995_s19, %s3526_s19   ;;  %s1920_s18 = sphi %s1993_s18, %s3525_s18  }
   0x3   : > { %s129_s23 = ssub.s32 %s1928_s20, %s2008_s22  ;;  %s132_s24 = sadd.s32 1, %s1924_s19 }
   0x4   : > { %p130_p0 = scmp.eq.s32.totalorder %s129_s23, 0  ;;  %p142_p1 = scmp.ne.s32.totalorder %s1924_s19, %s1920_s18 }
   0x5   : > { %p143_p2 = scmp.eq.s32.totalorder %s2006_s21, 2  ;;  %p1652_p3 = scmp.ge.s32.totalorder %s1928_s20, 1 }
   0x6   : > { %s2016_s25 = scalar_select %p130_p0, %s1924_s19, %s132_s24  }
   0x7   : > { %p2018_p4 = por %p143_p2, %p142_p1  ;;  %p196_p5 = scmp.lt.s32.totalorder %s1928_s20, 4 }
   0x9   : > { %p197_p6 = pnand %p1652_p3, %p196_p5 }
   0xb   : > { %200 = sbr.rel (%p197_p6) target bundleno = 605 (0x25d), region = 40 }
  0x10   : > { %s2023_s27 = sshll.u32 %s2006_s21, 5  ;;  %vm281_vm0 = vcmask 392192   ;;  %s224_s20 = sand.u32 1, %s1920_s18  }
  0x11   : > { %p232_p7 = scmp.lt.s32.totalorder %s2023_s27, 83  ;;  %s1317_s18 = ssub.s32 (%p2018_p4), 84, %s2023_s27 }
  0x12   : > { %s1704_s30 = sshll.u32 (%p2018_p4), %s2006_s21, 7  ;;  %p1318_p8 = scmp.lt.s32.totalorder (%p2018_p4), %s1317_s18, 32 }
  0x13   : > { %s233_s28 = scalar_select %p232_p7, %s2023_s27, 83 }
  0x14   : > { %s3312_s8 = scalar_lea.vmem (%p2018_p4), %s3452_s5, %s1704_s30  }
  0x15   : > { %s1655_s29 = sshll.u32 %s233_s28, 3  ;;  %s1653_s28 = sshll.u32 %s224_s20, 7 }
  0x16   : > { %s2030_s7 = scalar_lea.vmem %s3447_s0, %s1655_s29  ;;  %s3209_s29 = scalar_lea.vmem [#allocation2], %s1653_s28  }
  0x17   : > { %v2033_v0 = vld [vmem:[%s2030_s7 + $0xc0] sm:$0xff]  ;;  %v2048_v6 = vld [vmem:[%s2030_s7 + $0xc8] sm:$0xff]  ;;  %v2069_v14 = vld [vmem:[%s2030_s7 + $0x90] sm:$0xff] }
  0x18   : > { %v2036_v1 = vld [vmem:[%s2030_s7 + $0x80] sm:$0xff]  ;;  %v354_v3 = vsel %vm281_vm0, %v2033_v0, 0.0  ;;  %v2051_v7 = vld [vmem:[%s2030_s7 + $0x88] sm:$0xff]  ;;  %v357_v9 = vsel %vm281_vm0, %v2048_v6, 0.0  ;;  %v336_v17 = vsel %vm281_vm0, %v2069_v14, 0.0  ;;  %v2078_v18 = vld [vmem:[%s2030_s7 + $0xd0] sm:$0xff] }
  0x19   : > { %v2039_v2 = vld [vmem:[%s2030_s7] sm:$0xff]  ;;  %v330_v4 = vsel %vm281_vm0, %v2036_v1, 0.0  ;;  %355 = vadd.xlane.f32.xlu1 %v354_v3  ;;  %v2054_v8 = vld [vmem:[%s2030_s7 + $0x8] sm:$0xff]  ;;  %v333_v10 = vsel %vm281_vm0, %v2051_v7, 0.0  ;;  %v2081_v19 = vld [vmem:[%s2030_s7 + $0x98] sm:$0xff]  ;;  %v360_v21 = vsel %vm281_vm0, %v2078_v18, 0.0 }
  0x1a   : > { %v282_v5 = vsel %vm281_vm0, %v2039_v2, 0.0  ;;  %331 = vadd.xlane.f32.xlu0 %v330_v4  ;;  %v285_v11 = vsel %vm281_vm0, %v2054_v8, 0.0  ;;  %v2063_v12 = vld [vmem:[%s2030_s7 + $0x48] sm:$0xff]  ;;  %v2066_v13 = vld [vmem:[%s2030_s7 + $0x40] sm:$0xff]  ;;  %v2084_v20 = vld [vmem:[%s2030_s7 + $0xd8] sm:$0xff]  ;;  %v339_v22 = vsel %vm281_vm0, %v2081_v19, 0.0 }
  0x1b   : > { %283 = vadd.xlane.f32.xlu2 %v282_v5  ;;  %v309_v15 = vsel %vm281_vm0, %v2063_v12, 0.0  ;;  %v306_v16 = vsel %vm281_vm0, %v2066_v13, 0.0  ;;  %v363_v23 = vsel %vm281_vm0, %v2084_v20, 0.0  ;;  %v2093_v24 = vld [vmem:[%s2030_s7 + $0x18] sm:$0xff]  ;;  %v2096_v25 = vld [vmem:[%s2030_s7 + $0x10] sm:$0xff]  ;;  %v2108_v30 = vld [vmem:[%s2030_s7 + $0xa0] sm:$0xff] }
  0x1c   : > { %v2099_v26 = vld [vmem:[%s2030_s7 + $0x50] sm:$0xff]  ;;  %v291_v27 = vsel %vm281_vm0, %v2093_v24, 0.0  ;;  %v288_v28 = vsel %vm281_vm0, %v2096_v25, 0.0  ;;  %v2111_v31 = vld [vmem:[%s2030_s7 + $0x58] sm:$0xff]  ;;  %v2114_v32 = vld [vmem:[%s2030_s7 + $0xa8] sm:$0xff]  ;;  %v342_v33 = vsel %vm281_vm0, %v2108_v30, 0.0 }
  0x1d   : > { %v312_v29 = vsel %vm281_vm0, %v2099_v26, 0.0  ;;  %v315_v34 = vsel %vm281_vm0, %v2111_v31, 0.0  ;;  %v345_v35 = vsel %vm281_vm0, %v2114_v32, 0.0  ;;  %v2123_v36 = vld [vmem:[%s2030_s7 + $0xe8] sm:$0xff]  ;;  %v2126_v37 = vld [vmem:[%s2030_s7 + $0xe0] sm:$0xff]  ;;  %v2153_v48 = vld [vmem:[%s2030_s7 + $0xb0] sm:$0xff] }
  0x1e   : > { %v2129_v38 = vld [vmem:[%s2030_s7 + $0x20] sm:$0xff]  ;;  %v369_v39 = vsel %vm281_vm0, %v2123_v36, 0.0  ;;  %v366_v40 = vsel %vm281_vm0, %v2126_v37, 0.0  ;;  %v2141_v43 = vld [vmem:[%s2030_s7 + $0x28] sm:$0xff]  ;;  %v2156_v49 = vld [vmem:[%s2030_s7 + $0xf0] sm:$0xff]  ;;  %v348_v51 = vsel %vm281_vm0, %v2153_v48, 0.0 }
  0x1f   : > { %v294_v41 = vsel %vm281_vm0, %v2129_v38, 0.0  ;;  %v2138_v42 = vld [vmem:[%s2030_s7 + $0x60] sm:$0xff]  ;;  %v2144_v44 = vld [vmem:[%s2030_s7 + $0x68] sm:$0xff]  ;;  %v297_v46 = vsel %vm281_vm0, %v2141_v43, 0.0  ;;  %v2159_v50 = vld [vmem:[%s2030_s7 + $0xb8] sm:$0xff]  ;;  %v372_v52 = vsel %vm281_vm0, %v2156_v49, 0.0 }
  0x20   : > { %v318_v45 = vsel %vm281_vm0, %v2138_v42, 0.0  ;;  %v321_v47 = vsel %vm281_vm0, %v2144_v44, 0.0  ;;  %v351_v53 = vsel %vm281_vm0, %v2159_v50, 0.0  ;;  %v2168_v54 = vld [vmem:[%s2030_s7 + $0xf8] sm:$0xff]  ;;  %v2171_v55 = vld [vmem:[%s2030_s7 + $0x30] sm:$0xff]  ;;  %v1962_v3 = vmov 48.0  }
  0x21   : > { %358 = vadd.xlane.f32.xlu1 %v357_v9  ;;  %v2174_v56 = vld [vmem:[%s2030_s7 + $0x70] sm:$0xff]  ;;  %v375_v57 = vsel %vm281_vm0, %v2168_v54, 0.0  ;;  %v300_v58 = vsel %vm281_vm0, %v2171_v55, 0.0  ;;  %v2183_v60 = vld [vmem:[%s2030_s7 + $0x38] sm:$0xff]  ;;  %1808 = vrcp.f32 %v1962_v3 }
  0x22   : > { %334 = vadd.xlane.f32.xlu0 %v333_v10  ;;  %v324_v59 = vsel %vm281_vm0, %v2174_v56, 0.0  ;;  %v2186_v61 = vld [vmem:[%s2030_s7 + $0x78] sm:$0xff]  ;;  %v303_v62 = vsel %vm281_vm0, %v2183_v60, 0.0 }
  0x23   : > { %286 = vadd.xlane.f32.xlu2 %v285_v11  ;;  %v327_v63 = vsel %vm281_vm0, %v2186_v61, 0.0 }
  0x27   : > { %v1809_v4 = vpop.eup %1808 }
  0x28   : > { %v379_v5 = vmul.f32 48.0, %v1809_v4  ;;  %vm383_vm1 = vweird.f32 %v1809_v4 }
  0x29   : > { %310 = vadd.xlane.f32.xlu1 %v309_v15 }
  0x2a   : > { %307 = vadd.xlane.f32.xlu0 %v306_v16  ;;  %v380_v9 = vsub.f32 1.0, %v379_v5 }
  0x2b   : > { %337 = vadd.xlane.f32.xlu2 %v336_v17 }
  0x2c   : > { %v381_v10 = vmul.f32 %v1809_v4, %v380_v9 }
  0x2e   : > { %v382_v11 = vadd.f32 %v1809_v4, %v381_v10 }
  0x30   : > { %v2192_v15 = vsel %vm383_vm1, %v1809_v4, %v382_v11 }
  0x31   : > { %361 = vadd.xlane.f32.xlu1 %v360_v21 }
  0x32   : > { %340 = vadd.xlane.f32.xlu0 %v339_v22 }
  0x33   : > { %364 = vadd.xlane.f32.xlu2 %v363_v23 }
  0x39   : > { %292 = vadd.xlane.f32.xlu1 %v291_v27 }
  0x3a   : > { %289 = vadd.xlane.f32.xlu0 %v288_v28 }
  0x3b   : > { %313 = vadd.xlane.f32.xlu2 %v312_v29 }
  0x41   : > { %343 = vadd.xlane.f32.xlu1 %v342_v33 }
  0x42   : > { %316 = vadd.xlane.f32.xlu0 %v315_v34 }
  0x43   : > { %346 = vadd.xlane.f32.xlu2 %v345_v35 }
  0x49   : > { %370 = vadd.xlane.f32.xlu1 %v369_v39 }
  0x4a   : > { %367 = vadd.xlane.f32.xlu0 %v366_v40 }
  0x4b   : > { %295 = vadd.xlane.f32.xlu2 %v294_v41 }
  0x51   : > { %319 = vadd.xlane.f32.xlu1 %v318_v45 }
  0x52   : > { %298 = vadd.xlane.f32.xlu0 %v297_v46 }
  0x53   : > { %322 = vadd.xlane.f32.xlu2 %v321_v47 }
  0x59   : > { %349 = vadd.xlane.f32.xlu1 %v348_v51 }
  0x5a   : > { %373 = vadd.xlane.f32.xlu0 %v372_v52 }
  0x5b   : > { %352 = vadd.xlane.f32.xlu2 %v351_v53 }
  0x61   : > { %376 = vadd.xlane.f32.xlu1 %v375_v57 }
  0x62   : > { %301 = vadd.xlane.f32.xlu0 %v300_v58 }
  0x63   : > { %325 = vadd.xlane.f32.xlu2 %v324_v59 }
  0x69   : > { %304 = vadd.xlane.f32.xlu1 %v303_v62 }
  0x6a   : > { %328 = vadd.xlane.f32.xlu0 %v327_v63 }
  0x8c   : > { %v356_v16 = vpop.xlane.xlu1 %355 }
  0x8d   : > { %v332_v17 = vpop.xlane.xlu0 %331  ;;  %v409_v21 = vmul.f32 %v2192_v15, %v356_v16 }
  0x8e   : > { %v401_v22 = vmul.f32 %v2192_v15, %v332_v17  ;;  %v284_v23 = vpop.xlane.xlu2 %283 }
  0x8f   : > { %v2197_v27 = vsub.f32 %v2033_v0, %v409_v21  ;;  %v385_v29 = vmul.f32 %v2192_v15, %v284_v23 }
  0x90   : > { %v2200_v28 = vsub.f32 %v2036_v1, %v401_v22 }
  0x91   : > { %v473_v34 = vmul.f32 %v2197_v27, %v2197_v27  ;;  %v2210_v40 = vsub.f32 %v2039_v2, %v385_v29 }
  0x92   : > { %v465_v33 = vmul.f32 %v2200_v28, %v2200_v28 }
  0x93   : > { %v553_v39 = vsel %vm281_vm0, %v473_v34, 0.0  ;;  %v449_v2 = vmul.f32 %v2210_v40, %v2210_v40 }
  0x94   : > { %v529_v35 = vsel %vm281_vm0, %v465_v33, 0.0  ;;  %v359_v0 = vpop.xlane.xlu1 %358  ;;  %554 = vadd.xlane.f32.xlu2 %v553_v39 }
  0x95   : > { %v335_v41 = vpop.xlane.xlu0 %334  ;;  %530 = vadd.xlane.f32.xlu0 %v529_v35  ;;  %v410_v1 = vmul.f32 %v2192_v15, %v359_v0  ;;  %v481_v63 = vsel %vm281_vm0, %v449_v2, 0.0 }
  0x96   : > { %v402_v45 = vmul.f32 %v2192_v15, %v335_v41  ;;  %v287_v46 = vpop.xlane.xlu2 %286 }
  0x97   : > { %v2215_v47 = vsub.f32 %v2048_v6, %v410_v1  ;;  %v386_v52 = vmul.f32 %v2192_v15, %v287_v46 }
  0x98   : > { %v2218_v51 = vsub.f32 %v2051_v7, %v402_v45 }
  0x99   : > { %v474_v57 = vmul.f32 %v2215_v47, %v2215_v47  ;;  %v2228_v58 = vsub.f32 %v2054_v8, %v386_v52 }
  0x9a   : > { %v466_v53 = vmul.f32 %v2218_v51, %v2218_v51 }
  0x9b   : > { %v556_v59 = vsel %vm281_vm0, %v474_v57, 0.0  ;;  %v450_v11 = vmul.f32 %v2228_v58, %v2228_v58 }
  0x9c   : > { %v532_v6 = vsel %vm281_vm0, %v466_v53, 0.0  ;;  %v311_v7 = vpop.xlane.xlu1 %310  ;;  %482 = vadd.xlane.f32.xlu2 %v481_v63 }
  0x9d   : > { %v308_v62 = vpop.xlane.xlu0 %307  ;;  %533 = vadd.xlane.f32.xlu1 %v532_v6  ;;  %557 = vadd.xlane.f32.xlu0 %v556_v59  ;;  %v394_v3 = vmul.f32 %v2192_v15, %v311_v7 }
  0x9e   : > { %v393_v4 = vmul.f32 %v2192_v15, %v308_v62  ;;  %v338_v5 = vpop.xlane.xlu2 %337 }
  0x9f   : > { %v2236_v9 = vsub.f32 %v2063_v12, %v394_v3  ;;  %v403_v10 = vmul.f32 %v2192_v15, %v338_v5 }
  0xa0   : > { %v2239_v8 = vsub.f32 %v2066_v13, %v393_v4  ;;  %v484_v13 = vsel %vm281_vm0, %v450_v11, 0.0 }
  0xa1   : > { %v458_v17 = vmul.f32 %v2236_v9, %v2236_v9  ;;  %v2249_v21 = vsub.f32 %v2069_v14, %v403_v10 }
  0xa2   : > { %v457_v16 = vmul.f32 %v2239_v8, %v2239_v8 }
  0xa3   : > { %v508_v22 = vsel %vm281_vm0, %v458_v17, 0.0  ;;  %v467_v41 = vmul.f32 %v2249_v21, %v2249_v21 }
  0xa4   : > { %v505_v12 = vsel %vm281_vm0, %v457_v16, 0.0  ;;  %v362_v23 = vpop.xlane.xlu1 %361  ;;  %509 = vadd.xlane.f32.xlu2 %v508_v22 }
  0xa5   : > { %v341_v29 = vpop.xlane.xlu0 %340  ;;  %506 = vadd.xlane.f32.xlu1 %v505_v12  ;;  %485 = vadd.xlane.f32.xlu0 %v484_v13  ;;  %v411_v33 = vmul.f32 %v2192_v15, %v362_v23 }
  0xa6   : > { %v404_v34 = vmul.f32 %v2192_v15, %v341_v29  ;;  %v365_v35 = vpop.xlane.xlu2 %364 }
  0xa7   : > { %v2257_v39 = vsub.f32 %v2078_v18, %v411_v33  ;;  %v412_v0 = vmul.f32 %v2192_v15, %v365_v35 }
  0xa8   : > { %v2260_v14 = vsub.f32 %v2081_v19, %v404_v34  ;;  %v535_v19 = vsel %vm281_vm0, %v467_v41, 0.0 }
  0xa9   : > { %v475_v45 = vmul.f32 %v2257_v39, %v2257_v39  ;;  %v2270_v46 = vsub.f32 %v2084_v20, %v412_v0 }
  0xaa   : > { %v468_v1 = vmul.f32 %v2260_v14, %v2260_v14 }
  0xab   : > { %v559_v52 = vsel %vm281_vm0, %v475_v45, 0.0  ;;  %v476_v63 = vmul.f32 %v2270_v46, %v2270_v46 }
  0xac   : > { %v538_v18 = vsel %vm281_vm0, %v468_v1, 0.0  ;;  %v293_v2 = vpop.xlane.xlu1 %292 }
  0xad   : > { %v290_v53 = vpop.xlane.xlu0 %289  ;;  %560 = vadd.xlane.f32.xlu0 %v559_v52  ;;  %536 = vadd.xlane.f32.xlu1 %v535_v19  ;;  %v388_v57 = vmul.f32 %v2192_v15, %v293_v2 }
  0xae   : > { %v387_v6 = vmul.f32 %v2192_v15, %v290_v53  ;;  %539 = vadd.xlane.f32.xlu2 %v538_v18  ;;  %v314_v59 = vpop.xlane.xlu2 %313 }
  0xaf   : > { %v2278_v7 = vsub.f32 %v2093_v24, %v388_v57  ;;  %v395_v62 = vmul.f32 %v2192_v15, %v314_v59 }
  0xb0   : > { %v2281_v20 = vsub.f32 %v2096_v25, %v387_v6  ;;  %v562_v25 = vsel %vm281_vm0, %v476_v63, 0.0 }
  0xb1   : > { %v452_v4 = vmul.f32 %v2278_v7, %v2278_v7  ;;  %v2291_v5 = vsub.f32 %v2099_v26, %v395_v62 }
  0xb2   : > { %v451_v3 = vmul.f32 %v2281_v20, %v2281_v20 }
  0xb3   : > { %v490_v10 = vsel %vm281_vm0, %v452_v4, 0.0  ;;  %v459_v29 = vmul.f32 %v2291_v5, %v2291_v5 }
  0xb4   : > { %v487_v24 = vsel %vm281_vm0, %v451_v3, 0.0  ;;  %v344_v11 = vpop.xlane.xlu1 %343 }
  0xb5   : > { %v317_v16 = vpop.xlane.xlu0 %316  ;;  %491 = vadd.xlane.f32.xlu0 %v490_v10  ;;  %563 = vadd.xlane.f32.xlu1 %v562_v25  ;;  %v405_v17 = vmul.f32 %v2192_v15, %v344_v11 }
  0xb6   : > { %v396_v12 = vmul.f32 %v2192_v15, %v317_v16  ;;  %488 = vadd.xlane.f32.xlu2 %v487_v24  ;;  %v347_v22 = vpop.xlane.xlu2 %346 }
  0xb7   : > { %v2299_v13 = vsub.f32 %v2108_v30, %v405_v17  ;;  %v406_v23 = vmul.f32 %v2192_v15, %v347_v22 }
  0xb8   : > { %v2302_v26 = vsub.f32 %v2111_v31, %v396_v12  ;;  %v511_v31 = vsel %vm281_vm0, %v459_v29, 0.0 }
  0xb9   : > { %v469_v34 = vmul.f32 %v2299_v13, %v2299_v13  ;;  %v2312_v35 = vsub.f32 %v2114_v32, %v406_v23 }
  0xba   : > { %v460_v33 = vmul.f32 %v2302_v26, %v2302_v26 }
  0xbb   : > { %v541_v0 = vsel %vm281_vm0, %v469_v34, 0.0  ;;  %v470_v53 = vmul.f32 %v2312_v35, %v2312_v35 }
  0xbc   : > { %v514_v30 = vsel %vm281_vm0, %v460_v33, 0.0  ;;  %v371_v41 = vpop.xlane.xlu1 %370 }
  0xbd   : > { %v368_v1 = vpop.xlane.xlu0 %367  ;;  %542 = vadd.xlane.f32.xlu0 %v541_v0  ;;  %512 = vadd.xlane.f32.xlu1 %v511_v31  ;;  %v414_v45 = vmul.f32 %v2192_v15, %v371_v41 }
  0xbe   : > { %v413_v18 = vmul.f32 %v2192_v15, %v368_v1  ;;  %515 = vadd.xlane.f32.xlu2 %v514_v30  ;;  %v296_v52 = vpop.xlane.xlu2 %295 }
  0xbf   : > { %v2320_v19 = vsub.f32 %v2123_v36, %v414_v45  ;;  %v389_v2 = vmul.f32 %v2192_v15, %v296_v52 }
  0xc0   : > { %v2323_v32 = vsub.f32 %v2126_v37, %v413_v18  ;;  %v544_v37 = vsel %vm281_vm0, %v470_v53, 0.0 }
  0xc1   : > { %v478_v6 = vmul.f32 %v2320_v19, %v2320_v19  ;;  %v2333_v59 = vsub.f32 %v2129_v38, %v389_v2 }
  0xc2   : > { %v477_v57 = vmul.f32 %v2323_v32, %v2323_v32 }
  0xc3   : > { %v568_v62 = vsel %vm281_vm0, %v478_v6, 0.0  ;;  %v453_v16 = vmul.f32 %v2333_v59, %v2333_v59 }
  0xc4   : > { %v565_v36 = vsel %vm281_vm0, %v477_v57, 0.0  ;;  %v320_v63 = vpop.xlane.xlu1 %319 }
  0xc5   : > { %v299_v3 = vpop.xlane.xlu0 %298  ;;  %569 = vadd.xlane.f32.xlu0 %v568_v62  ;;  %545 = vadd.xlane.f32.xlu1 %v544_v37  ;;  %v397_v4 = vmul.f32 %v2192_v15, %v320_v63 }
  0xc6   : > { %v390_v24 = vmul.f32 %v2192_v15, %v299_v3  ;;  %566 = vadd.xlane.f32.xlu2 %v565_v36  ;;  %v323_v10 = vpop.xlane.xlu2 %322 }
  0xc7   : > { %v2341_v25 = vsub.f32 %v2138_v42, %v397_v4  ;;  %v398_v11 = vmul.f32 %v2192_v15, %v323_v10 }
  0xc8   : > { %v2344_v38 = vsub.f32 %v2141_v43, %v390_v24  ;;  %v493_v43 = vsel %vm281_vm0, %v453_v16, 0.0 }
  0xc9   : > { %v461_v12 = vmul.f32 %v2341_v25, %v2341_v25  ;;  %v2354_v22 = vsub.f32 %v2144_v44, %v398_v11 }
  0xca   : > { %v454_v17 = vmul.f32 %v2344_v38, %v2344_v38 }
  0xcb   : > { %v517_v23 = vsel %vm281_vm0, %v461_v12, 0.0  ;;  %v462_v41 = vmul.f32 %v2354_v22, %v2354_v22 }
  0xcc   : > { %v496_v42 = vsel %vm281_vm0, %v454_v17, 0.0  ;;  %v350_v29 = vpop.xlane.xlu1 %349 }
  0xcd   : > { %v374_v33 = vpop.xlane.xlu0 %373  ;;  %518 = vadd.xlane.f32.xlu0 %v517_v23  ;;  %494 = vadd.xlane.f32.xlu1 %v493_v43  ;;  %v407_v34 = vmul.f32 %v2192_v15, %v350_v29  ;;  %v520_v2 = vsel %vm281_vm0, %v462_v41, 0.0 }
  0xce   : > { %497 = vadd.xlane.f32.xlu2 %v496_v42  ;;  %v353_v30 = vpop.xlane.xlu2 %352  ;;  %v415_v44 = vmul.f32 %v2192_v15, %v374_v33 }
  0xcf   : > { %v408_v0 = vmul.f32 %v2192_v15, %v353_v30  ;;  %v2362_v31 = vsub.f32 %v2153_v48, %v407_v34 }
  0xd0   : > { %v2375_v52 = vsub.f32 %v2156_v49, %v415_v44 }
  0xd1   : > { %v2368_v1 = vsub.f32 %v2159_v50, %v408_v0  ;;  %v471_v45 = vmul.f32 %v2362_v31, %v2362_v31 }
  0xd2   : > { %v479_v3 = vmul.f32 %v2375_v52, %v2375_v52 }
  0xd3   : > { %v472_v18 = vmul.f32 %v2368_v1, %v2368_v1  ;;  %v547_v48 = vsel %vm281_vm0, %v471_v45, 0.0  ;;  %v1703_v45 = vld [vmem:[%s3450_s3 + $0x10] sm:$0xff] }
  0xd4   : > { %v377_v53 = vpop.xlane.xlu1 %376  ;;  %1708 = vmatpush.bf16.msra.mxu2 %v1703_v45  ;;  %1709 = vmatpush.bf16.msra.mxu3 %v1703_v45 }
  0xd5   : > { %v302_v57 = vpop.xlane.xlu0 %301  ;;  %521 = vadd.xlane.f32.xlu1 %v520_v2  ;;  %v550_v6 = vsel %vm281_vm0, %v472_v18, 0.0  ;;  %v416_v50 = vmul.f32 %v2192_v15, %v377_v53  ;;  %1160 = vmatpush.bf16.msra.mxu0 %v1703_v45  ;;  %v1702_v2 = vld [vmem:[%s3450_s3 + $0x8] sm:$0xff] }
  0xd6   : > { %v391_v36 = vmul.f32 %v2192_v15, %v302_v57  ;;  %548 = vadd.xlane.f32.xlu2 %v547_v48  ;;  %551 = vadd.xlane.f32.xlu0 %v550_v6  ;;  %v326_v62 = vpop.xlane.xlu2 %325 }
  0xd7   : > { %v399_v37 = vmul.f32 %v2192_v15, %v326_v62  ;;  %v2384_v49 = vsub.f32 %v2168_v54, %v416_v50  ;;  %v571_v54 = vsel %vm281_vm0, %v479_v3, 0.0  ;;  %1707 = vmatpush.bf16.msra.mxu1 %v1703_v45 }
  0xd8   : > { %v2387_v63 = vsub.f32 %v2171_v55, %v391_v36  ;;  %1711 = vmatpush.bf16.msra.mxu2 %v1702_v2  ;;  %1712 = vmatpush.bf16.msra.mxu3 %v1702_v2 }
  0xd9   : > { %v480_v4 = vmul.f32 %v2384_v49, %v2384_v49  ;;  %v2396_v10 = vsub.f32 %v2174_v56, %v399_v37  ;;  %1161 = vmatpush.bf16.msra.mxu0 %v1702_v2  ;;  %v1701_v37 = vld [vmem:[%s3450_s3] sm:$0xff] }
  0xda   : > { %3458 = vst [vmem:[#allocation3_spill] sm:$0xff] %v2387_v63  ;;  %v455_v24 = vmul.f32 %v2387_v63, %v2387_v63 }
  0xdb   : > { %3459 = vst [vmem:[#allocation4_spill] sm:$0xff] %v2396_v10  ;;  %v574_v11 = vsel %vm281_vm0, %v480_v4, 0.0  ;;  %v463_v23 = vmul.f32 %v2396_v10, %v2396_v10  ;;  %1710 = vmatpush.bf16.msra.mxu1 %v1702_v2 }
  0xdc   : > { %v499_v16 = vsel %vm281_vm0, %v455_v24, 0.0  ;;  %v305_v55 = vpop.xlane.xlu1 %304  ;;  %1714 = vmatpush.bf16.msra.mxu2 %v1701_v37  ;;  %1715 = vmatpush.bf16.msra.mxu3 %v1701_v37 }
  0xdd   : > { %v329_v17 = vpop.xlane.xlu0 %328  ;;  %572 = vadd.xlane.f32.xlu1 %v571_v54  ;;  %v392_v12 = vmul.f32 %v2192_v15, %v305_v55  ;;  %v523_v34 = vsel %vm281_vm0, %v463_v23, 0.0  ;;  %1162 = vmatpush.bf16.msra.mxu0 %v1701_v37 }
  0xde   : > { %v400_v42 = vmul.f32 %v2192_v15, %v329_v17  ;;  %575 = vadd.xlane.f32.xlu2 %v574_v11  ;;  %500 = vadd.xlane.f32.xlu0 %v499_v16 }
  0xdf   : > { %v2406_v56 = vsub.f32 %v2183_v60, %v392_v12  ;;  %1713 = vmatpush.bf16.msra.mxu1 %v1701_v37 }
  0xe0   : > { %v2409_v43 = vsub.f32 %v2186_v61, %v400_v42 }
  0xe1   : > { %3460 = vst [vmem:[#allocation5_spill] sm:$0xff] %v2406_v56  ;;  %v456_v29 = vmul.f32 %v2406_v56, %v2406_v56 }
  0xe2   : > { %3461 = vst [vmem:[#allocation6_spill] sm:$0xff] %v2409_v43  ;;  %v464_v33 = vmul.f32 %v2409_v43, %v2409_v43 }
  0xe3   : > { %v502_v30 = vsel %vm281_vm0, %v456_v29, 0.0 }
  0xe4   : > { %v526_v0 = vsel %vm281_vm0, %v464_v33, 0.0 }
  0xe5   : > { %503 = vadd.xlane.f32.xlu1 %v502_v30 }
  0xe6   : > { %527 = vadd.xlane.f32.xlu0 %v526_v0  ;;  %524 = vadd.xlane.f32.xlu2 %v523_v34 }
 0x107   : > { %v555_v44 = vpop.xlane.xlu2 %554 }
 0x108   : > { %v531_v60 = vpop.xlane.xlu0 %530  ;;  %v601_v41 = vmul.f32 %v555_v44, %v2192_v15 }
 0x109   : > { %v593_v61 = vmul.f32 %v531_v60, %v2192_v15 }
 0x10a   : > { %v2425_v48 = vadd.f32 1e-06, %v601_v41 }
 0x10b   : > { %v2423_v18 = vadd.f32 1e-06, %v593_v61 }
 0x10c   : > { %vm887_vm7 = vweird.f32 %v2425_v48 }
 0x10d   : > { %1810 = vrsqrt.f32 %v2423_v18  ;;  %vm807_vm2 = vweird.f32 %v2423_v18 }
 0x10e   : > { %1812 = vrsqrt.f32 %v2425_v48 }
 0x10f   : > { %v483_v36 = vpop.xlane.xlu2 %482 }
 0x110   : > { %v534_v53 = vpop.xlane.xlu1 %533  ;;  %v558_v57 = vpop.xlane.xlu0 %557  ;;  %v577_v62 = vmul.f32 %v483_v36, %v2192_v15 }
 0x111   : > { %v594_v6 = vmul.f32 %v534_v53, %v2192_v15  ;;  %v602_v50 = vmul.f32 %v558_v57, %v2192_v15 }
 0x112   : > { %v2448_v16 = vadd.f32 1e-06, %v577_v62 }
 0x113   : > { %v2438_v3 = vpop.eup %1810  ;;  %v2440_v4 = vadd.f32 1e-06, %v594_v6  ;;  %v2442_v24 = vadd.f32 1e-06, %v602_v50 }
 0x114   : > { %v2444_v11 = vpop.eup %1812  ;;  %v802_v54 = vmul.f32 %v2438_v3, %v2423_v18  ;;  %vm808_vm3 = vweird.f32 %v2438_v3  ;;  %vm647_vm13 = vweird.f32 %v2448_v16 }
 0x115   : > { %v882_v55 = vmul.f32 %v2444_v11, %v2425_v48  ;;  %1814 = vrsqrt.f32 %v2440_v4  ;;  %vm888_vm4 = vweird.f32 %v2444_v11  ;;  %vm2493_vm6 = vmor %vm807_vm2, %vm808_vm3  ;;  %vm817_vm9 = vweird.f32 %v2440_v4 }
 0x116   : > { %v803_v17 = vmul.f32 %v2438_v3, %v802_v54  ;;  %1816 = vrsqrt.f32 %v2442_v24  ;;  %vm2501_vm8 = vmor %vm887_vm7, %vm888_vm4  ;;  %vm897_vm12 = vweird.f32 %v2442_v24 }
 0x117   : > { %v883_v12 = vmul.f32 %v2444_v11, %v882_v55  ;;  %1818 = vrsqrt.f32 %v2448_v16  ;;  %v510_v30 = vpop.xlane.xlu2 %509 }
 0x118   : > { %v507_v42 = vpop.xlane.xlu1 %506  ;;  %v486_v23 = vpop.xlane.xlu0 %485  ;;  %v804_v29 = vmul.f32 0.5, %v803_v17  ;;  %v586_v60 = vmul.f32 %v510_v30, %v2192_v15 }
 0x119   : > { %v585_v33 = vmul.f32 %v507_v42, %v2192_v15  ;;  %v578_v34 = vmul.f32 %v486_v23, %v2192_v15  ;;  %v884_v0 = vmul.f32 0.5, %v883_v12 }
 0x11a   : > { %v805_v57 = vsub.f32 1.5, %v804_v29  ;;  %v2472_v50 = vadd.f32 1e-06, %v586_v60 }
 0x11b   : > { %v1815_v44 = vpop.eup %1814  ;;  %v2460_v61 = vadd.f32 1e-06, %v585_v33  ;;  %v2465_v2 = vadd.f32 1e-06, %v578_v34  ;;  %v885_v36 = vsub.f32 1.5, %v884_v0 }
 0x11c   : > { %v2462_v41 = vpop.eup %1816  ;;  %v812_v45 = vmul.f32 %v1815_v44, %v2440_v4  ;;  %v806_v23 = vmul.f32 %v2438_v3, %v805_v57  ;;  %vm818_vm5 = vweird.f32 %v1815_v44 }
 0x11d   : > { %v2467_v53 = vpop.eup %1818  ;;  %v892_v6 = vmul.f32 %v2462_v41, %v2442_v24  ;;  %1820 = vrsqrt.f32 %v2460_v61  ;;  %v886_v34 = vmul.f32 %v2444_v11, %v885_v36  ;;  %vm2512_vm10 = vmor %vm817_vm9, %vm818_vm5  ;;  %vm898_vm11 = vweird.f32 %v2462_v41  ;;  %v2547_v24 = vld [vmem:[%s3448_s1] ss:$0 sm:$0xff] }
 0x11e   : > { %v813_v62 = vmul.f32 %v1815_v44, %v812_v45  ;;  %v642_v37 = vmul.f32 %v2467_v53, %v2448_v16  ;;  %1822 = vrsqrt.f32 %v2465_v2  ;;  %v810_v48 = vsel %vm2493_vm6, %v2438_v3, %v806_v23  ;;  %vm2552_vm14 = vmor %vm897_vm12, %vm898_vm11 }
 0x11f   : > { %v893_v54 = vmul.f32 %v2462_v41, %v892_v6  ;;  %1824 = vrsqrt.f32 %v2472_v50  ;;  %v890_v4 = vsel %vm2501_vm8, %v2444_v11, %v886_v34  ;;  %v977_v34 = vmul.f32 %v810_v48, %v2200_v28 }
 0x120   : > { %v814_v55 = vmul.f32 0.5, %v813_v62  ;;  %v643_v17 = vmul.f32 %v2467_v53, %v642_v37  ;;  %v561_v12 = vpop.xlane.xlu0 %560  ;;  %v537_v42 = vpop.xlane.xlu1 %536  ;;  %vm648_vm15 = vweird.f32 %v2467_v53  ;;  %vm727_vm1 = vweird.f32 %v2460_v61 }
 0x121   : > { %v894_v29 = vmul.f32 0.5, %v893_v54  ;;  %v540_v33 = vpop.xlane.xlu2 %539  ;;  %v603_v0 = vmul.f32 %v561_v12, %v2192_v15  ;;  %v595_v60 = vmul.f32 %v537_v42, %v2192_v15  ;;  %vm2580_vm2 = vmor %vm647_vm13, %vm648_vm15  ;;  %vm657_vm3 = vweird.f32 %v2465_v2 }
 0x122   : > { %v815_v30 = vsub.f32 1.5, %v814_v55  ;;  %v644_v62 = vmul.f32 0.5, %v643_v17  ;;  %v596_v36 = vmul.f32 %v540_v33, %v2192_v15  ;;  %vm737_vm5 = vweird.f32 %v2472_v50 }
 0x123   : > { %v2487_v45 = vpop.eup %1820  ;;  %v895_v6 = vsub.f32 1.5, %v894_v29  ;;  %v2517_v17 = vadd.f32 1e-06, %v603_v0  ;;  %v2527_v23 = vadd.f32 1e-06, %v595_v60 }
 0x124   : > { %v816_v54 = vmul.f32 %v1815_v44, %v815_v30  ;;  %v722_v18 = vmul.f32 %v2487_v45, %v2460_v61  ;;  %v2519_v12 = vpop.eup %1822  ;;  %v645_v30 = vsub.f32 1.5, %v644_v62  ;;  %v2534_v57 = vadd.f32 1e-06, %v596_v36 }
 0x125   : > { %v2529_v29 = vpop.eup %1824  ;;  %v896_v33 = vmul.f32 %v2462_v41, %v895_v6  ;;  %v652_v0 = vmul.f32 %v2519_v12, %v2465_v2  ;;  %1826 = vrsqrt.f32 %v2517_v17  ;;  %v985_v36 = vmul.f32 %v890_v4, %v2197_v27 }
 0x126   : > { %v820_v42 = vsel %vm2512_vm10, %v1815_v44, %v816_v54  ;;  %v723_v3 = vmul.f32 %v2487_v45, %v722_v18  ;;  %v732_v44 = vmul.f32 %v2529_v29, %v2472_v50  ;;  %1828 = vrsqrt.f32 %v2527_v23 }
 0x127   : > { %v978_v60 = vmul.f32 %v820_v42, %v2218_v51  ;;  %v653_v6 = vmul.f32 %v2519_v12, %v652_v0  ;;  %v900_v18 = vsel %vm2552_vm14, %v2462_v41, %v896_v33  ;;  %v646_v48 = vmul.f32 %v2467_v53, %v645_v30  ;;  %v2573_v41 = vld [vmem:[%s3449_s2] ss:$0 sm:$0xff] }
 0x128   : > { %v724_v11 = vmul.f32 0.5, %v723_v3  ;;  %v492_v62 = vpop.xlane.xlu0 %491  ;;  %v564_v37 = vpop.xlane.xlu1 %563  ;;  %v733_v28 = vmul.f32 %v2529_v29, %v732_v44  ;;  %1830 = vrsqrt.f32 %v2534_v57  ;;  %v1012_v44 = vmul.f32 %v2547_v24, %v977_v34 }
 0x129   : > { %v489_v51 = vpop.xlane.xlu2 %488  ;;  %v654_v55 = vmul.f32 0.5, %v653_v6  ;;  %v580_v4 = vmul.f32 %v492_v62, %v2192_v15  ;;  %v604_v42 = vmul.f32 %v564_v37, %v2192_v15  ;;  %v1013_v54 = vmul.f32 %v2547_v24, %v978_v60 }
 0x12a   : > { %v725_v27 = vsub.f32 1.5, %v724_v11  ;;  %v734_v3 = vmul.f32 0.5, %v733_v28  ;;  %v579_v0 = vmul.f32 %v489_v51, %v2192_v15  ;;  %v986_v33 = vmul.f32 %v900_v18, %v2215_v47 }
 0x12b   : > { %v2585_v11 = vadd.f32 1e-06, %v580_v4  ;;  %v1020_v34 = vmul.f32 %v2547_v24, %v985_v36  ;;  %v2588_v60 = vpop.eup %1826  ;;  %v650_v47 = vsel %vm2580_vm2, %v2467_v53, %v646_v48  ;;  %vm728_vm4 = vweird.f32 %v2487_v45 }
 0x12c   : > { %v726_v6 = vmul.f32 %v2487_v45, %v725_v27  ;;  %v2596_v16 = vadd.f32 1e-06, %v604_v42  ;;  %v2598_v62 = vpop.eup %1828  ;;  %v655_v37 = vsub.f32 1.5, %v654_v55  ;;  %v902_v36 = vmul.f32 %v2588_v60, %v2517_v17  ;;  %vm2623_vm7 = vmor %vm727_vm1, %vm728_vm4 }
 0x12d   : > { %1832 = vrsqrt.f32 %v2585_v11  ;;  %v2603_v28 = vadd.f32 1e-06, %v579_v0  ;;  %v735_v53 = vsub.f32 1.5, %v734_v3  ;;  %v822_v18 = vmul.f32 %v2598_v62, %v2527_v23 }
 0x12e   : > { %v2605_v51 = vpop.eup %1830  ;;  %v1047_v48 = vadd.f32 %v2573_v41, %v1012_v44  ;;  %v1048_v27 = vadd.f32 %v2573_v41, %v1013_v54  ;;  %vm658_vm6 = vweird.f32 %v2519_v12  ;;  %v903_v55 = vmul.f32 %v2588_v60, %v902_v36 }
 0x12f   : > { %v832_v4 = vmul.f32 %v2605_v51, %v2534_v57  ;;  %v1021_v42 = vmul.f32 %v2547_v24, %v986_v33  ;;  %v2617_v0 = vmul.f32 %v650_v47, %v2210_v40  ;;  %vm738_vm8 = vweird.f32 %v2529_v29  ;;  %vm2646_vm9 = vmor %vm657_vm3, %vm658_vm6 }
 0x130   : > { %v823_v44 = vmul.f32 %v2598_v62, %v822_v18  ;;  %1834 = vrsqrt.f32 %v2596_v16  ;;  %v543_v54 = vpop.xlane.xlu0 %542  ;;  %v730_v40 = vsel %vm2623_vm7, %v2487_v45, %v726_v6  ;;  %v656_v33 = vmul.f32 %v2519_v12, %v655_v37  ;;  %v513_v61 = vpop.xlane.xlu1 %512  ;;  %vm2664_vm12 = vmor %vm737_vm5, %vm738_vm8 }
 0x131   : > { %v833_v30 = vmul.f32 %v2605_v51, %v832_v4  ;;  %1836 = vrsqrt.f32 %v2603_v28  ;;  %v736_v47 = vmul.f32 %v2529_v29, %v735_v53  ;;  %v904_v36 = vmul.f32 0.5, %v903_v55  ;;  %v516_v6 = vpop.xlane.xlu2 %515 }
 0x132   : > { %v824_v10 = vmul.f32 0.5, %v823_v44  ;;  %v1071_v43 = vpack.c.bf16 %v1048_v27, %v1047_v48  ;;  %v1055_v63 = vadd.f32 %v2573_v41, %v1020_v34  ;;  %v1056_v3 = vadd.f32 %v2573_v41, %v1021_v42 }
 0x133   : > { %v2637_v18 = vpop.eup %1832  ;;  %v834_v56 = vmul.f32 0.5, %v833_v30  ;;  %v597_v45 = vmul.f32 %v543_v54, %v2192_v15  ;;  %vm907_vm10 = vweird.f32 %v2517_v17  ;;  %vm827_vm11 = vweird.f32 %v2527_v23 }
 0x134   : > { %v672_v34 = vmul.f32 %v2637_v18, %v2585_v11  ;;  %1676 = vmatmul.msk.bf16.vlgmr.msra.gmra.mxu2 %vm281_vm0, %v1071_v43  ;;  %v587_v53 = vmul.f32 %v513_v61, %v2192_v15  ;;  %v969_v48 = vmul.f32 %v730_v40, %v2239_v8  ;;  %v660_v2 = vsel %vm2646_vm9, %v2519_v12, %v656_v33 }
 0x135   : > { %v825_v55 = vsub.f32 1.5, %v824_v10  ;;  %vm837_vm13 = vweird.f32 %v2534_v57  ;;  %v1075_v43 = vpack.c.bf16 %v1056_v3, %v1055_v63  ;;  %v740_v8 = vsel %vm2664_vm12, %v2529_v29, %v736_v47 }
 0x136   : > { %v2669_v4 = vpop.eup %1834  ;;  %v905_v42 = vsub.f32 1.5, %v904_v36  ;;  %v673_v12 = vmul.f32 %v2637_v18, %v672_v34  ;;  %v2675_v44 = vadd.f32 1e-06, %v597_v45  ;;  %vm908_vm14 = vweird.f32 %v2588_v60 }
 0x137   : > { %v2677_v50 = vpop.eup %1836  ;;  %v835_v54 = vsub.f32 1.5, %v834_v56  ;;  %v912_v10 = vmul.f32 %v2669_v4, %v2596_v16  ;;  %1680 = vmatmul.msk.bf16.vlgmr.msra.gmra.mxu3 %vm281_vm0, %v1075_v43  ;;  %v2683_v63 = vadd.f32 1e-06, %v587_v53  ;;  %v962_v40 = vmul.f32 %v660_v2, %v2228_v58  ;;  %vm2719_vm5 = vmor %vm907_vm10, %vm908_vm14 }
 0x138   : > { %vm828_vm15 = vweird.f32 %v2598_v62  ;;  %v662_v29 = vmul.f32 %v2677_v50, %v2603_v28  ;;  %v588_v33 = vmul.f32 %v516_v6, %v2192_v15  ;;  %v970_v30 = vmul.f32 %v740_v8, %v2236_v9  ;;  %v570_v53 = vpop.xlane.xlu0 %569  ;;  %v546_v43 = vpop.xlane.xlu1 %545 }
 0x139   : > { %v826_v56 = vmul.f32 %v2598_v62, %v825_v55  ;;  %vm838_vm1 = vweird.f32 %v2605_v51  ;;  %v913_v61 = vmul.f32 %v2669_v4, %v912_v10  ;;  %v2695_v47 = vmul.f32 %v2588_v60, %v905_v42  ;;  %vm2706_vm3 = vmor %vm827_vm11, %vm828_vm15  ;;  %v567_v8 = vpop.xlane.xlu2 %566 }
 0x13a   : > { %v674_v36 = vmul.f32 0.5, %v673_v12  ;;  %v663_v58 = vmul.f32 %v2677_v50, %v662_v29  ;;  %1838 = vrsqrt.f32 %v2675_v44  ;;  %v836_v3 = vmul.f32 %v2605_v51, %v835_v54  ;;  %vm2738_vm7 = vmor %vm837_vm13, %vm838_vm1 }
 0x13b   : > { %v914_v45 = vmul.f32 0.5, %v913_v61  ;;  %vm667_vm2 = vweird.f32 %v2603_v28  ;;  %1840 = vrsqrt.f32 %v2683_v63  ;;  %vm678_vm4 = vweird.f32 %v2637_v18 }
 0x13c   : > { %v664_v6 = vmul.f32 0.5, %v663_v58  ;;  %v2711_v37 = vadd.f32 1e-06, %v588_v33  ;;  %v996_v34 = vmul.f32 %v2547_v24, %v2617_v0  ;;  %v830_v23 = vsel %vm2706_vm3, %v2598_v62, %v826_v56 }
 0x13d   : > { %vm677_vm6 = vweird.f32 %v2585_v11  ;;  %v997_v27 = vmul.f32 %v2547_v24, %v962_v40  ;;  %v1004_v55 = vmul.f32 %v2547_v24, %v969_v48  ;;  %v1005_v0 = vmul.f32 %v2547_v24, %v970_v30 }
 0x13e   : > { %v910_v17 = vsel %vm2719_vm5, %v2588_v60, %v2695_v47  ;;  %v675_v42 = vsub.f32 1.5, %v674_v36  ;;  %vm917_vm8 = vweird.f32 %v2596_v16  ;;  %v665_v48 = vsub.f32 1.5, %v664_v6  ;;  %vm2797_vm12 = vmor %vm677_vm6, %vm678_vm4 }
 0x13f   : > { %1842 = vrsqrt.f32 %v2711_v37  ;;  %v840_v12 = vsel %vm2738_vm7, %v2605_v51, %v836_v3  ;;  %v915_v54 = vsub.f32 1.5, %v914_v45  ;;  %v1031_v60 = vadd.f32 %v2573_v41, %v996_v34 }
 0x140   : > { %v1032_v10 = vadd.f32 %v2573_v41, %v997_v27  ;;  %v2749_v57 = vpop.eup %1838  ;;  %v979_v40 = vmul.f32 %v830_v23, %v2249_v21  ;;  %v1039_v29 = vadd.f32 %v2573_v41, %v1004_v55  ;;  %v1040_v33 = vadd.f32 %v2573_v41, %v1005_v0 }
 0x141   : > { %v606_v30 = vmul.f32 %v570_v53, %v2192_v15  ;;  %v2755_v56 = vpop.eup %1840  ;;  %v666_v61 = vmul.f32 %v2677_v50, %v665_v48  ;;  %vm668_vm9 = vweird.f32 %v2677_v50  ;;  %v842_v51 = vmul.f32 %v2749_v57, %v2675_v44  ;;  %v519_v48 = vpop.xlane.xlu0 %518 }
 0x142   : > { %v1063_v47 = vpack.c.bf16 %v1032_v10, %v1031_v60  ;;  %v980_v36 = vmul.f32 %v840_v12, %v2260_v14  ;;  %v676_v21 = vmul.f32 %v2637_v18, %v675_v42  ;;  %vm918_vm10 = vweird.f32 %v2669_v4  ;;  %vm2775_vm11 = vmor %vm667_vm2, %vm668_vm9  ;;  %v498_v60 = vpop.xlane.xlu2 %497 }
 0x143   : > { %v742_v58 = vmul.f32 %v2755_v56, %v2683_v63  ;;  %v916_v3 = vmul.f32 %v2669_v4, %v915_v54  ;;  %v843_v45 = vmul.f32 %v2749_v57, %v842_v51  ;;  %v1067_v9 = vpack.c.bf16 %v1040_v33, %v1039_v29  ;;  %vm2809_vm13 = vmor %vm917_vm8, %vm918_vm10  ;;  %v495_v54 = vpop.xlane.xlu1 %494 }
 0x144   : > { %1668 = vmatmul.msk.bf16.vlgmr.msra.gmra.mxu0 %vm281_vm0, %v1063_v47  ;;  %v2769_v6 = vadd.f32 1e-06, %v606_v30  ;;  %v598_v2 = vmul.f32 %v546_v43, %v2192_v15  ;;  %v605_v23 = vmul.f32 %v567_v8, %v2192_v15  ;;  %v1014_v27 = vmul.f32 %v2547_v24, %v979_v40 }
 0x145   : > { %v2771_v34 = vpop.eup %1842  ;;  %v743_v53 = vmul.f32 %v2755_v56, %v742_v58  ;;  %v670_v55 = vsel %vm2775_vm11, %v2677_v50, %v666_v61  ;;  %v844_v0 = vmul.f32 0.5, %v843_v45  ;;  %1672 = vmatmul.msk.bf16.vlgmr.msra.gmra.mxu1 %vm281_vm0, %v1067_v9  ;;  %v2791_v62 = vmul.f32 %v910_v17, %v2257_v39 }
 0x146   : > { %v752_v28 = vmul.f32 %v2771_v34, %v2711_v37  ;;  %1844 = vrsqrt.f32 %v2769_v6  ;;  %v2801_v8 = vadd.f32 1e-06, %v598_v2  ;;  %v2803_v42 = vadd.f32 1e-06, %v605_v23 }
 0x147   : > { %v744_v50 = vmul.f32 0.5, %v743_v53  ;;  %vm847_vm14 = vweird.f32 %v2675_v44  ;;  %v1015_v17 = vmul.f32 %v2547_v24, %v980_v36  ;;  %v1049_v12 = vadd.f32 %v2573_v41, %v1014_v27 }
 0x148   : > { %v753_v11 = vmul.f32 %v2771_v34, %v752_v28  ;;  %v680_v10 = vsel %vm2797_vm12, %v2637_v18, %v676_v21  ;;  %v920_v16 = vsel %vm2809_vm13, %v2669_v4, %v916_v3  ;;  %v963_v40 = vmul.f32 %v670_v55, %v2281_v20 }
 0x149   : > { %1846 = vrsqrt.f32 %v2801_v8  ;;  %v845_v29 = vsub.f32 1.5, %v844_v0  ;;  %v1050_v30 = vadd.f32 %v2573_v41, %v1015_v17  ;;  %v745_v61 = vsub.f32 1.5, %v744_v50 }
 0x14a   : > { %v754_v33 = vmul.f32 0.5, %v753_v11  ;;  %1848 = vrsqrt.f32 %v2803_v42  ;;  %v589_v51 = vmul.f32 %v519_v48, %v2192_v15  ;;  %v581_v47 = vmul.f32 %v495_v54, %v2192_v15 }
 0x14b   : > { %v582_v18 = vmul.f32 %v498_v60, %v2192_v15  ;;  %v964_v4 = vmul.f32 %v680_v10, %v2278_v7  ;;  %vm747_vm15 = vweird.f32 %v2683_v63  ;;  %vm757_vm1 = vweird.f32 %v2711_v37  ;;  %v552_v63 = vpop.xlane.xlu0 %551 }
 0x14c   : > { %v2830_v36 = vpop.eup %1844  ;;  %v1072_v20 = vpack.c.bf16 %v1050_v30, %v1049_v12  ;;  %v988_v21 = vmul.f32 %v920_v16, %v2270_v46  ;;  %vm848_vm2 = vweird.f32 %v2749_v57  ;;  %v755_v58 = vsub.f32 1.5, %v754_v33  ;;  %v522_v12 = vpop.xlane.xlu1 %521 }
 0x14d   : > { %v932_v3 = vmul.f32 %v2830_v36, %v2769_v6  ;;  %v846_v45 = vmul.f32 %v2749_v57, %v845_v29  ;;  %v2841_v9 = vadd.f32 1e-06, %v589_v51  ;;  %v2843_v7 = vadd.f32 1e-06, %v581_v47  ;;  %vm2864_vm5 = vmor %vm847_vm14, %vm848_vm2 }
 0x14e   : > { %1677 = vmatmul.msk.bf16.gmra.mxu2 %vm281_vm0, %v1072_v20  ;;  %v998_v14 = vmul.f32 %v2547_v24, %v963_v40  ;;  %v746_v46 = vmul.f32 %v2755_v56, %v745_v61  ;;  %vm748_vm3 = vweird.f32 %v2755_v56  ;;  %v2851_v23 = vadd.f32 1e-06, %v582_v18 }
 0x14f   : > { %v2846_v53 = vpop.eup %1846  ;;  %v933_v2 = vmul.f32 %v2830_v36, %v932_v3  ;;  %vm758_vm4 = vweird.f32 %v2771_v34  ;;  %1850 = vrsqrt.f32 %v2841_v9  ;;  %v999_v0 = vmul.f32 %v2547_v24, %v964_v4  ;;  %vm2877_vm7 = vmor %vm747_vm15, %vm748_vm3 }
 0x150   : > { %v2853_v27 = vpop.eup %1848  ;;  %v852_v55 = vmul.f32 %v2846_v53, %v2801_v8  ;;  %v756_v43 = vmul.f32 %v2771_v34, %v755_v58  ;;  %vm937_vm6 = vweird.f32 %v2769_v6  ;;  %v850_v39 = vsel %vm2864_vm5, %v2749_v57, %v846_v45  ;;  %vm2893_vm8 = vmor %vm757_vm1, %vm758_vm4 }
 0x151   : > { %v934_v50 = vmul.f32 0.5, %v933_v2  ;;  %v922_v48 = vmul.f32 %v2853_v27, %v2803_v42  ;;  %1852 = vrsqrt.f32 %v2843_v7  ;;  %v1033_v17 = vadd.f32 %v2573_v41, %v998_v14 }
 0x152   : > { %v853_v11 = vmul.f32 %v2846_v53, %v852_v55  ;;  %v750_v54 = vsel %vm2877_vm7, %v2755_v56, %v746_v46  ;;  %1854 = vrsqrt.f32 %v2851_v23  ;;  %vm857_vm9 = vweird.f32 %v2801_v8 }
 0x153   : > { %v935_v60 = vsub.f32 1.5, %v934_v50  ;;  %v923_v57 = vmul.f32 %v2853_v27, %v922_v48  ;;  %v1034_v40 = vadd.f32 %v2573_v41, %v999_v0  ;;  %v1022_v56 = vmul.f32 %v2547_v24, %v2791_v62 }
 0x154   : > { %v854_v16 = vmul.f32 0.5, %v853_v11  ;;  %v1023_v29 = vmul.f32 %v2547_v24, %v988_v21  ;;  %v2903_v33 = vmul.f32 %v850_v39, %v2299_v13  ;;  %v760_v37 = vsel %vm2893_vm8, %v2771_v34, %v756_v43  ;;  %v549_v21 = vpop.xlane.xlu2 %548 }
 0x155   : > { %v924_v30 = vmul.f32 0.5, %v923_v57  ;;  %v590_v61 = vmul.f32 %v522_v12, %v2192_v15  ;;  %v2909_v51 = vpop.eup %1850  ;;  %v1064_v18 = vpack.c.bf16 %v1034_v40, %v1033_v17  ;;  %v1057_v4 = vadd.f32 %v2573_v41, %v1022_v56  ;;  %v573_v57 = vpop.xlane.xlu1 %572 }
 0x156   : > { %v855_v47 = vsub.f32 1.5, %v854_v16  ;;  %v1058_v62 = vadd.f32 %v2573_v41, %v1023_v29  ;;  %v971_v20 = vmul.f32 %v750_v54, %v2291_v5  ;;  %v936_v13 = vmul.f32 %v2830_v36, %v935_v60 }
 0x157   : > { %vm938_vm10 = vweird.f32 %v2830_v36  ;;  %vm927_vm11 = vweird.f32 %v2803_v42  ;;  %v762_v34 = vmul.f32 %v2909_v51, %v2841_v9  ;;  %v2919_v58 = vpop.eup %1852  ;;  %v925_v3 = vsub.f32 1.5, %v924_v30  ;;  %1669 = vmatmul.msk.bf16.gmra.mxu0 %vm281_vm0, %v1064_v18 }
 0x158   : > { %v1076_v45 = vpack.c.bf16 %v1058_v62, %v1057_v4  ;;  %v2922_v14 = vadd.f32 1e-06, %v590_v61  ;;  %v600_v5 = vmul.f32 %v552_v63, %v2192_v15  ;;  %v2925_v46 = vpop.eup %1854  ;;  %v972_v2 = vmul.f32 %v760_v37, %v2302_v26  ;;  %vm2936_vm13 = vmor %vm937_vm6, %vm938_vm10  ;;  %v501_v63 = vpop.xlane.xlu0 %500 }
 0x159   : > { %vm858_vm12 = vweird.f32 %v2846_v53  ;;  %v763_v55 = vmul.f32 %v2909_v51, %v762_v34  ;;  %v682_v0 = vmul.f32 %v2919_v58, %v2843_v7  ;;  %v856_v43 = vmul.f32 %v2846_v53, %v855_v47 }
 0x15a   : > { %vm928_vm14 = vweird.f32 %v2853_v27  ;;  %v692_v26 = vmul.f32 %v2925_v46, %v2851_v23  ;;  %1681 = vmatmul.msk.bf16.gmra.mxu3 %vm281_vm0, %v1076_v45  ;;  %1856 = vrsqrt.f32 %v2922_v14  ;;  %v940_v50 = vsel %vm2936_vm13, %v2830_v36, %v936_v13  ;;  %vm2961_vm3 = vmor %vm857_vm9, %vm858_vm12 }
 0x15b   : > { %v764_v6 = vmul.f32 0.5, %v763_v55  ;;  %vm767_vm15 = vweird.f32 %v2841_v9  ;;  %v683_v48 = vmul.f32 %v2919_v58, %v682_v0  ;;  %v926_v39 = vmul.f32 %v2853_v27, %v925_v3  ;;  %vm2983_vm5 = vmor %vm927_vm11, %vm928_vm14 }
 0x15c   : > { %vm768_vm1 = vweird.f32 %v2909_v51  ;;  %vm687_vm2 = vweird.f32 %v2843_v7  ;;  %v693_v44 = vmul.f32 %v2925_v46, %v692_v26  ;;  %v2955_v11 = vadd.f32 1e-06, %v600_v5  ;;  %v576_v13 = vpop.xlane.xlu2 %575 }
 0x15d   : > { %v765_v17 = vsub.f32 1.5, %v764_v6  ;;  %v684_v12 = vmul.f32 0.5, %v683_v48  ;;  %v599_v54 = vmul.f32 %v549_v21, %v2192_v15  ;;  %v1006_v60 = vmul.f32 %v2547_v24, %v971_v20  ;;  %vm3002_vm7 = vmor %vm767_vm15, %vm768_vm1  ;;  %v504_v36 = vpop.xlane.xlu1 %503 }
 0x15e   : > { %v860_v10 = vsel %vm2961_vm3, %v2846_v53, %v856_v43  ;;  %v694_v16 = vmul.f32 0.5, %v693_v44  ;;  %vm697_vm4 = vweird.f32 %v2851_v23  ;;  %1858 = vrsqrt.f32 %v2955_v11 }
 0x15f   : > { %v1007_v8 = vmul.f32 %v2547_v24, %v972_v2  ;;  %v766_v40 = vmul.f32 %v2909_v51, %v765_v17  ;;  %v685_v56 = vsub.f32 1.5, %v684_v12  ;;  %v2974_v29 = vadd.f32 1e-06, %v599_v54 }
 0x160   : > { %v1041_v37 = vadd.f32 %v2573_v41, %v1006_v60  ;;  %v2977_v30 = vpop.eup %1856  ;;  %v695_v61 = vsub.f32 1.5, %v694_v16  ;;  %v607_v18 = vmul.f32 %v573_v57, %v2192_v15  ;;  %v583_v4 = vmul.f32 %v501_v63, %v2192_v15 }
 0x161   : > { %v1042_v47 = vadd.f32 %v2573_v41, %v1007_v8  ;;  %v990_v62 = vmul.f32 %v940_v50, %v2320_v19  ;;  %v930_v20 = vsel %vm2983_vm5, %v2853_v27, %v926_v39  ;;  %vm688_vm6 = vweird.f32 %v2919_v58 }
 0x162   : > { %v772_v42 = vmul.f32 %v2977_v30, %v2922_v14  ;;  %v982_v34 = vmul.f32 %v860_v10, %v2312_v35  ;;  %v686_v19 = vmul.f32 %v2919_v58, %v685_v56  ;;  %vm698_vm8 = vweird.f32 %v2925_v46  ;;  %vm3026_vm9 = vmor %vm687_vm2, %vm688_vm6  ;;  %v528_v56 = vpop.xlane.xlu0 %527 }
 0x163   : > { %1860 = vrsqrt.f32 %v2974_v29  ;;  %v770_v27 = vsel %vm3002_vm7, %v2909_v51, %v766_v40  ;;  %v1068_v3 = vpack.c.bf16 %v1042_v47, %v1041_v37  ;;  %v3013_v45 = vadd.f32 1e-06, %v607_v18  ;;  %vm3048_vm12 = vmor %vm697_vm4, %vm698_vm8 }
 0x164   : > { %v773_v35 = vmul.f32 %v2977_v30, %v772_v42  ;;  %v3015_v9 = vpop.eup %1858  ;;  %v989_v5 = vmul.f32 %v930_v20, %v2323_v32  ;;  %v696_v2 = vmul.f32 %v2925_v46, %v695_v61  ;;  %v3019_v55 = vadd.f32 1e-06, %v583_v4 }
 0x165   : > { %v608_v0 = vmul.f32 %v576_v13, %v2192_v15  ;;  %vm777_vm10 = vweird.f32 %v2922_v14  ;;  %vm778_vm11 = vweird.f32 %v2977_v30  ;;  %v872_v32 = vmul.f32 %v3015_v9, %v2955_v11  ;;  %1673 = vmatmul.msk.bf16.gmra.mxu1 %vm281_vm0, %v1068_v3 }
 0x166   : > { %v774_v28 = vmul.f32 0.5, %v773_v35  ;;  %v3036_v43 = vmul.f32 %v770_v27, %v2341_v25  ;;  %v690_v7 = vsel %vm3026_vm9, %v2919_v58, %v686_v19  ;;  %1862 = vrsqrt.f32 %v3013_v45  ;;  %vm3079_vm15 = vmor %vm777_vm10, %vm778_vm11  ;;  %v525_v35 = vpop.xlane.xlu2 %524 }
 0x167   : > { %v3042_v26 = vadd.f32 1e-06, %v608_v0  ;;  %v873_v25 = vmul.f32 %v3015_v9, %v872_v32  ;;  %vm877_vm13 = vweird.f32 %v2955_v11  ;;  %1864 = vrsqrt.f32 %v3019_v55 }
 0x168   : > { %v775_v6 = vsub.f32 1.5, %v774_v28  ;;  %v1016_v58 = vmul.f32 %v2547_v24, %v2903_v33  ;;  %v700_v23 = vsel %vm3048_vm12, %v2925_v46, %v696_v2  ;;  %v1017_v39 = vmul.f32 %v2547_v24, %v982_v34 }
 0x169   : > { %v3057_v48 = vpop.eup %1860  ;;  %1866 = vrsqrt.f32 %v3042_v26  ;;  %v1024_v44 = vmul.f32 %v2547_v24, %v989_v5  ;;  %v965_v17 = vmul.f32 %v690_v7, %v2333_v59  ;;  %v874_v54 = vmul.f32 0.5, %v873_v25 }
 0x16a   : > { %v776_v12 = vmul.f32 %v2977_v30, %v775_v6  ;;  %v862_v33 = vmul.f32 %v3057_v48, %v2974_v29  ;;  %vm867_vm14 = vweird.f32 %v2974_v29  ;;  %v1051_v60 = vadd.f32 %v2573_v41, %v1016_v58 }
 0x16b   : > { %v1052_v46 = vadd.f32 %v2573_v41, %v1017_v39  ;;  %v1025_v57 = vmul.f32 %v2547_v24, %v990_v62  ;;  %v1059_v63 = vadd.f32 %v2573_v41, %v1024_v44  ;;  %v966_v10 = vmul.f32 %v700_v23, %v2344_v38 }
 0x16c   : > { %v875_v16 = vsub.f32 1.5, %v874_v54  ;;  %v863_v8 = vmul.f32 %v3057_v48, %v862_v33  ;;  %v584_v40 = vmul.f32 %v504_v36, %v2192_v15  ;;  %v1863_v37 = vpop.eup %1862  ;;  %v780_v53 = vsel %vm3079_vm15, %v2977_v30, %v776_v12 }
 0x16d   : > { %vm878_vm1 = vweird.f32 %v3015_v9  ;;  %v1073_v38 = vpack.c.bf16 %v1052_v46, %v1051_v60  ;;  %v1060_v14 = vadd.f32 %v2573_v41, %v1025_v57  ;;  %v3090_v61 = vpop.eup %1864  ;;  %vm868_vm2 = vweird.f32 %v3057_v48 }
 0x16e   : > { %v876_v47 = vmul.f32 %v3015_v9, %v875_v16  ;;  %v864_v18 = vmul.f32 0.5, %v863_v8  ;;  %v942_v4 = vmul.f32 %v1863_v37, %v3013_v45  ;;  %vm947_vm3 = vweird.f32 %v3013_v45  ;;  %vm3109_vm5 = vmor %vm877_vm13, %vm878_vm1 }
 0x16f   : > { %v1867_v62 = vpop.eup %1866  ;;  %v702_v30 = vmul.f32 %v3090_v61, %v3019_v55  ;;  %1678 = vmatmul.msk.bf16.gmra.mxu2 %vm281_vm0, %v1073_v38  ;;  %v1077_v20 = vpack.c.bf16 %v1060_v14, %v1059_v63  ;;  %v3099_v42 = vadd.f32 1e-06, %v584_v40  ;;  %v592_v13 = vmul.f32 %v528_v56, %v2192_v15  ;;  %vm3125_vm8 = vmor %vm867_vm14, %vm868_vm2 }
 0x170   : > { %v974_v34 = vmul.f32 %v780_v53, %v2354_v22  ;;  %v865_v21 = vsub.f32 1.5, %v864_v18  ;;  %v943_v19 = vmul.f32 %v1863_v37, %v942_v4  ;;  %v952_v27 = vmul.f32 %v1867_v62, %v3042_v26 }
 0x171   : > { %vm957_vm4 = vweird.f32 %v3042_v26  ;;  %vm948_vm6 = vweird.f32 %v1863_v37  ;;  %v703_v5 = vmul.f32 %v3090_v61, %v702_v30  ;;  %vm708_vm7 = vweird.f32 %v3090_v61  ;;  %1682 = vmatmul.msk.bf16.gmra.mxu3 %vm281_vm0, %v1077_v20 }
 0x172   : > { %1868 = vrsqrt.f32 %v3099_v42  ;;  %v880_v22 = vsel %vm3109_vm5, %v3015_v9, %v876_v47  ;;  %v866_v2 = vmul.f32 %v3057_v48, %v865_v21  ;;  %v944_v11 = vmul.f32 0.5, %v943_v19  ;;  %vm949_vm10 = vmor %vm947_vm3, %vm948_vm6 }
 0x173   : > { %v953_v0 = vmul.f32 %v1867_v62, %v952_v27  ;;  %v704_v28 = vmul.f32 0.5, %v703_v5  ;;  %v3129_v32 = vadd.f32 1e-06, %v592_v13  ;;  %v591_v7 = vmul.f32 %v525_v35, %v2192_v15 }
 0x174   : > { %v1000_v50 = vmul.f32 %v2547_v24, %v965_v17  ;;  %v870_v9 = vsel %vm3125_vm8, %v3057_v48, %v866_v2  ;;  %v945_v6 = vsub.f32 1.5, %v944_v11  ;;  %v1001_v58 = vmul.f32 %v2547_v24, %v966_v10  ;;  %v3517_v2 = vld [vmem:[#allocation5_spill] sm:$0xff] }
 0x175   : > { %v954_v25 = vmul.f32 0.5, %v953_v0  ;;  %v984_v29 = vmul.f32 %v880_v22, %v2368_v1  ;;  %v705_v23 = vsub.f32 1.5, %v704_v28  ;;  %vm958_vm9 = vweird.f32 %v1867_v62 }
 0x176   : > { %1870 = vrsqrt.f32 %v3129_v32  ;;  %v946_v39 = vmul.f32 %v1863_v37, %v945_v6  ;;  %v3139_v36 = vadd.f32 1e-06, %v591_v7  ;;  %v1035_v15 = vadd.f32 %v2573_v41, %v1000_v50  ;;  %vm959_vm11 = vmor %vm957_vm4, %vm958_vm9 }
 0x177   : > { %v955_v44 = vsub.f32 1.5, %v954_v25  ;;  %v983_v12 = vmul.f32 %v870_v9, %v2362_v31  ;;  %v1036_v48 = vadd.f32 %v2573_v41, %v1001_v58  ;;  %v1008_v1 = vmul.f32 %v2547_v24, %v3036_v43  ;;  %v3518_v9 = vld [vmem:[#allocation6_spill] sm:$0xff] }
 0x178   : > { %v1869_v17 = vpop.eup %1868  ;;  %v1009_v54 = vmul.f32 %v2547_v24, %v974_v34  ;;  %v950_v33 = vsel %vm949_vm10, %v1863_v37, %v946_v39  ;;  %v706_v60 = vmul.f32 %v3090_v61, %v705_v23  ;;  %1872 = vrsqrt.f32 %v3139_v36 }
 0x179   : > { %v956_v46 = vmul.f32 %v1867_v62, %v955_v44  ;;  %v712_v57 = vmul.f32 %v1869_v17, %v3099_v42  ;;  %v991_v63 = vmul.f32 %v950_v33, %v2375_v52  ;;  %vm707_vm12 = vweird.f32 %v3019_v55  ;;  %v3519_v44 = vld [vmem:[#allocation4_spill] sm:$0xff] }
 0x17a   : > { %v1065_v43 = vpack.c.bf16 %v1036_v48, %v1035_v15  ;;  %vm3160_vm13 = vmor %vm707_vm12, %vm708_vm7  ;;  %v1043_v16 = vadd.f32 %v2573_v41, %v1008_v1  ;;  %v1044_v26 = vadd.f32 %v2573_v41, %v1009_v54  ;;  %v1018_v8 = vmul.f32 %v2547_v24, %v983_v12 }
 0x17b   : > { %v960_v31 = vsel %vm959_vm11, %v1867_v62, %v956_v46  ;;  %v713_v45 = vmul.f32 %v1869_v17, %v712_v57  ;;  %v710_v55 = vsel %vm3160_vm13, %v3090_v61, %v706_v60  ;;  %v1019_v37 = vmul.f32 %v2547_v24, %v984_v29  ;;  %v3516_v62 = vld [vmem:[#allocation3_spill] sm:$0xff] }
 0x17c   : > { %v1871_v10 = vpop.eup %1870  ;;  %v992_v52 = vmul.f32 %v960_v31, %v2384_v49  ;;  %1670 = vmatmul.msk.bf16.gmra.mxu0 %vm281_vm0, %v1065_v43  ;;  %v1069_v53 = vpack.c.bf16 %v1044_v26, %v1043_v16  ;;  %v1053_v49 = vadd.f32 %v2573_v41, %v1018_v8  ;;  %v1026_v38 = vmul.f32 %v2547_v24, %v991_v63 }
 0x17d   : > { %v714_v40 = vmul.f32 0.5, %v713_v45  ;;  %v792_v56 = vmul.f32 %v1871_v10, %v3129_v32  ;;  %vm718_vm14 = vweird.f32 %v1869_v17  ;;  %v1054_v4 = vadd.f32 %v2573_v41, %v1019_v37 }
 0x17e   : > { %v1027_v14 = vmul.f32 %v2547_v24, %v992_v52  ;;  %v1873_v61 = vpop.eup %1872  ;;  %v967_v30 = vmul.f32 %v710_v55, %v3516_v62  ;;  %1674 = vmatmul.msk.bf16.gmra.mxu1 %vm281_vm0, %v1069_v53  ;;  %v1061_v20 = vadd.f32 %v2573_v41, %v1026_v38  ;;  %vm717_vm15 = vweird.f32 %v3099_v42 }
 0x17f   : > { %v715_v47 = vsub.f32 1.5, %v714_v40  ;;  %v793_v18 = vmul.f32 %v1871_v10, %v792_v56  ;;  %v782_v19 = vmul.f32 %v1873_v61, %v3139_v36  ;;  %vm719_vm1 = vmor %vm717_vm15, %vm718_vm14  ;;  %v1074_v27 = vpack.c.bf16 %v1054_v4, %v1053_v49 }
 0x180   : > { %v1062_v13 = vadd.f32 %v2573_v41, %v1027_v14  ;;  %vm798_vm2 = vweird.f32 %v1871_v10  ;;  %v1002_v0 = vmul.f32 %v2547_v24, %v967_v30  ;;  %vm797_vm3 = vweird.f32 %v3129_v32 }
 0x181   : > { %v716_v34 = vmul.f32 %v1869_v17, %v715_v47  ;;  %v794_v21 = vmul.f32 0.5, %v793_v18  ;;  %v783_v22 = vmul.f32 %v1873_v61, %v782_v19  ;;  %1679 = vmatmul.msk.bf16.gmra.mxu2 %vm281_vm0, %v1074_v27  ;;  %vm799_vm4 = vmor %vm797_vm3, %vm798_vm2  ;;  %vm788_vm5 = vweird.f32 %v1873_v61 }
 0x182   : > { %v1078_v35 = vpack.c.bf16 %v1062_v13, %v1061_v20  ;;  %v1037_v25 = vadd.f32 %v2573_v41, %v1002_v0  ;;  %vm787_vm6 = vweird.f32 %v3139_v36  ;;  %v3205_v36 = vld [vmem:[%s3451_s4] ss:$0 sm:$0xff]  ;;  %vm1276_vm8 = vcmask 388096  }
 0x183   : > { %v720_v3 = vsel %vm719_vm1, %v1869_v17, %v716_v34  ;;  %v795_v5 = vsub.f32 1.5, %v794_v21  ;;  %v784_v42 = vmul.f32 0.5, %v783_v22  ;;  %vm789_vm7 = vmor %vm787_vm6, %vm788_vm5 }
 0x184   : > { %v968_v11 = vmul.f32 %v720_v3, %v3517_v2  ;;  %1683 = vmatmul.msk.bf16.gmra.mxu3 %vm281_vm0, %v1078_v35 }
 0x185   : > { %v796_v51 = vmul.f32 %v1871_v10, %v795_v5  ;;  %v785_v50 = vsub.f32 1.5, %v784_v42 }
 0x186   : > { %v1003_v28 = vmul.f32 %v2547_v24, %v968_v11 }
 0x187   : > { %v800_v7 = vsel %vm799_vm4, %v1871_v10, %v796_v51  ;;  %v786_v29 = vmul.f32 %v1873_v61, %v785_v50 }
 0x188   : > { %v976_v6 = vmul.f32 %v800_v7, %v3518_v9  ;;  %v1038_v58 = vadd.f32 %v2573_v41, %v1003_v28 }
 0x189   : > { %v790_v39 = vsel %vm789_vm7, %v1873_v61, %v786_v29 }
 0x18a   : > { %v1066_v23 = vpack.c.bf16 %v1038_v58, %v1037_v25  ;;  %v1011_v32 = vmul.f32 %v2547_v24, %v976_v6  ;;  %v975_v15 = vmul.f32 %v790_v39, %v3519_v44 }
 0x18c   : > { %1671 = vmatmul.msk.bf16.gmra.mxu0 %vm281_vm0, %v1066_v23  ;;  %v1010_v17 = vmul.f32 %v2547_v24, %v975_v15  ;;  %v1046_v12 = vadd.f32 %v2573_v41, %v1011_v32 }
 0x18e   : > { %v1045_v48 = vadd.f32 %v2573_v41, %v1010_v17 }
 0x190   : > { %v1070_v1 = vpack.c.bf16 %v1046_v12, %v1045_v48 }
 0x192   : > { %1675 = vmatmul.msk.bf16.gmra.mxu1 %vm281_vm0, %v1070_v1 }
 0x1b7   : > { %v1204_v54 = vpop.f32.mrf.mxu2 }
 0x1b8   : > { %v1205_v33 = vadd.f32 %v3205_v36, %v1204_v54 }
 0x1ba   : > { %v1260_v60 = vpack.c.bf16 %v1205_v33, %v1205_v33  ;;  %v1224_v24 = vpop.f32.mrf.mxu3 }
 0x1bb   : > { %v1225_v46 = vadd.f32 %v3205_v36, %v1224_v24 }
 0x1bc   : > { %1293 = vst.msk [vmem:[%s3209_s29 + $0x40] sm:$0xf] %vm1276_vm8, %v1260_v60 }
 0x1bd   : > { %v1268_v41 = vpack.c.bf16 %v1225_v46, %v1225_v46 }
 0x1bf   : > { %1301 = vst.msk [vmem:[%s3209_s29 + $0x60] sm:$0xf] %vm1276_vm8, %v1268_v41  ;;  %v1206_v57 = vpop.f32.mrf.mxu2 }
 0x1c0   : > { %v1207_v31 = vadd.f32 %v3205_v36, %v1206_v57 }
 0x1c1   : > { %v1164_v63 = vpop.f32.mrf.mxu0 }
 0x1c2   : > { %v1165_v45 = vadd.f32 %v3205_v36, %v1164_v63  ;;  %v1184_v43 = vpop.f32.mrf.mxu1  ;;  %v1261_v10 = vpack.c.bf16 %v1207_v31, %v1207_v31  ;;  %v1226_v59 = vpop.f32.mrf.mxu3 }
 0x1c3   : > { %v1185_v16 = vadd.f32 %v3205_v36, %v1184_v43  ;;  %v1227_v26 = vadd.f32 %v3205_v36, %v1226_v59 }
 0x1c4   : > { %v1244_v52 = vpack.c.bf16 %v1165_v45, %v1165_v45  ;;  %1294 = vst.msk [vmem:[%s3209_s29 + $0x44] sm:$0xf] %vm1276_vm8, %v1261_v10 }
 0x1c5   : > { %v1252_v8 = vpack.c.bf16 %v1185_v16, %v1185_v16  ;;  %v1269_v55 = vpack.c.bf16 %v1227_v26, %v1227_v26 }
 0x1c6   : > { %1277 = vst.msk [vmem:[%s3209_s29] sm:$0xf] %vm1276_vm8, %v1244_v52 }
 0x1c7   : > { %1285 = vst.msk [vmem:[%s3209_s29 + $0x20] sm:$0xf] %vm1276_vm8, %v1252_v8 }
 0x1c8   : > { %1302 = vst.msk [vmem:[%s3209_s29 + $0x64] sm:$0xf] %vm1276_vm8, %v1269_v55 }
 0x1c9   : > { %v1166_v40 = vpop.f32.mrf.mxu0 }
 0x1ca   : > { %v1167_v56 = vadd.f32 %v3205_v36, %v1166_v40  ;;  %v1186_v37 = vpop.f32.mrf.mxu1 }
 0x1cb   : > { %v1187_v49 = vadd.f32 %v3205_v36, %v1186_v37 }
 0x1cc   : > { %v1245_v53 = vpack.c.bf16 %v1167_v56, %v1167_v56 }
 0x1cd   : > { %v1253_v38 = vpack.c.bf16 %v1187_v49, %v1187_v49 }
 0x1ce   : > { %1278 = vst.msk [vmem:[%s3209_s29 + $0x4] sm:$0xf] %vm1276_vm8, %v1245_v53 }
 0x1cf   : > { %1286 = vst.msk [vmem:[%s3209_s29 + $0x24] sm:$0xf] %vm1276_vm8, %v1253_v38 }
 0x1d1   : > { %v1209_v14 = vpop.f32.mrf.mxu2 }
 0x1d2   : > { %v1210_v47 = vadd.f32 %v3205_v36, %v1209_v14 }
 0x1d4   : > { %v1262_v18 = vpack.c.bf16 %v1210_v47, %v1210_v47  ;;  %v1169_v4 = vpop.f32.mrf.mxu0 }
 0x1d5   : > { %v1170_v61 = vadd.f32 %v3205_v36, %v1169_v4 }
 0x1d6   : > { %1295 = vst.msk [vmem:[%s3209_s29 + $0x48] sm:$0xf] %vm1276_vm8, %v1262_v18 }
 0x1d7   : > { %v1246_v62 = vpack.c.bf16 %v1170_v61, %v1170_v61 }
 0x1d9   : > { %v1211_v30 = vpop.f32.mrf.mxu2  ;;  %1279 = vst.msk [vmem:[%s3209_s29 + $0x8] sm:$0xf] %vm1276_vm8, %v1246_v62 }
 0x1da   : > { %v1212_v20 = vadd.f32 %v3205_v36, %v1211_v30 }
 0x1dc   : > { %v1263_v13 = vpack.c.bf16 %v1212_v20, %v1212_v20  ;;  %v1171_v21 = vpop.f32.mrf.mxu0 }
 0x1dd   : > { %v1229_v34 = vpop.f32.mrf.mxu3  ;;  %v1172_v27 = vadd.f32 %v3205_v36, %v1171_v21 }
 0x1de   : > { %1296 = vst.msk [vmem:[%s3209_s29 + $0x4c] sm:$0xf] %vm1276_vm8, %v1263_v13  ;;  %v1230_v19 = vadd.f32 %v3205_v36, %v1229_v34 }
 0x1df   : > { %v1247_v3 = vpack.c.bf16 %v1172_v27, %v1172_v27 }
 0x1e0   : > { %v1270_v35 = vpack.c.bf16 %v1230_v19, %v1230_v19 }
 0x1e1   : > { %1280 = vst.msk [vmem:[%s3209_s29 + $0xc] sm:$0xf] %vm1276_vm8, %v1247_v3 }
 0x1e2   : > { %1303 = vst.msk [vmem:[%s3209_s29 + $0x68] sm:$0xf] %vm1276_vm8, %v1270_v35  ;;  %v1189_v5 = vpop.f32.mrf.mxu1 }
 0x1e3   : > { %v1190_v22 = vadd.f32 %v3205_v36, %v1189_v5 }
 0x1e5   : > { %v1254_v2 = vpack.c.bf16 %v1190_v22, %v1190_v22  ;;  %v1231_v11 = vpop.f32.mrf.mxu3 }
 0x1e6   : > { %v1232_v0 = vadd.f32 %v3205_v36, %v1231_v11 }
 0x1e7   : > { %1287 = vst.msk [vmem:[%s3209_s29 + $0x28] sm:$0xf] %vm1276_vm8, %v1254_v2 }
 0x1e8   : > { %v1271_v51 = vpack.c.bf16 %v1232_v0, %v1232_v0 }
 0x1ea   : > { %1304 = vst.msk [vmem:[%s3209_s29 + $0x6c] sm:$0xf] %vm1276_vm8, %v1271_v51  ;;  %v1191_v42 = vpop.f32.mrf.mxu1 }
 0x1eb   : > { %v1192_v28 = vadd.f32 %v3205_v36, %v1191_v42 }
 0x1ed   : > { %v1255_v7 = vpack.c.bf16 %v1192_v28, %v1192_v28 }
 0x1ef   : > { %1288 = vst.msk [vmem:[%s3209_s29 + $0x2c] sm:$0xf] %vm1276_vm8, %v1255_v7 }
 0x1f2   : > { %v1214_v50 = vpop.f32.mrf.mxu2 }
 0x1f3   : > { %v1215_v9 = vadd.f32 %v3205_v36, %v1214_v50 }
 0x1f4   : > { %v1234_v6 = vpop.f32.mrf.mxu3 }
 0x1f5   : > { %v1264_v25 = vpack.c.bf16 %v1215_v9, %v1215_v9  ;;  %v1235_v58 = vadd.f32 %v3205_v36, %v1234_v6 }
 0x1f7   : > { %1297 = vst.msk [vmem:[%s3209_s29 + $0x50] sm:$0xf] %vm1276_vm8, %v1264_v25  ;;  %v1272_v29 = vpack.c.bf16 %v1235_v58, %v1235_v58 }
 0x1f9   : > { %1305 = vst.msk [vmem:[%s3209_s29 + $0x70] sm:$0xf] %vm1276_vm8, %v1272_v29  ;;  %v1174_v23 = vpop.f32.mrf.mxu0 }
 0x1fa   : > { %v1175_v32 = vadd.f32 %v3205_v36, %v1174_v23  ;;  %v1216_v39 = vpop.f32.mrf.mxu2 }
 0x1fb   : > { %v1217_v44 = vadd.f32 %v3205_v36, %v1216_v39  ;;  %v1194_v12 = vpop.f32.mrf.mxu1 }
 0x1fc   : > { %v1248_v15 = vpack.c.bf16 %v1175_v32, %v1175_v32  ;;  %v1236_v17 = vpop.f32.mrf.mxu3  ;;  %v1195_v54 = vadd.f32 %v3205_v36, %v1194_v12 }
 0x1fd   : > { %v1265_v48 = vpack.c.bf16 %v1217_v44, %v1217_v44  ;;  %v1237_v1 = vadd.f32 %v3205_v36, %v1236_v17 }
 0x1fe   : > { %1281 = vst.msk [vmem:[%s3209_s29 + $0x10] sm:$0xf] %vm1276_vm8, %v1248_v15  ;;  %v1256_v60 = vpack.c.bf16 %v1195_v54, %v1195_v54 }
 0x1ff   : > { %1298 = vst.msk [vmem:[%s3209_s29 + $0x54] sm:$0xf] %vm1276_vm8, %v1265_v48  ;;  %v1273_v33 = vpack.c.bf16 %v1237_v1, %v1237_v1 }
 0x200   : > { %1289 = vst.msk [vmem:[%s3209_s29 + $0x30] sm:$0xf] %vm1276_vm8, %v1256_v60 }
 0x201   : > { %1306 = vst.msk [vmem:[%s3209_s29 + $0x74] sm:$0xf] %vm1276_vm8, %v1273_v33  ;;  %v1176_v24 = vpop.f32.mrf.mxu0 }
 0x202   : > { %v1177_v46 = vadd.f32 %v3205_v36, %v1176_v24 }
 0x203   : > { %v1196_v57 = vpop.f32.mrf.mxu1 }
 0x204   : > { %v1249_v41 = vpack.c.bf16 %v1177_v46, %v1177_v46  ;;  %v1197_v63 = vadd.f32 %v3205_v36, %v1196_v57  ;;  %v1219_v31 = vpop.f32.mrf.mxu2 }
 0x205   : > { %v1220_v43 = vadd.f32 %v3205_v36, %v1219_v31 }
 0x206   : > { %1282 = vst.msk [vmem:[%s3209_s29 + $0x14] sm:$0xf] %vm1276_vm8, %v1249_v41  ;;  %v1257_v10 = vpack.c.bf16 %v1197_v63, %v1197_v63 }
 0x207   : > { %v1239_v45 = vpop.f32.mrf.mxu3  ;;  %v1266_v52 = vpack.c.bf16 %v1220_v43, %v1220_v43 }
 0x208   : > { %v1240_v59 = vadd.f32 %v3205_v36, %v1239_v45  ;;  %1290 = vst.msk [vmem:[%s3209_s29 + $0x34] sm:$0xf] %vm1276_vm8, %v1257_v10 }
 0x209   : > { %v1179_v26 = vpop.f32.mrf.mxu0  ;;  %1299 = vst.msk [vmem:[%s3209_s29 + $0x58] sm:$0xf] %vm1276_vm8, %v1266_v52 }
 0x20a   : > { %v1274_v16 = vpack.c.bf16 %v1240_v59, %v1240_v59  ;;  %v1180_v8 = vadd.f32 %v3205_v36, %v1179_v26 }
 0x20c   : > { %1307 = vst.msk [vmem:[%s3209_s29 + $0x78] sm:$0xf] %vm1276_vm8, %v1274_v16  ;;  %v1250_v55 = vpack.c.bf16 %v1180_v8, %v1180_v8  ;;  %v1221_v40 = vpop.f32.mrf.mxu2 }
 0x20d   : > { %v1222_v37 = vadd.f32 %v3205_v36, %v1221_v40 }
 0x20e   : > { %1283 = vst.msk [vmem:[%s3209_s29 + $0x18] sm:$0xf] %vm1276_vm8, %v1250_v55 }
 0x20f   : > { %v1241_v56 = vpop.f32.mrf.mxu3  ;;  %v1199_v49 = vpop.f32.mrf.mxu1  ;;  %v1267_v38 = vpack.c.bf16 %v1222_v37, %v1222_v37 }
 0x210   : > { %v1242_v53 = vadd.f32 %v3205_v36, %v1241_v56  ;;  %v1200_v14 = vadd.f32 %v3205_v36, %v1199_v49 }
 0x211   : > { %v1181_v18 = vpop.f32.mrf.mxu0  ;;  %1300 = vst.msk [vmem:[%s3209_s29 + $0x5c] sm:$0xf] %vm1276_vm8, %v1267_v38 }
 0x212   : > { %v1275_v47 = vpack.c.bf16 %v1242_v53, %v1242_v53  ;;  %v1182_v4 = vadd.f32 %v3205_v36, %v1181_v18  ;;  %v1258_v61 = vpack.c.bf16 %v1200_v14, %v1200_v14 }
 0x214   : > { %1308 = vst.msk [vmem:[%s3209_s29 + $0x7c] sm:$0xf] %vm1276_vm8, %v1275_v47  ;;  %v1251_v62 = vpack.c.bf16 %v1182_v4, %v1182_v4 }
 0x215   : > { %1291 = vst.msk [vmem:[%s3209_s29 + $0x38] sm:$0xf] %vm1276_vm8, %v1258_v61 }
 0x216   : > { %1284 = vst.msk [vmem:[%s3209_s29 + $0x1c] sm:$0xf] %vm1276_vm8, %v1251_v62 }
 0x217   : > { %v1201_v30 = vpop.f32.mrf.mxu1 }
 0x218   : > { %v1202_v20 = vadd.f32 %v3205_v36, %v1201_v30  ;;  %1315 = sbr.rel (!%p2018_p4) target bundleno = 605 (0x25d), region = 44 }
 0x21a   : > { %v1259_v13 = vpack.c.bf16 %v1202_v20, %v1202_v20 }
 0x21c   : > { %1292 = vst.msk [vmem:[%s3209_s29 + $0x3c] sm:$0xf] %vm1276_vm8, %v1259_v13 }
 0x21d   : > { %s3529_s18 = smov (!%p1318_p8, %s1317_s18), 32 }
 0x21e   : > { %s1686_s9 = sshll.u32 %s3529_s18, 2 }
 0x21f   : > { %p1689_p9 = scmp.eq.s32.totalorder %s1686_s9, 0 }
 0x220   : > { %s3318_s10 = sshrl.u32 (!%p1689_p9), %s3529_s18, 5 }
 0x221   : > { %1326 = sbr.rel (%p1689_p9) target bundleno = 605 (0x25d), region = 48  ;;  %p1690_p10 = scmp.le.s32.totalorder (!%p1689_p9), %s3318_s10, 0 }
 0x226   : > { %1605 = sbr.rel (%p1690_p10) target bundleno = 588 (0x24c), region = 120  ;;  %s3520_s21 = smov (!%p1690_p10), %s3312_s8 }
 0x227   : > { %s3521_s26 = smov (!%p1690_p10), %s3209_s29  ;;  %s3327_s27 = smov (!%p1690_p10), 0  }
 0x228   : > { %s3329_s11 = smov (!%p1690_p10), 0  }
 0x22b LB: >> { %v1343_v36 = vld [vmem:[%s1936_s26] sm:$0xf]  ;;  %v1345_v34 = vld [vmem:[%s1936_s26 + $0x4] sm:$0xf]  ;;  %v1347_v21 = vld [vmem:[%s1936_s26 + $0x8] sm:$0xf]  ;;  %s1944_s11 = sphi %s3329_s11, %s1337_s11   ;;  %s1940_s27 = sphi %s3327_s27, %s3524_s27   ;;  %s1936_s26 = sphi %s3521_s26, %s3523_s26   ;;  %s1932_s21 = sphi %s3520_s21, %s3522_s21  }
 0x22c   : >> { %1344 = vst [vmem:[%s1932_s21] sm:$0xf] %v1343_v36  ;;  %v1349_v19 = vld [vmem:[%s1936_s26 + $0xc] sm:$0xf]  ;;  %v1351_v27 = vld [vmem:[%s1936_s26 + $0x10] sm:$0xf]  ;;  %s1407_s12 = sadd.s32 1, %s1940_s27 }
 0x22d   : >> { %1346 = vst [vmem:[%s1932_s21 + $0x4] sm:$0xf] %v1345_v34  ;;  %v1353_v35 = vld [vmem:[%s1936_s26 + $0x14] sm:$0xf]  ;;  %v1355_v3 = vld [vmem:[%s1936_s26 + $0x18] sm:$0xf]  ;;  %p1408_p11 = scmp.ge.s32.totalorder %s1407_s12, %s3318_s10 }
 0x22e   : >> { %1348 = vst [vmem:[%s1932_s21 + $0x8] sm:$0xf] %v1347_v21  ;;  %v1357_v5 = vld [vmem:[%s1936_s26 + $0x1c] sm:$0xf]  ;;  %v1359_v22 = vld [vmem:[%s1936_s26 + $0x20] sm:$0xf] }
 0x22f   : >> { %1350 = vst [vmem:[%s1932_s21 + $0xc] sm:$0xf] %v1349_v19  ;;  %v1361_v2 = vld [vmem:[%s1936_s26 + $0x24] sm:$0xf]  ;;  %v1363_v11 = vld [vmem:[%s1936_s26 + $0x28] sm:$0xf] }
 0x230   : >> { %1352 = vst [vmem:[%s1932_s21 + $0x10] sm:$0xf] %v1351_v27  ;;  %v1365_v0 = vld [vmem:[%s1936_s26 + $0x2c] sm:$0xf]  ;;  %v1367_v51 = vld [vmem:[%s1936_s26 + $0x30] sm:$0xf] }
 0x231   : >> { %1354 = vst [vmem:[%s1932_s21 + $0x14] sm:$0xf] %v1353_v35  ;;  %v1369_v42 = vld [vmem:[%s1936_s26 + $0x34] sm:$0xf]  ;;  %v1371_v28 = vld [vmem:[%s1936_s26 + $0x38] sm:$0xf] }
 0x232   : >> { %1356 = vst [vmem:[%s1932_s21 + $0x18] sm:$0xf] %v1355_v3  ;;  %v1373_v7 = vld [vmem:[%s1936_s26 + $0x3c] sm:$0xf]  ;;  %v1375_v50 = vld [vmem:[%s1936_s26 + $0x40] sm:$0xf] }
 0x233   : >> { %1358 = vst [vmem:[%s1932_s21 + $0x1c] sm:$0xf] %v1357_v5  ;;  %v1377_v9 = vld [vmem:[%s1936_s26 + $0x44] sm:$0xf]  ;;  %s3531_s12 = smov (%p1408_p11, %s1407_s12), 0  ;;  %s1337_s11 = sadd.s32 1, %s1944_s11  }
 0x234   : >> { %1360 = vst [vmem:[%s1932_s21 + $0x20] sm:$0xf] %v1359_v22  ;;  %v1379_v6 = vld [vmem:[%s1936_s26 + $0x48] sm:$0xf]  ;;  %v1381_v25 = vld [vmem:[%s1936_s26 + $0x4c] sm:$0xf]  ;;  %p1336_p12 = scmp.ge.s32.totalorder %s1337_s11, %s3318_s10  ;;  %s3524_s27 = smov %s3531_s12 }
 0x235   : >> { %1362 = vst [vmem:[%s1932_s21 + $0x24] sm:$0xf] %v1361_v2  ;;  %s1691_s13 = sshll.u32 %s3531_s12, 7  ;;  %v1383_v58 = vld [vmem:[%s1936_s26 + $0x50] sm:$0xf] }
 0x236   : >> { %1364 = vst [vmem:[%s1932_s21 + $0x28] sm:$0xf] %v1363_v11  ;;  %s3388_s14 = scalar_lea.vmem %s3209_s29, %s1691_s13 [#allocation2]   ;;  %s1413_s15 = scalar_lea.vmem %s3312_s8, %s1691_s13   ;;  %v1385_v29 = vld [vmem:[%s1936_s26 + $0x54] sm:$0xf]  ;;  %v1387_v23 = vld [vmem:[%s1936_s26 + $0x58] sm:$0xf] }
 0x237   : >> { %1366 = vst [vmem:[%s1932_s21 + $0x2c] sm:$0xf] %v1365_v0  ;;  %v1389_v32 = vld [vmem:[%s1936_s26 + $0x5c] sm:$0xf]  ;;  %v1391_v39 = vld [vmem:[%s1936_s26 + $0x60] sm:$0xf] }
 0x238   : >> { %1368 = vst [vmem:[%s1932_s21 + $0x30] sm:$0xf] %v1367_v51  ;;  %v1393_v44 = vld [vmem:[%s1936_s26 + $0x64] sm:$0xf]  ;;  %v1395_v15 = vld [vmem:[%s1936_s26 + $0x68] sm:$0xf] }
 0x239   : >> { %1370 = vst [vmem:[%s1932_s21 + $0x34] sm:$0xf] %v1369_v42  ;;  %v1397_v17 = vld [vmem:[%s1936_s26 + $0x6c] sm:$0xf]  ;;  %v1399_v12 = vld [vmem:[%s1936_s26 + $0x70] sm:$0xf] }
 0x23a   : >> { %1372 = vst [vmem:[%s1932_s21 + $0x38] sm:$0xf] %v1371_v28  ;;  %v1401_v48 = vld [vmem:[%s1936_s26 + $0x74] sm:$0xf]  ;;  %v1403_v1 = vld [vmem:[%s1936_s26 + $0x78] sm:$0xf] }
 0x23b   : >> { %1374 = vst [vmem:[%s1932_s21 + $0x3c] sm:$0xf] %v1373_v7  ;;  %v1405_v54 = vld [vmem:[%s1936_s26 + $0x7c] sm:$0xf]  ;;  %s3523_s26 = smov %s3388_s14 }
 0x23c   : >> { %1376 = vst [vmem:[%s1932_s21 + $0x40] sm:$0xf] %v1375_v50 }
 0x23d   : >> { %1378 = vst [vmem:[%s1932_s21 + $0x44] sm:$0xf] %v1377_v9 }
 0x23e   : >> { %1380 = vst [vmem:[%s1932_s21 + $0x48] sm:$0xf] %v1379_v6 }
 0x23f   : >> { %1382 = vst [vmem:[%s1932_s21 + $0x4c] sm:$0xf] %v1381_v25 }
 0x240   : >> { %1384 = vst [vmem:[%s1932_s21 + $0x50] sm:$0xf] %v1383_v58 }
 0x241   : >> { %1386 = vst [vmem:[%s1932_s21 + $0x54] sm:$0xf] %v1385_v29 }
 0x242   : >> { %1388 = vst [vmem:[%s1932_s21 + $0x58] sm:$0xf] %v1387_v23 }
 0x243   : >> { %1390 = vst [vmem:[%s1932_s21 + $0x5c] sm:$0xf] %v1389_v32 }
 0x244   : >> { %1392 = vst [vmem:[%s1932_s21 + $0x60] sm:$0xf] %v1391_v39 }
 0x245   : >> { %1394 = vst [vmem:[%s1932_s21 + $0x64] sm:$0xf] %v1393_v44 }
 0x246   : >> { %1396 = vst [vmem:[%s1932_s21 + $0x68] sm:$0xf] %v1395_v15 }
 0x247   : >> { %1398 = vst [vmem:[%s1932_s21 + $0x6c] sm:$0xf] %v1397_v17  ;;  %1339 = sbr.rel (!%p1336_p12) target bundleno = 555 (0x22b), region = 126 }
 0x248   : >> { %1400 = vst [vmem:[%s1932_s21 + $0x70] sm:$0xf] %v1399_v12 }
 0x249   : >> { %1402 = vst [vmem:[%s1932_s21 + $0x74] sm:$0xf] %v1401_v48 }
 0x24a   : >> { %1404 = vst [vmem:[%s1932_s21 + $0x78] sm:$0xf] %v1403_v1 }
 0x24b   : >> { %1406 = vst [vmem:[%s1932_s21 + $0x7c] sm:$0xf] %v1405_v54  ;;  %s3522_s21 = smov %s1413_s15 }
 0x24c PF: > { %s3429_s16 = sand.u32 31, %s3529_s18   ;;  %s1705_s17 = sshll.u32 %s3318_s10, 7 }
 0x24d   : > { %s1418_s20 = scalar_lea.vmem %s3209_s29, %s1705_s17 [#allocation2]   ;;  %s1420_s23 = scalar_lea.vmem %s3312_s8, %s1705_s17  }
 0x24e   : > { %p1696_p13 = scmp.le.s32.totalorder %s3429_s16, 0 }
 0x24f   : > { %s1946_s24 = smov (!%p1696_p13), %s1420_s23   ;;  %s1950_s28 = smov (!%p1696_p13), %s1418_s20  }
 0x250   : > { %1619 = sbr.rel (%p1696_p13) target bundleno = 605 (0x25d), region = 131  ;;  %s1954_s30 = smov (!%p1696_p13), 0  }
 0x251   : > { %s1958_s6 = smov (!%p1696_p13), 0  }
 0x255 LB: >> { %v1430_v33 = vld [vmem:[%s1952_s28] sm:$0xf]  ;;  %s1432_s18 = sadd.s32 1, %s1956_s30  ;;  %s1424_s6 = sadd.s32 1, %s1960_s6   ;;  %s1960_s6 = sphi %s1958_s6, %s1424_s6   ;;  %s1956_s30 = sphi %s1954_s30, %s1955_s30   ;;  %s1952_s28 = sphi %s1950_s28, %s1437_s28   ;;  %s1948_s24 = sphi %s1946_s24, %s1438_s24  }
 0x256   : >> { %1431 = vst [vmem:[%s1948_s24] sm:$0xf] %v1430_v33  ;;  %p1433_p0 = scmp.ge.s32.totalorder %s1432_s18, %s3429_s16  ;;  %p1423_p1 = scmp.ge.s32.totalorder %s1424_s6, %s3429_s16 }
 0x258   : >> { %s3533_s18 = smov (%p1433_p0, %s1432_s18), 0  ;;  %1426 = sbr.rel (!%p1423_p1) target bundleno = 597 (0x255), region = 137 }
 0x259   : >> { %s1697_s29 = sshll.u32 %s3533_s18, 2  ;;  %s1955_s30 = smov %s3533_s18  }
 0x25a   : >> { %s1437_s28 = scalar_lea.vmem %s1418_s20, %s1697_s29 [#allocation2]   ;;  %s1438_s24 = scalar_lea.vmem %s1420_s23, %s1697_s29  }
 0x25d PF: > { %p12_p2 = scmp.ge.s32.totalorder %s2008_s22, 5   ;;  %s3525_s18 = smov %s1924_s19 }
 0x25e   : > { %s3526_s19 = smov %s2016_s25  ;;  %s3527_s20 = smov %s2008_s22 }
 0x25f   :  { %14 = sbr.rel (!%p12_p2) target bundleno = 2 (0x2), region = 148 }

// kernel: injector_forward.5
= control target key start
LH: loop header
LB: loop body
LE: loop exit
PB: predicated region body
PF: predicated region fallthrough
CT: control target
= control target key end

     0   :  { %s863_s24 = smov 0   ;;  %s1187_s0 = inlined_call_operand.vmem [shape: bf16[128,48], index: 0, kind: input, shape index: {}]   ;;  %s1188_s1 = inlined_call_operand.vmem [shape: bf16[48,48], index: 1, kind: input, shape index: {}]   ;;  %s1189_s2 = inlined_call_operand.vmem [shape: f32[1,48], index: 2, kind: input, shape index: {}]   ;;  %s1190_s3 = inlined_call_operand.vmem [shape: f32[128,48], index: 3, kind: input, shape index: {}]   ;;  %s1191_s4 = inlined_call_operand.vmem [shape: f32[1,48], index: 4, kind: input, shape index: {}]   ;;  %s1192_s5 = inlined_call_operand.vmem [shape: f32[1,48], index: 5, kind: input, shape index: {}]   ;;  %s1193_s6 = inlined_call_operand.vmem [shape: f32[1,48], index: 6, kind: input, shape index: {}]   ;;  %s1194_s7 = inlined_call_operand.vmem [shape: f32[128,48], index: 7, kind: output, shape index: {}]  }
   0x1 LB: > { %s722_s25 = sadd.s32 4294967295, %s820_s24   ;;  %p726_p0 = scmp.ge.s32.totalorder %s820_s24, 1  ;;  %s820_s24 = sphi %s863_s24, %s17_s24  }
   0x2   : > { %p249_p1 = scmp.lt.s32.totalorder %s820_s24, 3 }
   0x4   : > { %p250_p2 = pnand %p726_p0, %p249_p1 }
   0x5   : > { %s727_s26 = sshll.u32 (!%p250_p2), %s722_s25, 3 }
   0x6   : > { %253 = sbr.rel (%p250_p2) target bundleno = 315 (0x13b), region = 48  ;;  %p287_p3 = scmp.lt.s32.totalorder (!%p250_p2), %s727_s26, 15 }
   0xb   : > { %s1204_s26 = smov (!%p287_p3, %s727_s26), 15  ;;  %vm315_vm0 = vcmask 392192   ;;  %v773_v16 = vld [vmem:[%s1188_s1 + $0x10] sm:$0xff]  ;;  %v822_v17 = vmov 48.0   ;;  %v772_v18 = vld [vmem:[%s1188_s1 + $0x8] sm:$0xff]  ;;  %v771_v20 = vld [vmem:[%s1188_s1] sm:$0xff] }
   0xc   : > { %s730_s27 = sshll.u32 %s1204_s26, 3  ;;  %796 = vrcp.f32 %v822_v17  ;;  %775 = vmatpush.bf16.msra.mxu2 %v773_v16  ;;  %594 = vmatpush.bf16.msra.mxu0 %v773_v16  ;;  %s728_s12 = sshll.u32 %s1204_s26, 2 }
   0xd   : > { %s296_s30 = scalar_lea.vmem %s1190_s3, %s730_s27  ;;  %774 = vmatpush.bf16.msra.mxu1 %v773_v16  ;;  %776 = vmatpush.bf16.msra.mxu3 %v773_v16  ;;  %s290_s17 = scalar_lea.vmem %s1187_s0, %s728_s12 }
   0xe   : > { %v879_v0 = vld [vmem:[%s296_s30 + $0x20] sm:$0xff]  ;;  %v881_v1 = vld [vmem:[%s296_s30 + $0x10] sm:$0xff]  ;;  %v891_v6 = vld [vmem:[%s296_s30 + $0x28] sm:$0xff]  ;;  %s1124_s8 = scalar_lea.vmem %s1194_s7, %s730_s27 }
   0xf   : > { %v883_v2 = vld [vmem:[%s296_s30] sm:$0xff]  ;;  %v328_v3 = vsel %vm315_vm0, %v879_v0, 0.0  ;;  %v322_v4 = vsel %vm315_vm0, %v881_v1, 0.0  ;;  %v893_v7 = vld [vmem:[%s296_s30 + $0x18] sm:$0xff]  ;;  %v895_v8 = vld [vmem:[%s296_s30 + $0x8] sm:$0xff]  ;;  %v331_v9 = vsel %vm315_vm0, %v891_v6, 0.0 }
  0x10   : > { %v316_v5 = vsel %vm315_vm0, %v883_v2, 0.0  ;;  %329 = vadd.xlane.f32.xlu2 %v328_v3  ;;  %323 = vadd.xlane.f32.xlu1 %v322_v4  ;;  %v325_v10 = vsel %vm315_vm0, %v893_v7, 0.0  ;;  %v319_v11 = vsel %vm315_vm0, %v895_v8, 0.0  ;;  %v903_v12 = vld [vmem:[%s296_s30 + $0x38] sm:$0xff]  ;;  %v905_v13 = vld [vmem:[%s296_s30 + $0x30] sm:$0xff]  ;;  %v767_v25 = vld [vmem:[%s290_s17] sm:$0xff] }
  0x11   : > { %317 = vadd.xlane.f32.xlu0 %v316_v5  ;;  %v337_v14 = vsel %vm315_vm0, %v903_v12, 0.0  ;;  %v334_v15 = vsel %vm315_vm0, %v905_v13, 0.0  ;;  %778 = vmatpush.bf16.msra.mxu2 %v772_v18  ;;  %v769_v22 = vld [vmem:[%s290_s17 + $0x10] sm:$0xff]  ;;  %v768_v26 = vld [vmem:[%s290_s17 + $0x8] sm:$0xff]  ;;  %v770_v27 = vld [vmem:[%s290_s17 + $0x18] sm:$0xff] }
  0x12   : > { %v797_v19 = vpop.eup %796  ;;  %595 = vmatpush.bf16.msra.mxu0 %v772_v18  ;;  %777 = vmatpush.bf16.msra.mxu1 %v772_v18 }
  0x13   : > { %779 = vmatpush.bf16.msra.mxu3 %v772_v18  ;;  %v341_v21 = vmul.f32 48.0, %v797_v19  ;;  %vm345_vm1 = vweird.f32 %v797_v19 }
  0x15   : > { %781 = vmatpush.bf16.msra.mxu2 %v771_v20  ;;  %v342_v23 = vsub.f32 1.0, %v341_v21 }
  0x16   : > { %596 = vmatpush.bf16.msra.mxu0 %v771_v20  ;;  %780 = vmatpush.bf16.msra.mxu1 %v771_v20 }
  0x17   : > { %782 = vmatpush.bf16.msra.mxu3 %v771_v20  ;;  %v343_v24 = vmul.f32 %v797_v19, %v342_v23 }
  0x18   : > { %332 = vadd.xlane.f32.xlu2 %v331_v9  ;;  %326 = vadd.xlane.f32.xlu1 %v325_v10 }
  0x19   : > { %320 = vadd.xlane.f32.xlu0 %v319_v11  ;;  %763 = vmatmul.msk.bf16.vlgmr.msra.gmra.mxu2 %vm315_vm0, %v769_v22  ;;  %v344_v28 = vadd.f32 %v797_v19, %v343_v24 }
  0x1a   : > { %761 = vmatmul.msk.bf16.vlgmr.msra.gmra.mxu0 %vm315_vm0, %v767_v25  ;;  %762 = vmatmul.msk.bf16.vlgmr.msra.gmra.mxu1 %vm315_vm0, %v768_v26 }
  0x1b   : > { %764 = vmatmul.msk.bf16.vlgmr.msra.gmra.mxu3 %vm315_vm0, %v770_v27  ;;  %v928_v29 = vsel %vm345_vm1, %v797_v19, %v344_v28 }
  0x20   : > { %338 = vadd.xlane.f32.xlu1 %v337_v14 }
  0x21   : > { %335 = vadd.xlane.f32.xlu0 %v334_v15 }
  0x83   : > { %v330_v30 = vpop.xlane.xlu2 %329  ;;  %v324_v31 = vpop.xlane.xlu1 %323 }
  0x84   : > { %v349_v32 = vmul.f32 %v928_v29, %v324_v31  ;;  %v318_v33 = vpop.xlane.xlu0 %317  ;;  %v351_v46 = vmul.f32 %v928_v29, %v330_v30 }
  0x85   : > { %v347_v34 = vmul.f32 %v928_v29, %v318_v33 }
  0x86   : > { %v933_v35 = vsub.f32 %v881_v1, %v349_v32  ;;  %v962_v53 = vsub.f32 %v879_v0, %v351_v46 }
  0x87   : > { %v936_v36 = vsub.f32 %v883_v2, %v347_v34 }
  0x88   : > { %v365_v37 = vmul.f32 %v933_v35, %v933_v35  ;;  %v367_v62 = vmul.f32 %v962_v53, %v962_v53 }
  0x89   : > { %v363_v38 = vmul.f32 %v936_v36, %v936_v36 }
  0x8a   : > { %v377_v39 = vsel %vm315_vm0, %v365_v37, 0.0  ;;  %v383_v4 = vsel %vm315_vm0, %v367_v62, 0.0  ;;  %v1099_v62 = vld [vmem:[%s1193_s6] ss:$0 sm:$0xff] }
  0x8b   : > { %v333_v40 = vpop.xlane.xlu2 %332  ;;  %378 = vadd.xlane.f32.xlu1 %v377_v39  ;;  %v327_v41 = vpop.xlane.xlu1 %326  ;;  %v371_v42 = vsel %vm315_vm0, %v363_v38, 0.0 }
  0x8c   : > { %v352_v43 = vmul.f32 %v928_v29, %v333_v40  ;;  %v350_v44 = vmul.f32 %v928_v29, %v327_v41  ;;  %372 = vadd.xlane.f32.xlu2 %v371_v42  ;;  %v321_v45 = vpop.xlane.xlu0 %320  ;;  %v1003_v40 = vld [vmem:[%s1189_s2] ss:$0 sm:$0xff] }
  0x8d   : > { %v348_v47 = vmul.f32 %v928_v29, %v321_v45 }
  0x8e   : > { %v949_v48 = vsub.f32 %v891_v6, %v352_v43  ;;  %v952_v49 = vsub.f32 %v893_v7, %v350_v44 }
  0x8f   : > { %v955_v50 = vsub.f32 %v895_v8, %v348_v47 }
  0x90   : > { %v368_v51 = vmul.f32 %v949_v48, %v949_v48  ;;  %v366_v52 = vmul.f32 %v952_v49, %v952_v49 }
  0x91   : > { %v364_v54 = vmul.f32 %v955_v50, %v955_v50 }
  0x92   : > { %v386_v55 = vsel %vm315_vm0, %v368_v51, 0.0  ;;  %v380_v56 = vsel %vm315_vm0, %v366_v52, 0.0 }
  0x93   : > { %387 = vadd.xlane.f32.xlu1 %v386_v55  ;;  %v374_v57 = vsel %vm315_vm0, %v364_v54, 0.0  ;;  %v339_v58 = vpop.xlane.xlu1 %338 }
  0x94   : > { %381 = vadd.xlane.f32.xlu2 %v380_v56  ;;  %375 = vadd.xlane.f32.xlu0 %v374_v57  ;;  %v336_v59 = vpop.xlane.xlu0 %335  ;;  %v354_v61 = vmul.f32 %v928_v29, %v339_v58 }
  0x95   : > { %v353_v60 = vmul.f32 %v928_v29, %v336_v59 }
  0x96   : > { %v977_v3 = vsub.f32 %v903_v12, %v354_v61 }
  0x97   : > { %v974_v63 = vsub.f32 %v905_v13, %v353_v60  ;;  %v598_v26 = vpop.f32.mrf.mxu0  ;;  %v603_v41 = vpop.f32.mrf.mxu1 }
  0x98   : > { %v370_v10 = vmul.f32 %v977_v3, %v977_v3  ;;  %v1018_v59 = vadd.f32 %v1003_v40, %v598_v26  ;;  %v1061_v26 = vld [vmem:[%s1192_s5] ss:$0 sm:$0xff] }
  0x99   : > { %v369_v5 = vmul.f32 %v974_v63, %v974_v63 }
  0x9a   : > { %v392_v11 = vsel %vm315_vm0, %v370_v10, 0.0 }
  0x9b   : > { %v389_v9 = vsel %vm315_vm0, %v369_v5, 0.0 }
  0x9c   : > { %384 = vadd.xlane.f32.xlu0 %v383_v4  ;;  %390 = vadd.xlane.f32.xlu2 %v389_v9  ;;  %v1005_v42 = vpop.f32.mrf.mxu2 }
  0x9f   : > { %v600_v60 = vpop.f32.mrf.mxu0 }
  0xa4   : > { %393 = vadd.xlane.f32.xlu0 %v392_v11 }
  0xfe   : > { %v379_v14 = vpop.xlane.xlu1 %378 }
  0xff   : > { %v397_v15 = vmul.f32 %v379_v14, %v928_v29  ;;  %v373_v16 = vpop.xlane.xlu2 %372 }
 0x100   : > { %v395_v17 = vmul.f32 %v373_v16, %v928_v29  ;;  %v604_v16 = vadd.f32 %v1003_v40, %v603_v41  ;;  %v610_v41 = vpop.f32.mrf.mxu2 }
 0x101   : > { %v405_v18 = vadd.f32 1e-06, %v397_v15 }
 0x102   : > { %v403_v19 = vadd.f32 1e-06, %v395_v17 }
 0x103   : > { %798 = vrsqrt.f32 %v405_v18  ;;  %vm437_vm2 = vweird.f32 %v405_v18 }
 0x104   : > { %800 = vrsqrt.f32 %v403_v19  ;;  %vm417_vm6 = vweird.f32 %v403_v19 }
 0x106   : > { %v388_v20 = vpop.xlane.xlu1 %387 }
 0x107   : > { %v400_v21 = vmul.f32 %v388_v20, %v928_v29  ;;  %v382_v22 = vpop.xlane.xlu2 %381  ;;  %v376_v23 = vpop.xlane.xlu0 %375  ;;  %v1051_v20 = vadd.f32 %v1003_v40, %v600_v60 }
 0x108   : > { %v398_v24 = vmul.f32 %v382_v22, %v928_v29  ;;  %v396_v25 = vmul.f32 %v376_v23, %v928_v29 }
 0x109   : > { %v799_v27 = vpop.eup %798  ;;  %v991_v28 = vadd.f32 1e-06, %v400_v21 }
 0x10a   : > { %v801_v30 = vpop.eup %800  ;;  %v432_v31 = vmul.f32 %v799_v27, %v405_v18  ;;  %v993_v32 = vadd.f32 1e-06, %v398_v24  ;;  %v995_v33 = vadd.f32 1e-06, %v396_v25  ;;  %vm438_vm3 = vweird.f32 %v799_v27 }
 0x10b   : > { %v412_v34 = vmul.f32 %v801_v30, %v403_v19  ;;  %802 = vrsqrt.f32 %v991_v28  ;;  %vm418_vm4 = vweird.f32 %v801_v30  ;;  %vm1023_vm5 = vmor %vm437_vm2, %vm438_vm3  ;;  %v1048_v19 = vld [vmem:[%s1191_s4] ss:$0 sm:$0xff]  ;;  %vm467_vm8 = vweird.f32 %v991_v28 }
 0x10c   : > { %v433_v37 = vmul.f32 %v799_v27, %v432_v31  ;;  %804 = vrsqrt.f32 %v993_v32  ;;  %vm1033_vm7 = vmor %vm417_vm6, %vm418_vm4  ;;  %vm447_vm10 = vweird.f32 %v993_v32  ;;  %vm427_vm15 = vweird.f32 %v995_v33 }
 0x10d   : > { %v413_v38 = vmul.f32 %v801_v30, %v412_v34  ;;  %806 = vrsqrt.f32 %v995_v33 }
 0x10e   : > { %v434_v39 = vmul.f32 0.5, %v433_v37  ;;  %v605_v37 = vpop.f32.mrf.mxu1 }
 0x10f   : > { %v414_v43 = vmul.f32 0.5, %v413_v38  ;;  %v391_v44 = vpop.xlane.xlu2 %390  ;;  %v385_v45 = vpop.xlane.xlu0 %384 }
 0x110   : > { %v435_v46 = vsub.f32 1.5, %v434_v39  ;;  %v401_v47 = vmul.f32 %v391_v44, %v928_v29  ;;  %v399_v51 = vmul.f32 %v385_v45, %v928_v29 }
 0x111   : > { %v1009_v52 = vpop.eup %802  ;;  %v415_v54 = vsub.f32 1.5, %v414_v43 }
 0x112   : > { %v1011_v55 = vpop.eup %804  ;;  %v436_v56 = vmul.f32 %v799_v27, %v435_v46  ;;  %v462_v57 = vmul.f32 %v1009_v52, %v991_v28  ;;  %v1015_v58 = vadd.f32 1e-06, %v401_v47  ;;  %v1029_v9 = vadd.f32 1e-06, %v399_v51 }
 0x113   : > { %v1020_v61 = vpop.eup %806  ;;  %v416_v4 = vmul.f32 %v801_v30, %v415_v54  ;;  %v442_v5 = vmul.f32 %v1011_v55, %v993_v32  ;;  %vm468_vm9 = vweird.f32 %v1009_v52  ;;  %vm448_vm11 = vweird.f32 %v1011_v55 }
 0x114   : > { %v440_v10 = vsel %vm1023_vm5, %v799_v27, %v436_v56  ;;  %v463_v14 = vmul.f32 %v1009_v52, %v462_v57  ;;  %v422_v15 = vmul.f32 %v1020_v61, %v995_v33  ;;  %808 = vrsqrt.f32 %v1015_v58  ;;  %vm1074_vm12 = vmor %vm467_vm8, %vm468_vm9 }
 0x115   : > { %v420_v17 = vsel %vm1033_vm7, %v801_v30, %v416_v4  ;;  %v443_v18 = vmul.f32 %v1011_v55, %v442_v5  ;;  %810 = vrsqrt.f32 %v1029_v9  ;;  %v493_v27 = vmul.f32 %v440_v10, %v933_v35  ;;  %vm1089_vm14 = vmor %vm447_vm10, %vm448_vm11  ;;  %v613_v35 = vpop.f32.mrf.mxu3 }
 0x116   : > { %v464_v21 = vmul.f32 0.5, %v463_v14  ;;  %v423_v22 = vmul.f32 %v1020_v61, %v422_v15  ;;  %v491_v25 = vmul.f32 %v420_v17, %v936_v36  ;;  %vm428_vm13 = vweird.f32 %v1020_v61 }
 0x117   : > { %v444_v23 = vmul.f32 0.5, %v443_v18  ;;  %v394_v24 = vpop.xlane.xlu0 %393  ;;  %v504_v36 = vmul.f32 %v1048_v19, %v493_v27  ;;  %v606_v54 = vadd.f32 %v1003_v40, %v605_v37  ;;  %v611_v4 = vadd.f32 %v1003_v40, %v610_v41  ;;  %vm429_vm1 = vmor %vm427_vm15, %vm428_vm13 }
 0x118   : > { %v465_v30 = vsub.f32 1.5, %v464_v21  ;;  %v424_v31 = vmul.f32 0.5, %v423_v22  ;;  %v402_v34 = vmul.f32 %v394_v24, %v928_v29  ;;  %v502_v39 = vmul.f32 %v1048_v19, %v491_v25 }
 0x119   : > { %v445_v38 = vsub.f32 1.5, %v444_v23  ;;  %v515_v51 = vadd.f32 %v1061_v26, %v504_v36  ;;  %vm477_vm2 = vweird.f32 %v1015_v58  ;;  %vm457_vm6 = vweird.f32 %v1029_v9 }
 0x11a   : > { %v466_v43 = vmul.f32 %v1009_v52, %v465_v30  ;;  %v425_v29 = vsub.f32 1.5, %v424_v31  ;;  %v1079_v44 = vadd.f32 1e-06, %v402_v34  ;;  %v809_v45 = vpop.eup %808  ;;  %v513_v47 = vadd.f32 %v1061_v26, %v502_v39 }
 0x11b   : > { %v446_v46 = vmul.f32 %v1011_v55, %v445_v38  ;;  %v811_v56 = vpop.eup %810  ;;  %v472_v60 = vmul.f32 %v809_v45, %v1015_v58  ;;  %v620_v15 = vadd.f32 %v604_v16, %v515_v51  ;;  %vm478_vm3 = vweird.f32 %v809_v45 }
 0x11c   : > { %v426_v57 = vmul.f32 %v1020_v61, %v425_v29  ;;  %v470_v32 = vsel %vm1074_vm12, %v1009_v52, %v466_v43  ;;  %v452_v33 = vmul.f32 %v811_v56, %v1029_v9  ;;  %812 = vrsqrt.f32 %v1079_v44  ;;  %vm479_vm5 = vmor %vm477_vm2, %vm478_vm3 }
 0x11d   : > { %v450_v5 = vsel %vm1089_vm14, %v1011_v55, %v446_v46  ;;  %v473_v11 = vmul.f32 %v809_v45, %v472_v60  ;;  %v618_v14 = vadd.f32 %v1018_v59, %v513_v47  ;;  %v496_v22 = vmul.f32 %v470_v32, %v949_v48 }
 0x11e   : > { %v430_v10 = vsel %vm429_vm1, %v1020_v61, %v426_v57  ;;  %v453_v52 = vmul.f32 %v811_v56, %v452_v33  ;;  %v494_v55 = vmul.f32 %v450_v5, %v952_v49  ;;  %v632_v61 = vmul.f32 %v1099_v62, %v620_v15 }
 0x11f   : > { %v492_v17 = vmul.f32 %v430_v10, %v955_v50  ;;  %v474_v18 = vmul.f32 0.5, %v473_v11  ;;  %v630_v21 = vmul.f32 %v1099_v62, %v618_v14  ;;  %vm458_vm4 = vweird.f32 %v811_v56  ;;  %v615_v11 = vpop.f32.mrf.mxu3 }
 0x120   : > { %v454_v59 = vmul.f32 0.5, %v453_v52  ;;  %v505_v49 = vmul.f32 %v1048_v19, %v494_v55  ;;  %v507_v48 = vmul.f32 %v1048_v19, %v496_v22  ;;  %v640_v27 = vadd.f32 %v632_v61, %v881_v1  ;;  %vm459_vm7 = vmor %vm457_vm6, %vm458_vm4 }
 0x121   : > { %v503_v50 = vmul.f32 %v1048_v19, %v492_v17  ;;  %v475_v16 = vsub.f32 1.5, %v474_v18  ;;  %v638_v23 = vadd.f32 %v630_v21, %v883_v2  ;;  %v614_v57 = vadd.f32 %v1003_v40, %v613_v35 }
 0x122   : > { %v813_v24 = vpop.eup %812  ;;  %v455_v25 = vsub.f32 1.5, %v454_v59  ;;  %v516_v31 = vadd.f32 %v1061_v26, %v505_v49  ;;  %v518_v38 = vadd.f32 %v1061_v26, %v507_v48  ;;  %648 = vst.msk [vmem:[%s1124_s8 + $0x10] sm:$0xff] %vm315_vm0, %v640_v27  ;;  %vm487_vm9 = vweird.f32 %v1079_v44 }
 0x123   : > { %v514_v30 = vadd.f32 %v1061_v26, %v503_v50  ;;  %v476_v34 = vmul.f32 %v809_v45, %v475_v16  ;;  %v482_v37 = vmul.f32 %v813_v24, %v1079_v44  ;;  %646 = vst.msk [vmem:[%s1124_s8] sm:$0xff] %vm315_vm0, %v638_v23  ;;  %vm488_vm8 = vweird.f32 %v813_v24 }
 0x124   : > { %v456_v2 = vmul.f32 %v811_v56, %v455_v25  ;;  %v621_v39 = vadd.f32 %v606_v54, %v516_v31  ;;  %v623_v43 = vadd.f32 %v611_v4, %v518_v38  ;;  %vm489_vm10 = vmor %vm487_vm9, %vm488_vm8  ;;  %v616_v17 = vadd.f32 %v1003_v40, %v615_v11 }
 0x125   : > { %v619_v1 = vadd.f32 %v1051_v20, %v514_v30  ;;  %v480_v36 = vsel %vm479_vm5, %v809_v45, %v476_v34  ;;  %v483_v41 = vmul.f32 %v813_v24, %v482_v37  ;;  %v609_v20 = vadd.f32 %v1003_v40, %v1005_v42 }
 0x126   : > { %v460_v29 = vsel %vm459_vm7, %v811_v56, %v456_v2  ;;  %v633_v58 = vmul.f32 %v1099_v62, %v621_v39  ;;  %v497_v47 = vmul.f32 %v480_v36, %v974_v63  ;;  %v635_v45 = vmul.f32 %v1099_v62, %v623_v43 }
 0x127   : > { %v631_v46 = vmul.f32 %v1099_v62, %v619_v1  ;;  %v484_v9 = vmul.f32 0.5, %v483_v41  ;;  %v495_v51 = vmul.f32 %v460_v29, %v962_v53 }
 0x128   : > { %v641_v56 = vadd.f32 %v633_v58, %v893_v7  ;;  %v508_v28 = vmul.f32 %v1048_v19, %v497_v47  ;;  %v643_v53 = vadd.f32 %v635_v45, %v891_v6 }
 0x129   : > { %v639_v54 = vadd.f32 %v631_v46, %v895_v8  ;;  %v485_v60 = vsub.f32 1.5, %v484_v9  ;;  %v506_v63 = vmul.f32 %v1048_v19, %v495_v51 }
 0x12a   : > { %v519_v42 = vadd.f32 %v1061_v26, %v508_v28  ;;  %649 = vst.msk [vmem:[%s1124_s8 + $0x18] sm:$0xff] %vm315_vm0, %v641_v56 }
 0x12b   : > { %647 = vst.msk [vmem:[%s1124_s8 + $0x8] sm:$0xff] %vm315_vm0, %v639_v54  ;;  %v486_v4 = vmul.f32 %v813_v24, %v485_v60  ;;  %v517_v7 = vadd.f32 %v1061_v26, %v506_v63 }
 0x12c   : > { %651 = vst.msk [vmem:[%s1124_s8 + $0x28] sm:$0xff] %vm315_vm0, %v643_v53  ;;  %v624_v8 = vadd.f32 %v614_v57, %v519_v42 }
 0x12d   : > { %v490_v32 = vsel %vm489_vm10, %v813_v24, %v486_v4  ;;  %v622_v6 = vadd.f32 %v609_v20, %v517_v7 }
 0x12e   : > { %v636_v5 = vmul.f32 %v1099_v62, %v624_v8  ;;  %v498_v33 = vmul.f32 %v490_v32, %v977_v3 }
 0x12f   : > { %v634_v10 = vmul.f32 %v1099_v62, %v622_v6 }
 0x130   : > { %v644_v44 = vadd.f32 %v636_v5, %v905_v13  ;;  %v509_v14 = vmul.f32 %v1048_v19, %v498_v33 }
 0x131   : > { %v642_v52 = vadd.f32 %v634_v10, %v879_v0 }
 0x132   : > { %652 = vst.msk [vmem:[%s1124_s8 + $0x30] sm:$0xff] %vm315_vm0, %v644_v44  ;;  %v520_v15 = vadd.f32 %v1061_v26, %v509_v14 }
 0x133   : > { %650 = vst.msk [vmem:[%s1124_s8 + $0x20] sm:$0xff] %vm315_vm0, %v642_v52 }
 0x134   : > { %v625_v55 = vadd.f32 %v616_v17, %v520_v15 }
 0x136   : > { %v637_v3 = vmul.f32 %v1099_v62, %v625_v55 }
 0x138   : > { %v645_v18 = vadd.f32 %v637_v3, %v903_v12 }
 0x13a   : > { %653 = vst.msk [vmem:[%s1124_s8 + $0x38] sm:$0xff] %vm315_vm0, %v645_v18 }
 0x13b PF: > { %s17_s24 = sadd.s32 1, %s820_s24  }
 0x13c   : > { %p14_p4 = scmp.ge.s32.totalorder %s17_s24, 4  }
 0x13e   :  { %16 = sbr.rel (!%p14_p4) target bundleno = 1 (0x1), region = 81 }

</bundles_post_ra>
